<compile_context>
chip_gen: v7x
topology: tpu7x:2x2x1
jax: 0.10.0
libtpu: 0.0.40
codegen_flags: <defaults>
</compile_context>

<pallas_src>
import functools

import jax
import jax.numpy as jnp
from jax.experimental import pallas as pl
from jax.experimental.pallas import tpu as pltpu


def _window_attn_kernel(x_ref, wqkv_ref, bqkv_ref, wp_ref, bp_ref, *rest,
                        wb, n, num_heads, head_dim, has_mask, approx_recip):
    # x_ref:    (WB*N, C)   block of WB windows (original activation dtype)
    # wqkv_ref: (C, 3C)     fused QKV weight, pre-transposed, q-scale folded
    # bqkv_ref: (1, 3C)     f32 fused bias (q part pre-scaled)
    # wp_ref:   (C, Cp)     w_proj.T zero-padded to lane-dense Cp
    # bp_ref:   (1, Cp)     f32
    # mask_ref: (WB, N, N)  f32 additive mask block (only if has_mask)
    # o_ref:    (WB*N, Cp)
    if has_mask:
        mask_ref, o_ref = rest
    else:
        (o_ref,) = rest

    c = num_heads * head_dim
    cdt = wqkv_ref.dtype                       # matmul operand dtype (bf16/f32)

    # Fused QKV projection: one big MXU matmul, f32 accumulate, f32 bias add.
    x = x_ref[...].astype(cdt)                                     # (WB*N, C)
    qkv = jnp.dot(x, wqkv_ref[...],
                  preferred_element_type=jnp.float32) + bqkv_ref[...]  # (WB*N,3C) f32
    qkv = qkv.astype(cdt).reshape(wb, n, 3 * c)                    # (WB, N, 3C)

    if has_mask:
        maskv = mask_ref[...]                                      # (WB, N, N) f32

    # Per-head attention, batched over the WB windows in one einsum each.
    # (The head loop is static and small; score/context matmuls are bounded by
    # head_dim anyway, so only batching over windows helps here.)
    ctx_parts = []
    for h in range(num_heads):
        lo = h * head_dim
        qh = qkv[:, :, lo:lo + head_dim]                           # (WB, N, hd)
        kh = qkv[:, :, c + lo:c + lo + head_dim]
        vh = qkv[:, :, 2 * c + lo:2 * c + lo + head_dim]

        s = jnp.einsum('bnd,bmd->bnm', qh, kh,
                       preferred_element_type=jnp.float32)         # (WB, N, N)
        if has_mask:
            s = s + maskv

        # Numerically-stable softmax in f32.
        m = jnp.max(s, axis=-1, keepdims=True)
        p = jnp.exp(s - m)
        denom = jnp.sum(p, axis=-1, keepdims=True)
        if approx_recip:
            attn = p * pl.reciprocal(denom, approx=True)           # EUP
        else:
            attn = p / denom                                       # exact (f32 path)

        ctx_parts.append(
            jnp.einsum('bnm,bmd->bnd', attn.astype(cdt), vh,
                       preferred_element_type=jnp.float32))        # (WB, N, hd)

    # Head concat -> single fused output projection (lane-dense Cp output).
    ctx = jnp.concatenate(ctx_parts, axis=-1).astype(cdt)          # (WB, N, C)
    ctx = ctx.reshape(wb * n, c)
    out = jnp.dot(ctx, wp_ref[...],
                  preferred_element_type=jnp.float32) + bp_ref[...]  # (WB*N, Cp)
    o_ref[...] = out.astype(o_ref.dtype)


def prepare_window_attention_params(w_qkv, b_qkv, w_proj, b_proj, *,
                                    num_heads, qk_scale=None,
                                    compute_dtype=jnp.bfloat16):
    """One-time parameter prep (PyTorch layouts: w_qkv (3C,C), b_qkv (3C,),
    w_proj (C,C), b_proj (C,)): transpose so the contraction dim is on the
    sublane axis, fold the q scale, zero-pad the projection output to a
    lane-dense width, and cast matmul weights to compute_dtype."""
    c = w_proj.shape[0]
    hd = c // num_heads
    scale = qk_scale if qk_scale is not None else hd ** (-0.5)
    cp = ((c + 127) // 128) * 128                      # lane-dense output width

    # Fused QKV: y = x @ w_qkv.T + b_qkv  ->  store w_qkv.T as (C, 3C).
    wqkv = jnp.transpose(w_qkv).astype(jnp.float32)                 # (C, 3C)
    bqkv = b_qkv.astype(jnp.float32).reshape(1, 3 * c)
    # Fold q scale into the first C output columns (q = (xWq.T + bq)*scale).
    scale_vec = jnp.concatenate([jnp.full((c,), scale, jnp.float32),
                                 jnp.ones((2 * c,), jnp.float32)])
    wqkv = (wqkv * scale_vec[None, :]).astype(compute_dtype)
    bqkv = bqkv * scale_vec[None, :]

    # Output projection: y = ctx @ w_proj.T + b_proj -> (C, Cp), zero-padded.
    wp = jnp.transpose(w_proj).astype(jnp.float32)                  # (C, C)
    wp = jnp.pad(wp, ((0, 0), (0, cp - c))).astype(compute_dtype)
    bp = jnp.pad(b_proj.astype(jnp.float32), (0, cp - c)).reshape(1, cp)

    return dict(wqkv=wqkv, bqkv=bqkv, wp=wp, bp=bp,
                num_heads=num_heads, head_dim=hd, c=c, cp=cp)


def _choose_window_block(b_, divisor_limit, max_wb=8):
    """Largest WB <= max_wb that divides `divisor_limit` (nw when a mask is
    present, else B_) and divides B_, preferring an even grid length >= 2
    (balances v7x's two TensorCores), then any grid length >= 2, then any."""
    cands = [wb for wb in range(min(divisor_limit, max_wb), 0, -1)
             if divisor_limit % wb == 0 and b_ % wb == 0]
    for wb in cands:
        steps = b_ // wb
        if steps >= 2 and steps % 2 == 0:
            return wb
    for wb in cands:
        if b_ // wb >= 2:
            return wb
    return cands[0] if cands else 1


def window_attention_prepared(x, params, mask, *, max_windows_per_step=8,
                              vmem_limit_bytes=32 * 1024 * 1024):
    """x: (B_, N, C); params from prepare_window_attention_params;
    mask: (nw, N, N) additive mask or None.  Returns (B_, N, C) in x.dtype."""
    b_, n, c = x.shape
    assert c == params['c']
    num_heads = params['num_heads']
    head_dim = params['head_dim']
    cp = params['cp']
    cdt = params['wqkv'].dtype
    approx_recip = jnp.dtype(cdt) != jnp.dtype(jnp.float32)

    has_mask = mask is not None
    if has_mask:
        nw = mask.shape[0]
        # The PyTorch ordering is B_ = batch * nw with the window index fastest.
        assert b_ % nw == 0, "B_ must be a multiple of mask.shape[0] (= nw)"
        wb = _choose_window_block(b_, nw, max_windows_per_step)
    else:
        wb = _choose_window_block(b_, b_, max_windows_per_step)
    grid = (b_ // wb,)

    x2d = x.reshape(b_ * n, c)        # free metadata reshape; cast happens in-kernel

    in_specs = [
        pl.BlockSpec((wb * n, c), lambda g: (g, 0)),        # x block (WB windows)
        pl.BlockSpec((c, 3 * c), lambda g: (0, 0)),         # fused qkv weight
        pl.BlockSpec((1, 3 * c), lambda g: (0, 0)),         # fused qkv bias
        pl.BlockSpec((c, cp), lambda g: (0, 0)),            # proj weight (padded)
        pl.BlockSpec((1, cp), lambda g: (0, 0)),            # proj bias (padded)
    ]
    args = [x2d, params['wqkv'], params['bqkv'], params['wp'], params['bp']]
    if has_mask:
        mask_blocks = nw // wb        # wb divides nw by construction
        in_specs.append(
            pl.BlockSpec((wb, n, n), lambda g: (g % mask_blocks, 0, 0)))
        args.append(mask.astype(jnp.float32))

    kernel = functools.partial(
        _window_attn_kernel, wb=wb, n=n, num_heads=num_heads,
        head_dim=head_dim, has_mask=has_mask, approx_recip=approx_recip)

    out = pl.pallas_call(
        kernel,
        out_shape=jax.ShapeDtypeStruct((b_ * n, cp), x.dtype),
        grid_spec=pltpu.PrefetchScalarGridSpec(
            num_scalar_prefetch=0,
            grid=grid,
            in_specs=in_specs,
            out_specs=pl.BlockSpec((wb * n, cp), lambda g: (g, 0)),
        ),
        compiler_params=pltpu.CompilerParams(
            dimension_semantics=("parallel",),
            vmem_limit_bytes=vmem_limit_bytes),
    )(*args)

    if cp != c:
        out = out[:, :c]              # drop lane padding
    return out.reshape(b_, n, c)


def window_attention(x, w_qkv, b_qkv, w_proj, b_proj, mask, *, num_heads,
                     qk_scale=None, compute_dtype=jnp.bfloat16):
    """Convenience entry point taking raw PyTorch-layout parameters."""
    params = prepare_window_attention_params(
        w_qkv, b_qkv, w_proj, b_proj, num_heads=num_heads,
        qk_scale=qk_scale, compute_dtype=compute_dtype)
    return window_attention_prepared(x, params, mask)


def window_attention_ref(x, w_qkv, b_qkv, w_proj, b_proj, mask, *, num_heads,
                         qk_scale=None):
    """Pure-JAX f32 reference matching the PyTorch forward exactly."""
    b_, n, c = x.shape
    hd = c // num_heads
    scale = qk_scale if qk_scale is not None else hd ** (-0.5)

    qkv = x @ w_qkv.T + b_qkv                                   # (B_, N, 3C)
    qkv = qkv.reshape(b_, n, 3, num_heads, hd).transpose(2, 0, 3, 1, 4)
    q, k, v = qkv[0], qkv[1], qkv[2]                            # (B_, H, N, hd)
    q = q * scale
    attn = jnp.einsum("bhnd,bhmd->bhnm", q, k)                  # (B_, H, N, N)
    if mask is not None:
        nw = mask.shape[0]
        attn = attn.reshape(b_ // nw, nw, num_heads, n, n) + mask[None, :, None]
        attn = attn.reshape(b_, num_heads, n, n)
    attn = jax.nn.softmax(attn, axis=-1)
    out = jnp.einsum("bhnm,bhmd->bhnd", attn, v)                # (B_, H, N, hd)
    out = out.transpose(0, 2, 1, 3).reshape(b_, n, c)
    return out @ w_proj.T + b_proj


if __name__ == "__main__":
    # Module-consistent small shapes:
    #   dim C = 32, window 8x8 -> N = 64, num_heads = 4, head_dim = 8
    #   nw = 2 windows per image, batch = 2 -> B_ = 4 (grid = 2 steps of WB=2)
    dim = 32
    window = (8, 8)
    num_heads = 4
    n = window[0] * window[1]
    nw = 2
    batch = 2
    b_ = batch * nw

    key = jax.random.PRNGKey(0)
    kx, kwq, kbq, kwp, kbp, km = jax.random.split(key, 6)

    x = jax.random.normal(kx, (b_, n, dim), dtype=jnp.float32)
    w_qkv = 0.05 * jax.random.normal(kwq, (3 * dim, dim), dtype=jnp.float32)
    b_qkv = 0.01 * jax.random.normal(kbq, (3 * dim,), dtype=jnp.float32)
    w_proj = 0.05 * jax.random.normal(kwp, (dim, dim), dtype=jnp.float32)
    b_proj = 0.01 * jax.random.normal(kbp, (dim,), dtype=jnp.float32)

    # (0 / -100) additive mask like shifted-window attention masks.
    mask_bits = jax.random.bernoulli(km, p=0.2, shape=(nw, n, n))
    mask = jnp.where(mask_bits, -100.0, 0.0).astype(jnp.float32)

    ref = window_attention_ref(x, w_qkv, b_qkv, w_proj, b_proj, mask,
                               num_heads=num_heads)

    # Default bf16 matmul-operand path (f32 accumulation / softmax).
    params_bf16 = prepare_window_attention_params(
        w_qkv, b_qkv, w_proj, b_proj, num_heads=num_heads,
        compute_dtype=jnp.bfloat16)
    out = jax.block_until_ready(window_attention_prepared(x, params_bf16, mask))
    assert out.shape == (b_, n, dim)
    err = float(jnp.max(jnp.abs(out - ref)))
    assert err < 5e-3, f"bf16 path max abs err {err}"

    # f32 matmul-operand path (exact softmax reciprocal).
    params_f32 = prepare_window_attention_params(
        w_qkv, b_qkv, w_proj, b_proj, num_heads=num_heads,
        compute_dtype=jnp.float32)
    out_f32 = jax.block_until_ready(
        window_attention_prepared(x, params_f32, mask))
    err_f32 = float(jnp.max(jnp.abs(out_f32 - ref)))
    assert err_f32 < 5e-3, f"f32 path max abs err {err_f32}"

    # mask=None path (no mask operand / no mask DMA at all).
    ref_nm = window_attention_ref(x, w_qkv, b_qkv, w_proj, b_proj, None,
                                  num_heads=num_heads)
    out_nm = jax.block_until_ready(
        window_attention_prepared(x, params_bf16, None))
    err_nm = float(jnp.max(jnp.abs(out_nm - ref_nm)))
    assert err_nm < 5e-3, f"no-mask path max abs err {err_nm}"

    print("KERNEL_OK")
</pallas_src>

<mosaic_0001>
module attributes {stable_mosaic.version = 11 : i64} {
  func.func @_window_attn_kernel(%arg0: i32, %arg1: memref<128x32xf32, #tpu.memory_space<vmem>>, %arg2: memref<32x96xbf16, #tpu.memory_space<vmem>>, %arg3: memref<1x96xf32, #tpu.memory_space<vmem>>, %arg4: memref<32x128xbf16, #tpu.memory_space<vmem>>, %arg5: memref<1x128xf32, #tpu.memory_space<vmem>>, %arg6: memref<2x64x64xf32, #tpu.memory_space<vmem>>, %arg7: memref<128x128xf32, #tpu.memory_space<vmem>>) attributes {dimension_semantics = [#tpu.dimension_semantics<parallel>], iteration_bounds = array<i64: 2>, scalar_prefetch = 0 : i64, scratch_operands = 0 : i64, tpu.core_type = #tpu.core_type<tc>, window_params = [{transform_indices = @transform_0, window_bounds = array<i64: 128, 32>}, {pipeline_mode = #tpu.pipeline_mode<synchronous>, transform_indices = @transform_1, window_bounds = array<i64: 32, 96>}, {pipeline_mode = #tpu.pipeline_mode<synchronous>, transform_indices = @transform_2, window_bounds = array<i64: 1, 96>}, {pipeline_mode = #tpu.pipeline_mode<synchronous>, transform_indices = @transform_3, window_bounds = array<i64: 32, 128>}, {pipeline_mode = #tpu.pipeline_mode<synchronous>, transform_indices = @transform_4, window_bounds = array<i64: 1, 128>}, {transform_indices = @transform_5, window_bounds = array<i64: 2, 64, 64>}, {transform_indices = @transform_6, window_bounds = array<i64: 128, 128>}]} {
    %c0 = arith.constant 0 : index
    %c0_0 = arith.constant 0 : index
    %0 = vector.load %arg1[%c0, %c0_0] : memref<128x32xf32, #tpu.memory_space<vmem>>, vector<128x32xf32>
    %1 = arith.truncf %0 : vector<128x32xf32> to vector<128x32xbf16>
    %c0_1 = arith.constant 0 : index
    %c0_2 = arith.constant 0 : index
    %2 = vector.load %arg2[%c0_1, %c0_2] : memref<32x96xbf16, #tpu.memory_space<vmem>>, vector<32x96xbf16>
    %cst = arith.constant dense<0.000000e+00> : vector<128x96xf32>
    %3 = tpu.matmul %1, %2, %cst {dimension_numbers = #tpu.dot_dimension_numbers<[1], [0], [0], [1], [0, 0, 1, 1], [], []>} : vector<128x32xbf16>, vector<32x96xbf16>, vector<128x96xf32> -> vector<128x96xf32>
    %c0_3 = arith.constant 0 : index
    %c0_4 = arith.constant 0 : index
    %4 = vector.load %arg3[%c0_3, %c0_4] : memref<1x96xf32, #tpu.memory_space<vmem>>, vector<1x96xf32>
    %5 = vector.broadcast %4 : vector<1x96xf32> to vector<128x96xf32>
    %6 = arith.addf %3, %5 : vector<128x96xf32>
    %7 = arith.truncf %6 : vector<128x96xf32> to vector<128x96xbf16>
    %8 = vector.shape_cast %7 : vector<128x96xbf16> to vector<2x64x96xbf16>
    %c0_5 = arith.constant 0 : index
    %c0_6 = arith.constant 0 : index
    %c0_7 = arith.constant 0 : index
    %9 = vector.load %arg6[%c0_5, %c0_6, %c0_7] : memref<2x64x64xf32, #tpu.memory_space<vmem>>, vector<2x64x64xf32>
    %10 = vector.extract_strided_slice %8 {offsets = [0, 0, 0], sizes = [2, 64, 8], strides = [1, 1, 1]} : vector<2x64x96xbf16> to vector<2x64x8xbf16>
    %11 = vector.extract_strided_slice %8 {offsets = [0, 0, 32], sizes = [2, 64, 8], strides = [1, 1, 1]} : vector<2x64x96xbf16> to vector<2x64x8xbf16>
    %12 = vector.extract_strided_slice %8 {offsets = [0, 0, 64], sizes = [2, 64, 8], strides = [1, 1, 1]} : vector<2x64x96xbf16> to vector<2x64x8xbf16>
    "tpu.trace_start"() <{level = 10 : i32, message = "bnd,bmd->bnm"}> : () -> ()
    %cst_8 = arith.constant dense<0.000000e+00> : vector<2x64x64xf32>
    %13 = tpu.matmul %10, %11, %cst_8 {dimension_numbers = #tpu.dot_dimension_numbers<[2], [2], [1], [1], [0, 0, 0, 1, 1, 1], [0], [0]>} : vector<2x64x8xbf16>, vector<2x64x8xbf16>, vector<2x64x64xf32> -> vector<2x64x64xf32>
    "tpu.trace_stop"() : () -> ()
    %14 = arith.addf %13, %9 : vector<2x64x64xf32>
    %cst_9 = arith.constant dense<0xFF800000> : vector<2x64xf32>
    %15 = vector.multi_reduction <maximumf>, %14, %cst_9 [2] : vector<2x64x64xf32> to vector<2x64xf32>
    %16 = vector.shape_cast %15 : vector<2x64xf32> to vector<2x64x1xf32>
    %17 = vector.broadcast %16 : vector<2x64x1xf32> to vector<2x64x64xf32>
    %18 = arith.subf %14, %17 : vector<2x64x64xf32>
    %19 = math.exp %18 : vector<2x64x64xf32>
    %cst_10 = arith.constant dense<0.000000e+00> : vector<2x64xf32>
    %20 = vector.multi_reduction <add>, %19, %cst_10 [2] : vector<2x64x64xf32> to vector<2x64xf32>
    %21 = vector.shape_cast %20 : vector<2x64xf32> to vector<2x64x1xf32>
    %22 = tpu.reciprocal %21 {approx = true} : vector<2x64x1xf32> -> vector<2x64x1xf32>
    %23 = vector.broadcast %22 : vector<2x64x1xf32> to vector<2x64x64xf32>
    %24 = arith.mulf %19, %23 : vector<2x64x64xf32>
    %25 = arith.truncf %24 : vector<2x64x64xf32> to vector<2x64x64xbf16>
    "tpu.trace_start"() <{level = 10 : i32, message = "bnm,bmd->bnd"}> : () -> ()
    %cst_11 = arith.constant dense<0.000000e+00> : vector<2x64x8xf32>
    %26 = tpu.matmul %25, %12, %cst_11 {dimension_numbers = #tpu.dot_dimension_numbers<[2], [1], [1], [2], [0, 0, 0, 1, 1, 2], [0], [0]>} : vector<2x64x64xbf16>, vector<2x64x8xbf16>, vector<2x64x8xf32> -> vector<2x64x8xf32>
    "tpu.trace_stop"() : () -> ()
    %27 = vector.extract_strided_slice %8 {offsets = [0, 0, 8], sizes = [2, 64, 8], strides = [1, 1, 1]} : vector<2x64x96xbf16> to vector<2x64x8xbf16>
    %28 = vector.extract_strided_slice %8 {offsets = [0, 0, 40], sizes = [2, 64, 8], strides = [1, 1, 1]} : vector<2x64x96xbf16> to vector<2x64x8xbf16>
    %29 = vector.extract_strided_slice %8 {offsets = [0, 0, 72], sizes = [2, 64, 8], strides = [1, 1, 1]} : vector<2x64x96xbf16> to vector<2x64x8xbf16>
    "tpu.trace_start"() <{level = 10 : i32, message = "bnd,bmd->bnm"}> : () -> ()
    %cst_12 = arith.constant dense<0.000000e+00> : vector<2x64x64xf32>
    %30 = tpu.matmul %27, %28, %cst_12 {dimension_numbers = #tpu.dot_dimension_numbers<[2], [2], [1], [1], [0, 0, 0, 1, 1, 1], [0], [0]>} : vector<2x64x8xbf16>, vector<2x64x8xbf16>, vector<2x64x64xf32> -> vector<2x64x64xf32>
    "tpu.trace_stop"() : () -> ()
    %31 = arith.addf %30, %9 : vector<2x64x64xf32>
    %cst_13 = arith.constant dense<0xFF800000> : vector<2x64xf32>
    %32 = vector.multi_reduction <maximumf>, %31, %cst_13 [2] : vector<2x64x64xf32> to vector<2x64xf32>
    %33 = vector.shape_cast %32 : vector<2x64xf32> to vector<2x64x1xf32>
    %34 = vector.broadcast %33 : vector<2x64x1xf32> to vector<2x64x64xf32>
    %35 = arith.subf %31, %34 : vector<2x64x64xf32>
    %36 = math.exp %35 : vector<2x64x64xf32>
    %cst_14 = arith.constant dense<0.000000e+00> : vector<2x64xf32>
    %37 = vector.multi_reduction <add>, %36, %cst_14 [2] : vector<2x64x64xf32> to vector<2x64xf32>
    %38 = vector.shape_cast %37 : vector<2x64xf32> to vector<2x64x1xf32>
    %39 = tpu.reciprocal %38 {approx = true} : vector<2x64x1xf32> -> vector<2x64x1xf32>
    %40 = vector.broadcast %39 : vector<2x64x1xf32> to vector<2x64x64xf32>
    %41 = arith.mulf %36, %40 : vector<2x64x64xf32>
    %42 = arith.truncf %41 : vector<2x64x64xf32> to vector<2x64x64xbf16>
    "tpu.trace_start"() <{level = 10 : i32, message = "bnm,bmd->bnd"}> : () -> ()
    %cst_15 = arith.constant dense<0.000000e+00> : vector<2x64x8xf32>
    %43 = tpu.matmul %42, %29, %cst_15 {dimension_numbers = #tpu.dot_dimension_numbers<[2], [1], [1], [2], [0, 0, 0, 1, 1, 2], [0], [0]>} : vector<2x64x64xbf16>, vector<2x64x8xbf16>, vector<2x64x8xf32> -> vector<2x64x8xf32>
    "tpu.trace_stop"() : () -> ()
    %44 = vector.extract_strided_slice %8 {offsets = [0, 0, 16], sizes = [2, 64, 8], strides = [1, 1, 1]} : vector<2x64x96xbf16> to vector<2x64x8xbf16>
    %45 = vector.extract_strided_slice %8 {offsets = [0, 0, 48], sizes = [2, 64, 8], strides = [1, 1, 1]} : vector<2x64x96xbf16> to vector<2x64x8xbf16>
    %46 = vector.extract_strided_slice %8 {offsets = [0, 0, 80], sizes = [2, 64, 8], strides = [1, 1, 1]} : vector<2x64x96xbf16> to vector<2x64x8xbf16>
    "tpu.trace_start"() <{level = 10 : i32, message = "bnd,bmd->bnm"}> : () -> ()
    %cst_16 = arith.constant dense<0.000000e+00> : vector<2x64x64xf32>
    %47 = tpu.matmul %44, %45, %cst_16 {dimension_numbers = #tpu.dot_dimension_numbers<[2], [2], [1], [1], [0, 0, 0, 1, 1, 1], [0], [0]>} : vector<2x64x8xbf16>, vector<2x64x8xbf16>, vector<2x64x64xf32> -> vector<2x64x64xf32>
    "tpu.trace_stop"() : () -> ()
    %48 = arith.addf %47, %9 : vector<2x64x64xf32>
    %cst_17 = arith.constant dense<0xFF800000> : vector<2x64xf32>
    %49 = vector.multi_reduction <maximumf>, %48, %cst_17 [2] : vector<2x64x64xf32> to vector<2x64xf32>
    %50 = vector.shape_cast %49 : vector<2x64xf32> to vector<2x64x1xf32>
    %51 = vector.broadcast %50 : vector<2x64x1xf32> to vector<2x64x64xf32>
    %52 = arith.subf %48, %51 : vector<2x64x64xf32>
    %53 = math.exp %52 : vector<2x64x64xf32>
    %cst_18 = arith.constant dense<0.000000e+00> : vector<2x64xf32>
    %54 = vector.multi_reduction <add>, %53, %cst_18 [2] : vector<2x64x64xf32> to vector<2x64xf32>
    %55 = vector.shape_cast %54 : vector<2x64xf32> to vector<2x64x1xf32>
    %56 = tpu.reciprocal %55 {approx = true} : vector<2x64x1xf32> -> vector<2x64x1xf32>
    %57 = vector.broadcast %56 : vector<2x64x1xf32> to vector<2x64x64xf32>
    %58 = arith.mulf %53, %57 : vector<2x64x64xf32>
    %59 = arith.truncf %58 : vector<2x64x64xf32> to vector<2x64x64xbf16>
    "tpu.trace_start"() <{level = 10 : i32, message = "bnm,bmd->bnd"}> : () -> ()
    %cst_19 = arith.constant dense<0.000000e+00> : vector<2x64x8xf32>
    %60 = tpu.matmul %59, %46, %cst_19 {dimension_numbers = #tpu.dot_dimension_numbers<[2], [1], [1], [2], [0, 0, 0, 1, 1, 2], [0], [0]>} : vector<2x64x64xbf16>, vector<2x64x8xbf16>, vector<2x64x8xf32> -> vector<2x64x8xf32>
    "tpu.trace_stop"() : () -> ()
    %61 = vector.extract_strided_slice %8 {offsets = [0, 0, 24], sizes = [2, 64, 8], strides = [1, 1, 1]} : vector<2x64x96xbf16> to vector<2x64x8xbf16>
    %62 = vector.extract_strided_slice %8 {offsets = [0, 0, 56], sizes = [2, 64, 8], strides = [1, 1, 1]} : vector<2x64x96xbf16> to vector<2x64x8xbf16>
    %63 = vector.extract_strided_slice %8 {offsets = [0, 0, 88], sizes = [2, 64, 8], strides = [1, 1, 1]} : vector<2x64x96xbf16> to vector<2x64x8xbf16>
    "tpu.trace_start"() <{level = 10 : i32, message = "bnd,bmd->bnm"}> : () -> ()
    %cst_20 = arith.constant dense<0.000000e+00> : vector<2x64x64xf32>
    %64 = tpu.matmul %61, %62, %cst_20 {dimension_numbers = #tpu.dot_dimension_numbers<[2], [2], [1], [1], [0, 0, 0, 1, 1, 1], [0], [0]>} : vector<2x64x8xbf16>, vector<2x64x8xbf16>, vector<2x64x64xf32> -> vector<2x64x64xf32>
    "tpu.trace_stop"() : () -> ()
    %65 = arith.addf %64, %9 : vector<2x64x64xf32>
    %cst_21 = arith.constant dense<0xFF800000> : vector<2x64xf32>
    %66 = vector.multi_reduction <maximumf>, %65, %cst_21 [2] : vector<2x64x64xf32> to vector<2x64xf32>
    %67 = vector.shape_cast %66 : vector<2x64xf32> to vector<2x64x1xf32>
    %68 = vector.broadcast %67 : vector<2x64x1xf32> to vector<2x64x64xf32>
    %69 = arith.subf %65, %68 : vector<2x64x64xf32>
    %70 = math.exp %69 : vector<2x64x64xf32>
    %cst_22 = arith.constant dense<0.000000e+00> : vector<2x64xf32>
    %71 = vector.multi_reduction <add>, %70, %cst_22 [2] : vector<2x64x64xf32> to vector<2x64xf32>
    %72 = vector.shape_cast %71 : vector<2x64xf32> to vector<2x64x1xf32>
    %73 = tpu.reciprocal %72 {approx = true} : vector<2x64x1xf32> -> vector<2x64x1xf32>
    %74 = vector.broadcast %73 : vector<2x64x1xf32> to vector<2x64x64xf32>
    %75 = arith.mulf %70, %74 : vector<2x64x64xf32>
    %76 = arith.truncf %75 : vector<2x64x64xf32> to vector<2x64x64xbf16>
    "tpu.trace_start"() <{level = 10 : i32, message = "bnm,bmd->bnd"}> : () -> ()
    %cst_23 = arith.constant dense<0.000000e+00> : vector<2x64x8xf32>
    %77 = tpu.matmul %76, %63, %cst_23 {dimension_numbers = #tpu.dot_dimension_numbers<[2], [1], [1], [2], [0, 0, 0, 1, 1, 2], [0], [0]>} : vector<2x64x64xbf16>, vector<2x64x8xbf16>, vector<2x64x8xf32> -> vector<2x64x8xf32>
    "tpu.trace_stop"() : () -> ()
    %78 = tpu.concatenate %26, %43, %60, %77 in 2 : vector<2x64x8xf32>, vector<2x64x8xf32>, vector<2x64x8xf32>, vector<2x64x8xf32> -> vector<2x64x32xf32>
    %79 = arith.truncf %78 : vector<2x64x32xf32> to vector<2x64x32xbf16>
    %80 = vector.shape_cast %79 : vector<2x64x32xbf16> to vector<128x32xbf16>
    %c0_24 = arith.constant 0 : index
    %c0_25 = arith.constant 0 : index
    %81 = vector.load %arg4[%c0_24, %c0_25] : memref<32x128xbf16, #tpu.memory_space<vmem>>, vector<32x128xbf16>
    %cst_26 = arith.constant dense<0.000000e+00> : vector<128x128xf32>
    %82 = tpu.matmul %80, %81, %cst_26 {dimension_numbers = #tpu.dot_dimension_numbers<[1], [0], [0], [1], [0, 0, 1, 1], [], []>} : vector<128x32xbf16>, vector<32x128xbf16>, vector<128x128xf32> -> vector<128x128xf32>
    %c0_27 = arith.constant 0 : index
    %c0_28 = arith.constant 0 : index
    %83 = vector.load %arg5[%c0_27, %c0_28] : memref<1x128xf32, #tpu.memory_space<vmem>>, vector<1x128xf32>
    %84 = vector.broadcast %83 : vector<1x128xf32> to vector<128x128xf32>
    %85 = arith.addf %82, %84 : vector<128x128xf32>
    %c0_29 = arith.constant 0 : index
    %c0_30 = arith.constant 0 : index
    %86 = vector.load %arg7[%c0_29, %c0_30] : memref<128x128xf32, #tpu.memory_space<vmem>>, vector<128x128xf32>
    tpu.vector_store %arg7[%c0_29, %c0_30], %85 {strides = array<i32>} : memref<128x128xf32, #tpu.memory_space<vmem>>, vector<128x128xf32>,
    return
  }
  func.func @transform_0(%arg0: i32) -> (i32, i32) {
    %c0_i32 = arith.constant 0 : i32
    %c0_i32_0 = arith.constant 0 : i32
    return %arg0, %c0_i32 : i32, i32
  }
  func.func @transform_1(%arg0: i32) -> (i32, i32) {
    %c0_i32 = arith.constant 0 : i32
    %c0_i32_0 = arith.constant 0 : i32
    %c0_i32_1 = arith.constant 0 : i32
    return %c0_i32, %c0_i32_0 : i32, i32
  }
  func.func @transform_2(%arg0: i32) -> (i32, i32) {
    %c0_i32 = arith.constant 0 : i32
    %c0_i32_0 = arith.constant 0 : i32
    %c0_i32_1 = arith.constant 0 : i32
    return %c0_i32, %c0_i32_0 : i32, i32
  }
  func.func @transform_3(%arg0: i32) -> (i32, i32) {
    %c0_i32 = arith.constant 0 : i32
    %c0_i32_0 = arith.constant 0 : i32
    %c0_i32_1 = arith.constant 0 : i32
    return %c0_i32, %c0_i32_0 : i32, i32
  }
  func.func @transform_4(%arg0: i32) -> (i32, i32) {
    %c0_i32 = arith.constant 0 : i32
    %c0_i32_0 = arith.constant 0 : i32
    %c0_i32_1 = arith.constant 0 : i32
    return %c0_i32, %c0_i32_0 : i32, i32
  }
  func.func @transform_5(%arg0: i32) -> (i32, i32, i32) {
    %c1_i32 = arith.constant 1 : i32
    %c0_i32 = arith.constant 0 : i32
    %0 = arith.cmpi eq, %c1_i32, %c0_i32 : i32
    %c1_i32_0 = arith.constant 1 : i32
    %1 = arith.select %0, %c1_i32_0, %c1_i32 : i32
    %2 = arith.remsi %arg0, %1 : i32
    %c0_i32_1 = arith.constant 0 : i32
    %3 = arith.cmpi ne, %2, %c0_i32_1 : i32
    %c0_i32_2 = arith.constant 0 : i32
    %4 = arith.cmpi slt, %2, %c0_i32_2 : i32
    %c0_i32_3 = arith.constant 0 : i32
    %5 = arith.cmpi slt, %1, %c0_i32_3 : i32
    %6 = arith.xori %4, %5 : i1
    %7 = arith.andi %6, %3 : i1
    %8 = arith.addi %2, %1 : i32
    %9 = arith.select %7, %8, %2 : i32
    %c0_i32_4 = arith.constant 0 : i32
    %c0_i32_5 = arith.constant 0 : i32
    %c0_i32_6 = arith.constant 0 : i32
    return %9, %c0_i32_4, %c0_i32_5 : i32, i32, i32
  }
  func.func @transform_6(%arg0: i32) -> (i32, i32) {
    %c0_i32 = arith.constant 0 : i32
    %c0_i32_0 = arith.constant 0 : i32
    return %arg0, %c0_i32 : i32, i32
  }
}

</mosaic_0001>

<bundles_post_ra>
// kernel: tpu_custom_call.1
= control target key start
LH: loop header
LB: loop body
LE: loop exit
PB: predicated region body
PF: predicated region fallthrough
CT: control target
= control target key end

     0   :  { %11 = vsyncpa [#allocation3], 0  ;;  %s6014_s0 = inlined_call_operand.vmem [shape: f32[256,32], index: 0, kind: input, shape index: {}]   ;;  %s6015_s1 = inlined_call_operand.vmem [shape: bf16[32,96], index: 1, kind: input, shape index: {}]   ;;  %s6016_s2 = inlined_call_operand.vmem [shape: f32[1,96], index: 2, kind: input, shape index: {}]   ;;  %s6017_s3 = inlined_call_operand.vmem [shape: bf16[32,128], index: 3, kind: input, shape index: {}]   ;;  %s6018_s4 = inlined_call_operand.vmem [shape: f32[1,128], index: 4, kind: input, shape index: {}]   ;;  %s6019_s5 = inlined_call_operand.vmem [shape: f32[2,64,64], index: 5, kind: input, shape index: {}]   ;;  %s6020_s6 = inlined_call_operand.hbm [shape: f32[256,128], index: 6, kind: output, shape index: {}]  }
   0x1   :  { %13 = vsyncpa [#allocation3 + $0x1], 0  ;;  %s4355_s21 = smov 0   ;;  %s4357_s22 = smov 0  }
   0x2   :  { %s4359_s23 = smov 0   ;;  %s4361_s24 = smov 0  }
   0x3 LB: > { %s4376_s25 = sadd.s32 4294967295, %s4302_s24   ;;  %s3215_s26 = sadd.s32 4294967294, %s4302_s24   ;;  %s4302_s24 = sphi %s4361_s24, %s6116_s24   ;;  %s4298_s23 = sphi %s4359_s23, %s6115_s23   ;;  %s4294_s22 = sphi %s4357_s22, %s6114_s22   ;;  %s4290_s21 = sphi %s4355_s21, %s6113_s21  }
   0x4   : > { %s4380_s27 = sadd.s32 1, %s4302_s24   ;;  %s157_s28 = sadd.s32 1, %s4298_s23 }
   0x5   : > { %s154_s29 = ssub.s32 %s4302_s24, %s4380_s27  ;;  %p167_p0 = scmp.ne.s32.totalorder %s4298_s23, %s4294_s22 }
   0x6   : > { %p155_p1 = scmp.eq.s32.totalorder %s154_s29, 0  ;;  %p168_p2 = scmp.eq.s32.totalorder %s4376_s25, 1 }
   0x7   : > { %p173_p3 = scmp.ne.s32.totalorder %s4294_s22, %s4290_s21  ;;  %p174_p4 = scmp.eq.s32.totalorder %s3215_s26, 1 }
   0x8   : > { %s4391_s30 = scalar_select %p155_p1, %s4298_s23, %s157_s28  }
   0x9   : > { %p4393_p5 = por %p168_p2, %p167_p0  ;;  %p4397_p6 = por %p174_p4, %p173_p3 }
   0xa   : > { %p3218_p7 = scmp.ge.s32.totalorder %s4302_s24, 1  ;;  %p216_p8 = scmp.lt.s32.totalorder %s4302_s24, 3 }
   0xc   : > { %p217_p9 = pnand %p3218_p7, %p216_p8 }
   0xe   : > { %220 = sbr.rel (%p217_p9) target bundleno = 3857 (0xf11), region = 44 }
  0x15   : > { %v3964_v0 = vld [vmem:[%s6015_s1] sm:$0xff]   ;;  %s3220_s11 = sshll.u32 %s4376_s25, 4  ;;  %v3965_v1 = vld [vmem:[%s6015_s1 + $0x8] sm:$0xff]   ;;  %vm301_vm0 = vcmask 261120   ;;  %vm459_vm1 = vcmask 64512   ;;  %s4304_s20 = smov 96  }
  0x16   : > { %p247_p10 = scmp.lt.s32.totalorder %s3220_s11, 31  ;;  %3462 = vmatprep.subr.bf16.mxu0 %v3964_v0  ;;  %v3222_v27 = vld [vmem:[%s6016_s2] ss:$0 sm:$0xff]  ;;  %s4305_s26 = smov 64   ;;  %vm650_vm2 = vcmask 523264   ;;  %vm2937_vm3 = vcmask 130048  }
  0x17   : > { %3463 = vmatpush3.bf16.msra.mxu0 %v3964_v0  ;;  %s4306_s28 = smov 88   ;;  %s4307_s12 = smov 120   ;;  %vm2954_vm4 = vcmask 195584  }
  0x18   : > { %s6118_s11 = smov (!%p247_p10, %s3220_s11), 31  ;;  %3464 = vmatprep.subr.bf16.mxu0 %v3965_v1  ;;  %s4309_s13 = smov 80  }
  0x19   : > { %s3221_s14 = sshll.u32 %s6118_s11, 3  ;;  %s4311_s16 = smov 48  }
  0x1a   : > { %s4413_s17 = scalar_lea.vmem %s6014_s0, %s3221_s14  ;;  %s4310_s14 = smov 112  }
  0x1b   : > { %3465 = vmatpush3.bf16.msra.mxu0 %v3965_v1  ;;  %v254_v2 = vld [vmem:[%s4413_s17] sm:$0xff]  ;;  %v255_v3 = vld [vmem:[%s4413_s17 + $0x8] sm:$0xff]  ;;  %v256_v4 = vld [vmem:[%s4413_s17 + $0x10] sm:$0xff]  ;;  %s4316_s29 = smov 16   ;;  %s3313_s19 = sshll.u32 %s4376_s25, 11 }
  0x1c   : > { %v270_v5 = vpack.c.bf16 %v255_v3, %v254_v2  ;;  %v257_v6 = vld [vmem:[%s4413_s17 + $0x18] sm:$0xff]  ;;  %v258_v7 = vld [vmem:[%s4413_s17 + $0x20] sm:$0xff]  ;;  %v259_v8 = vld [vmem:[%s4413_s17 + $0x28] sm:$0xff]  ;;  %s5963_s9 = scalar_lea.hbm %s6020_s6, %s3313_s19  ;;  %s4318_s11 = smov [#allocation2]  }
  0x1d   : > { %v271_v9 = vpack.c.bf16 %v257_v6, %v256_v4  ;;  %v272_v10 = vpack.c.bf16 %v259_v8, %v258_v7  ;;  %v260_v11 = vld [vmem:[%s4413_s17 + $0x30] sm:$0xff]  ;;  %v261_v12 = vld [vmem:[%s4413_s17 + $0x38] sm:$0xff]  ;;  %v262_v13 = vld [vmem:[%s4413_s17 + $0x40] sm:$0xff] }
  0x1e   : > { %3466 = vmatprep.mubr.msk.bf16.mxu0 %vm301_vm0, %v270_v5  ;;  %v263_v14 = vld [vmem:[%s4413_s17 + $0x48] sm:$0xff]  ;;  %v273_v15 = vpack.c.bf16 %v261_v12, %v260_v11  ;;  %v264_v17 = vld [vmem:[%s4413_s17 + $0x50] sm:$0xff]  ;;  %v265_v18 = vld [vmem:[%s4413_s17 + $0x58] sm:$0xff] }
  0x1f   : > { %3467 = vmatmul.mubr.msk.bf16.vlgmr.msra.gmra.mrb[0].mxu0 %vm301_vm0, %v271_v9  ;;  %v274_v16 = vpack.c.bf16 %v263_v14, %v262_v13  ;;  %v266_v19 = vld [vmem:[%s4413_s17 + $0x60] sm:$0xff]  ;;  %v267_v20 = vld [vmem:[%s4413_s17 + $0x68] sm:$0xff]  ;;  %v275_v21 = vpack.c.bf16 %v265_v18, %v264_v17  ;;  %v268_v23 = vld [vmem:[%s4413_s17 + $0x70] sm:$0xff] }
  0x20   : > { %3470 = vmatprep.mubr.msk.bf16.mxu0 %vm301_vm0, %v272_v10  ;;  %v276_v22 = vpack.c.bf16 %v267_v20, %v266_v19  ;;  %v269_v24 = vld [vmem:[%s4413_s17 + $0x78] sm:$0xff]  ;;  %s4312_s17 = smov 72  }
  0x21   : > { %v277_v25 = vpack.c.bf16 %v269_v24, %v268_v23 }
  0x27   : > { %3471 = vmatmul.mubr.msk.bf16.gmra.mrb[4].mxu0 %vm301_vm0, %v273_v15 }
  0x28   : > { %3474 = vmatprep.mubr.msk.bf16.mxu0 %vm301_vm0, %v274_v16 }
  0x2f   : > { %3475 = vmatmul.mubr.msk.bf16.gmra.mrb[8].mxu0 %vm301_vm0, %v275_v21 }
  0x30   : > { %3478 = vmatprep.mubr.msk.bf16.mxu0 %vm301_vm0, %v276_v22 }
  0x37   : > { %3479 = vmatmul.mubr.msk.bf16.gmra.mrb[12].mxu0 %vm301_vm0, %v277_v25 }
  0xf2   : > { %v3468_v26 = vpop.f32.mrb[0].mxu0 }
  0xf3   : > { %v360_v28 = vpop.f32.mrb[1].mxu0  ;;  %v369_v30 = vadd.f32 %v3468_v26, %v3222_v27 }
  0xf4   : > { %v3469_v29 = vpop.f32.mrb[2].mxu0  ;;  %v361_v33 = vadd.f32 %v3222_v27, %v360_v28 }
  0xf5   : > { %v372_v31 = vadd.f32 %v3469_v29, %v3222_v27  ;;  %v363_v32 = vpop.f32.mrb[3].mxu0 }
  0xf6   : > { %v364_v34 = vadd.f32 %v3222_v27, %v363_v32  ;;  %v4536_v32 = vld [vmem:[%s6019_s5 + $0x10] sm:$0xff] }
  0xf7   : > { %v4442_v35 = vpack.c.bf16 %v372_v31, %v369_v30 }
  0xf8   : > { %v4444_v36 = vpack.c.bf16 %v364_v34, %v361_v33  ;;  %v4541_v34 = vld [vmem:[%s6019_s5] sm:$0xff] }
  0xfa   : > { %451 = vrot.lane.b32.xlu0 %v4444_v36, %s4304_s20  ;;  %3490 = vmatprep.mubr.msk.bf16.mxu1 %vm459_vm1, %v4444_v36  ;;  %v3472_v37 = vpop.f32.mrb[4].mxu0 }
  0xfb   : > { %v385_v38 = vadd.f32 %v3472_v37, %v3222_v27  ;;  %v376_v39 = vpop.f32.mrb[5].mxu0 }
  0xfc   : > { %v377_v40 = vadd.f32 %v3222_v27, %v376_v39  ;;  %v3473_v41 = vpop.f32.mrb[6].mxu0  ;;  %v4549_v39 = vld [vmem:[%s6019_s5 + $0x8] sm:$0xff] }
  0xfd   : > { %v388_v42 = vadd.f32 %v3473_v41, %v3222_v27  ;;  %v379_v43 = vpop.f32.mrb[7].mxu0 }
  0xfe   : > { %453 = vrot.lane.b32.xlu0 %v4442_v35, %s4304_s20  ;;  %v380_v44 = vadd.f32 %v3222_v27, %v379_v43 }
  0xff   : > { %v4452_v45 = vpack.c.bf16 %v388_v42, %v385_v38 }
 0x100   : > { %v4454_v46 = vpack.c.bf16 %v380_v44, %v377_v40  ;;  %v4559_v44 = vld [vmem:[%s6019_s5 + $0x18] sm:$0xff] }
 0x102   : > { %v3476_v47 = vpop.f32.mrb[8].mxu0  ;;  %455 = vrot.lane.b32.xlu1 %v4454_v46, %s4304_s20  ;;  %457 = vrot.lane.b32.xlu0 %v4452_v45, %s4304_s20 }
 0x103   : > { %v401_v48 = vadd.f32 %v3476_v47, %v3222_v27  ;;  %v392_v49 = vpop.f32.mrb[9].mxu0 }
 0x104   : > { %v393_v50 = vadd.f32 %v3222_v27, %v392_v49  ;;  %v3477_v51 = vpop.f32.mrb[10].mxu0  ;;  %v4569_v49 = vld [vmem:[%s6019_s5 + $0x30] sm:$0xff] }
 0x105   : > { %v404_v52 = vadd.f32 %v3477_v51, %v3222_v27  ;;  %v395_v53 = vpop.f32.mrb[11].mxu0 }
 0x106   : > { %v396_v54 = vadd.f32 %v3222_v27, %v395_v53  ;;  %v4579_v53 = vld [vmem:[%s6019_s5 + $0x20] sm:$0xff] }
 0x107   : > { %v4460_v55 = vpack.c.bf16 %v404_v52, %v401_v48 }
 0x108   : > { %v4462_v56 = vpack.c.bf16 %v396_v54, %v393_v50  ;;  %v4584_v54 = vld [vmem:[%s6019_s5 + $0x38] sm:$0xff] }
 0x10a   : > { %v3480_v57 = vpop.f32.mrb[12].mxu0  ;;  %553 = vrot.lane.b32.xlu1 %v4462_v56, %s4304_s20  ;;  %3506 = vmatprep.mubr.msk.bf16.mxu0 %vm459_vm1, %v4462_v56 }
 0x10b   : > { %v417_v58 = vadd.f32 %v3480_v57, %v3222_v27  ;;  %v408_v59 = vpop.f32.mrb[13].mxu0 }
 0x10c   : > { %v409_v60 = vadd.f32 %v3222_v27, %v408_v59  ;;  %v3481_v61 = vpop.f32.mrb[14].mxu0 }
 0x10d   : > { %v420_v62 = vadd.f32 %v3481_v61, %v3222_v27  ;;  %v411_v63 = vpop.f32.mrb[15].mxu0 }
 0x10e   : > { %v412_v0 = vadd.f32 %v3222_v27, %v411_v63  ;;  %555 = vrot.lane.b32.xlu1 %v4460_v55, %s4304_s20 }
 0x10f   : > { %v4470_v1 = vpack.c.bf16 %v420_v62, %v417_v58 }
 0x110   : > { %v4472_v2 = vpack.c.bf16 %v412_v0, %v409_v60 }
 0x112   : > { %559 = vrot.lane.b32.xlu1 %v4470_v1, %s4304_s20  ;;  %557 = vrot.lane.b32.xlu0 %v4472_v2, %s4304_s20  ;;  %s4313_s20 = smov 104  }
 0x116   : > { %835 = vrot.lane.b32.xlu1 %v4444_v36, %s4305_s26  ;;  %837 = vrot.lane.b32.xlu0 %v4442_v35, %s4305_s26 }
 0x11a   : > { %839 = vrot.lane.b32.xlu1 %v4454_v46, %s4305_s26  ;;  %924 = vrot.lane.b32.xlu0 %v4462_v56, %s4305_s26 }
 0x11e   : > { %841 = vrot.lane.b32.xlu1 %v4452_v45, %s4305_s26 }
 0x122   : > { %926 = vrot.lane.b32.xlu1 %v4460_v55, %s4305_s26 }
 0x126   : > { %1021 = vrot.lane.b32.xlu1 %v4444_v36, %s4306_s28 }
 0x12a   : > { %930 = vrot.lane.b32.xlu1 %v4470_v1, %s4305_s26 }
 0x12e   : > { %1023 = vrot.lane.b32.xlu1 %v4442_v35, %s4306_s28 }
 0x132   : > { %1025 = vrot.lane.b32.xlu1 %v4454_v46, %s4306_s28 }
 0x136   : > { %928 = vrot.lane.b32.xlu1 %v4472_v2, %s4305_s26  ;;  %s4315_s26 = smov 8  }
 0x16c   : > { %v452_v3 = vpop.permute.xlu0 %451 }
 0x16d   : > { %3758 = vmatprep.subr.msk.bf16.mxu1 %vm459_vm1, %v452_v3  ;;  %v473_v4 = vsel %vm459_vm1, %v452_v3, 0  ;;  %v4602_v3 = vld [vmem:[%s6019_s5 + $0x28] sm:$0xff] }
 0x16e   : > { %3483 = vmatpush3.bf16.xpose.msra.mxu1 %v473_v4  ;;  %v4607_v4 = vld [vmem:[%s6019_s5 + $0x50] sm:$0xff] }
 0x170   : > { %v454_v5 = vpop.permute.xlu0 %453 }
 0x171   : > { %3759 = vmatprep.subr.msk.bf16.mxu1 %vm459_vm1, %v454_v5  ;;  %v476_v7 = vsel %vm459_vm1, %v454_v5, 0 }
 0x174   : > { %v456_v6 = vpop.permute.xlu1 %455  ;;  %v458_v11 = vpop.permute.xlu0 %457 }
 0x175   : > { %v479_v9 = vsel %vm459_vm1, %v456_v6, 0  ;;  %v482_v15 = vsel %vm459_vm1, %v458_v11, 0 }
 0x176   : > { %3485 = vmatpush3.bf16.xpose.msra.mxu1 %v476_v7 }
 0x177   : > { %3760 = vmatprep.subr.msk.bf16.mxu1 %vm459_vm1, %v456_v6 }
 0x17c   : > { %v554_v8 = vpop.permute.xlu1 %553 }
 0x17d   : > { %3762 = vmatprep.subr.msk.bf16.mxu0 %vm459_vm1, %v554_v8  ;;  %v574_v10 = vsel %vm459_vm1, %v554_v8, 0 }
 0x17e   : > { %3487 = vmatpush3.bf16.xpose.msra.mxu1 %v479_v9  ;;  %3499 = vmatpush3.bf16.xpose.msra.mxu0 %v574_v10  ;;  %v4619_v9 = vld [vmem:[%s6019_s5 + $0x40] sm:$0xff]  ;;  %v4624_v10 = vld [vmem:[%s6019_s5 + $0x58] sm:$0xff] }
 0x17f   : > { %3761 = vmatprep.subr.msk.bf16.mxu1 %vm459_vm1, %v458_v11 }
 0x180   : > { %v556_v12 = vpop.permute.xlu1 %555 }
 0x181   : > { %3763 = vmatprep.subr.msk.bf16.mxu0 %vm459_vm1, %v556_v12  ;;  %v577_v13 = vsel %vm459_vm1, %v556_v12, 0 }
 0x184   : > { %v560_v14 = vpop.permute.xlu1 %559  ;;  %v558_v16 = vpop.permute.xlu0 %557 }
 0x185   : > { %v580_v18 = vsel %vm459_vm1, %v558_v16, 0  ;;  %v583_v21 = vsel %vm459_vm1, %v560_v14, 0 }
 0x186   : > { %3489 = vmatpush3.bf16.xpose.msra.mxu1 %v482_v15  ;;  %3501 = vmatpush3.bf16.xpose.msra.mxu0 %v577_v13 }
 0x187   : > { %3764 = vmatprep.subr.msk.bf16.mxu0 %vm459_vm1, %v558_v16 }
 0x188   : > { %v836_v17 = vpop.permute.xlu1 %835  ;;  %v838_v26 = vpop.permute.xlu0 %837 }
 0x18c   : > { %v840_v19 = vpop.permute.xlu1 %839  ;;  %v4530_v31 = vpop.permute.xlu0 %924 }
 0x18d   : > { %3491 = vmatmul.mubr.msk.bf16.vlgmr.msra.gmra.mrb[0].mxu1 %vm459_vm1, %v4442_v35 }
 0x18e   : > { %3494 = vmatprep.mubr.msk.bf16.mxu1 %vm459_vm1, %v4454_v46  ;;  %3503 = vmatpush3.bf16.xpose.msra.mxu0 %v580_v18 }
 0x18f   : > { %3765 = vmatprep.subr.msk.bf16.mxu0 %vm459_vm1, %v560_v14 }
 0x190   : > { %v842_v20 = vpop.permute.xlu1 %841 }
 0x194   : > { %v4512_v22 = vpop.permute.xlu1 %926 }
 0x195   : > { %3495 = vmatmul.mubr.msk.bf16.gmra.mrb[4].mxu1 %vm459_vm1, %v4452_v45 }
 0x196   : > { %3505 = vmatpush3.bf16.xpose.msra.mxu0 %v583_v21 }
 0x197   : > { %3514 = vmatprep.subr.bf16.mxu0 %v836_v17 }
 0x198   : > { %v1022_v23 = vpop.permute.xlu1 %1021 }
 0x199   : > { %3766 = vmatprep.subr.msk.bf16.mxu1 %vm459_vm1, %v1022_v23  ;;  %v1042_v24 = vsel %vm459_vm1, %v1022_v23, 0 }
 0x19a   : > { %3547 = vmatpush3.bf16.xpose.msra.mxu1 %v1042_v24 }
 0x19c   : > { %v4518_v25 = vpop.permute.xlu1 %930 }
 0x19d   : > { %3507 = vmatmul.mubr.msk.bf16.vlgmr.msra.gmra.mrb[16].mxu0 %vm459_vm1, %v4460_v55 }
 0x19e   : > { %3510 = vmatprep.mubr.msk.bf16.mxu0 %vm459_vm1, %v4472_v2  ;;  %3515 = vmatpush3.bf16.msra.mxu0 %v836_v17 }
 0x19f   : > { %3516 = vmatprep.subr.bf16.mxu0 %v838_v26 }
 0x1a0   : > { %v1024_v27 = vpop.permute.xlu1 %1023 }
 0x1a1   : > { %3767 = vmatprep.subr.msk.bf16.mxu1 %vm459_vm1, %v1024_v27  ;;  %v1045_v28 = vsel %vm459_vm1, %v1024_v27, 0 }
 0x1a2   : > { %3517 = vmatpush3.bf16.msra.mxu0 %v838_v26  ;;  %3549 = vmatpush3.bf16.xpose.msra.mxu1 %v1045_v28 }
 0x1a3   : > { %3518 = vmatprep.subr.bf16.mxu0 %v840_v19 }
 0x1a4   : > { %v1026_v29 = vpop.permute.xlu1 %1025 }
 0x1a5   : > { %3511 = vmatmul.mubr.msk.bf16.gmra.mrb[20].mxu0 %vm459_vm1, %v4470_v1  ;;  %3768 = vmatprep.subr.msk.bf16.mxu1 %vm459_vm1, %v1026_v29  ;;  %v1048_v30 = vsel %vm459_vm1, %v1026_v29, 0 }
 0x1a6   : > { %3519 = vmatpush3.bf16.msra.mxu0 %v840_v19  ;;  %v4642_v19 = vld [vmem:[%s6019_s5 + $0x48] sm:$0xff] }
 0x1a7   : > { %3520 = vmatprep.subr.bf16.mxu0 %v842_v20 }
 0x1aa   : > { %3521 = vmatpush3.bf16.msra.mxu0 %v842_v20  ;;  %3551 = vmatpush3.bf16.xpose.msra.mxu1 %v1048_v30  ;;  %v4660_v30 = vld [vmem:[%s6019_s5 + $0x70] sm:$0xff] }
 0x1ab   : > { %3530 = vmatprep.subr.bf16.mxu0 %v4530_v31 }
 0x260   : > { %v3492_v33 = vpop.f32.mrb[0].mxu1 }
 0x261   : > { %v4544_v37 = vadd.f32 %v3492_v33, %v4536_v32  ;;  %v518_v38 = vpop.f32.mrb[1].mxu1 }
 0x262   : > { %v3493_v40 = vpop.f32.mrb[2].mxu1  ;;  %v4552_v41 = vadd.f32 %v518_v38, %v4541_v34  ;;  %v4668_v38 = vld [vmem:[%s6019_s5 + $0x60] sm:$0xff] }
 0x263   : > { %v521_v42 = vpop.f32.mrb[3].mxu1  ;;  %v657_v43 = vsel %vm650_vm2, %v4544_v37, -inf  ;;  %v4572_v50 = vadd.f32 %v3493_v40, %v4559_v44  ;;  %v4673_v40 = vld [vmem:[%s6019_s5 + $0x78] sm:$0xff] }
 0x264   : > { %v4562_v47 = vadd.f32 %v521_v42, %v4549_v39  ;;  %658 = vmax.xlane.f32.xlu0 %v657_v43  ;;  %v651_v51 = vsel %vm650_vm2, %v4552_v41, -inf }
 0x265   : > { %v660_v0 = vsel %vm650_vm2, %v4572_v50, -inf }
 0x266   : > { %v654_v48 = vsel %vm650_vm2, %v4562_v47, -inf }
 0x267   : > { %655 = vmax.xlane.f32.xlu1 %v654_v48 }
 0x268   : > { %v3496_v52 = vpop.f32.mrb[4].mxu1  ;;  %652 = vmax.xlane.f32.xlu0 %v651_v51  ;;  %v4686_v51 = vld [vmem:[%s6019_s5 + $0x68] sm:$0xff] }
 0x269   : > { %v4587_v57 = vadd.f32 %v3496_v52, %v4569_v49  ;;  %v534_v58 = vpop.f32.mrb[5].mxu1 }
 0x26a   : > { %v3497_v59 = vpop.f32.mrb[6].mxu1  ;;  %v4590_v60 = vadd.f32 %v534_v58, %v4579_v53 }
 0x26b   : > { %v4593_v61 = vadd.f32 %v3497_v59, %v4584_v54  ;;  %v537_v62 = vpop.f32.mrb[7].mxu1  ;;  %v669_v63 = vsel %vm650_vm2, %v4587_v57, -inf }
 0x26c   : > { %670 = vmax.xlane.f32.xlu1 %v669_v63  ;;  %661 = vmax.xlane.f32.xlu0 %v660_v0  ;;  %v4610_v5 = vadd.f32 %v537_v62, %v4602_v3  ;;  %v663_v6 = vsel %vm650_vm2, %v4590_v60, -inf  ;;  %v4699_v63 = vpop.permute.xlu1 %928 }
 0x26d   : > { %v672_v7 = vsel %vm650_vm2, %v4593_v61, -inf }
 0x26e   : > { %v666_v18 = vsel %vm650_vm2, %v4610_v5, -inf }
 0x270   : > { %v3508_v8 = vpop.f32.mrb[16].mxu0  ;;  %664 = vmax.xlane.f32.xlu1 %v663_v6  ;;  %673 = vmax.xlane.f32.xlu0 %v672_v7 }
 0x271   : > { %v4627_v11 = vadd.f32 %v3508_v8, %v4607_v4  ;;  %v619_v12 = vpop.f32.mrb[17].mxu0 }
 0x272   : > { %v3509_v13 = vpop.f32.mrb[18].mxu0  ;;  %v4630_v14 = vadd.f32 %v619_v12, %v4619_v9 }
 0x273   : > { %v4633_v15 = vadd.f32 %v3509_v13, %v4624_v10  ;;  %v622_v16 = vpop.f32.mrb[19].mxu0  ;;  %v681_v17 = vsel %vm650_vm2, %v4627_v11, -inf }
 0x274   : > { %682 = vmax.xlane.f32.xlu1 %v681_v17  ;;  %667 = vmax.xlane.f32.xlu0 %v666_v18  ;;  %v4645_v20 = vadd.f32 %v622_v16, %v4642_v19  ;;  %v675_v21 = vsel %vm650_vm2, %v4630_v14, -inf }
 0x275   : > { %v684_v23 = vsel %vm650_vm2, %v4633_v15, -inf }
 0x276   : > { %v678_v29 = vsel %vm650_vm2, %v4645_v20, -inf }
 0x278   : > { %v3512_v24 = vpop.f32.mrb[20].mxu0  ;;  %676 = vmax.xlane.f32.xlu1 %v675_v21  ;;  %685 = vmax.xlane.f32.xlu0 %v684_v23 }
 0x279   : > { %v635_v26 = vpop.f32.mrb[21].mxu0  ;;  %v4663_v33 = vadd.f32 %v3512_v24, %v4660_v30 }
 0x27a   : > { %v3513_v27 = vpop.f32.mrb[22].mxu0  ;;  %v4676_v42 = vadd.f32 %v635_v26, %v4668_v38 }
 0x27b   : > { %v638_v28 = vpop.f32.mrb[23].mxu0  ;;  %v4679_v43 = vadd.f32 %v3513_v27, %v4673_v40  ;;  %v693_v48 = vsel %vm650_vm2, %v4663_v33, -inf }
 0x27c   : > { %679 = vmax.xlane.f32.xlu0 %v678_v29  ;;  %v4689_v52 = vadd.f32 %v638_v28, %v4686_v51  ;;  %v687_v58 = vsel %vm650_vm2, %v4676_v42, -inf }
 0x27d   : > { %v696_v59 = vsel %vm650_vm2, %v4679_v43, -inf }
 0x27e   : > { %v690_v62 = vsel %vm650_vm2, %v4689_v52, -inf }
 0x289   : > { %1027 = vrot.lane.b32.xlu1 %v4452_v45, %s4306_s28 }
 0x292   : > { %1126 = vrot.lane.b32.xlu0 %v4462_v56, %s4306_s28 }
 0x2ad   : > { %694 = vmax.xlane.f32.xlu1 %v693_v48 }
 0x2b1   : > { %688 = vmax.xlane.f32.xlu1 %v687_v58  ;;  %697 = vmax.xlane.f32.xlu0 %v696_v59 }
 0x2b5   : > { %691 = vmax.xlane.f32.xlu0 %v690_v62 }
 0x2c2   : > { %1128 = vrot.lane.b32.xlu1 %v4460_v55, %s4306_s28 }
 0x2f1   : > { %v659_v0 = vpop.xlane.xlu0 %658 }
 0x2f2   : > { %v701_v6 = vsub.f32 %v4544_v37, %v659_v0 }
 0x2f4   : > { %v719_v7 = vmul.f32 1.442695, %v701_v6  ;;  %v656_v8 = vpop.xlane.xlu1 %655 }
 0x2f5   : > { %v653_v12 = vpop.xlane.xlu0 %652  ;;  %v700_v17 = vsub.f32 %v4562_v47, %v656_v8 }
 0x2f6   : > { %3968 = vpow2.f32 %v719_v7  ;;  %v699_v13 = vsub.f32 %v4552_v41, %v653_v12 }
 0x2f7   : > { %v717_v26 = vmul.f32 1.442695, %v700_v17 }
 0x2f8   : > { %v715_v16 = vmul.f32 1.442695, %v699_v13 }
 0x2f9   : > { %v671_v18 = vpop.xlane.xlu1 %670  ;;  %v662_v21 = vpop.xlane.xlu0 %661 }
 0x2fa   : > { %3970 = vpow2.f32 %v715_v16  ;;  %v702_v23 = vsub.f32 %v4572_v50, %v662_v21  ;;  %v705_v27 = vsub.f32 %v4587_v57, %v671_v18 }
 0x2fc   : > { %v721_v24 = vmul.f32 1.442695, %v702_v23  ;;  %v727_v58 = vmul.f32 1.442695, %v705_v27 }
 0x2fd   : > { %v665_v28 = vpop.xlane.xlu1 %664  ;;  %v674_v37 = vpop.xlane.xlu0 %673 }
 0x2fe   : > { %v703_v29 = vsub.f32 %v4590_v60, %v665_v28  ;;  %3972 = vpow2.f32 %v721_v24  ;;  %v706_v47 = vsub.f32 %v4593_v61, %v674_v37 }
 0x2ff   : > { %3974 = vpow2.f32 %v717_v26 }
 0x300   : > { %v4707_v48 = vpop.eup %3968  ;;  %v723_v41 = vmul.f32 1.442695, %v703_v29  ;;  %v729_v0 = vmul.f32 1.442695, %v706_v47 }
 0x301   : > { %v683_v59 = vpop.xlane.xlu1 %682  ;;  %v753_v50 = vsel %vm650_vm2, %v4707_v48, 0.0  ;;  %v668_v62 = vpop.xlane.xlu0 %667 }
 0x302   : > { %3976 = vpow2.f32 %v723_v41  ;;  %754 = vadd.xlane.f32.xlu1 %v753_v50  ;;  %v704_v60 = vsub.f32 %v4610_v5, %v668_v62  ;;  %v709_v16 = vsub.f32 %v4627_v11, %v683_v59 }
 0x303   : > { %3978 = vpow2.f32 %v727_v58 }
 0x304   : > { %v4712_v57 = vpop.eup %3970  ;;  %3980 = vpow2.f32 %v729_v0  ;;  %v725_v17 = vmul.f32 1.442695, %v704_v60  ;;  %v735_v24 = vmul.f32 1.442695, %v709_v16 }
 0x305   : > { %v677_v6 = vpop.xlane.xlu1 %676  ;;  %v747_v7 = vsel %vm650_vm2, %v4712_v57, 0.0  ;;  %v686_v12 = vpop.xlane.xlu0 %685 }
 0x306   : > { %v707_v8 = vsub.f32 %v4630_v14, %v677_v6  ;;  %748 = vadd.xlane.f32.xlu1 %v747_v7  ;;  %v710_v11 = vsub.f32 %v4633_v15, %v686_v12 }
 0x308   : > { %v731_v61 = vmul.f32 1.442695, %v707_v8  ;;  %v4718_v13 = vpop.eup %3972  ;;  %v737_v29 = vmul.f32 1.442695, %v710_v11 }
 0x309   : > { %v1028_v18 = vpop.permute.xlu1 %1027  ;;  %v756_v5 = vsel %vm650_vm2, %v4718_v13, 0.0  ;;  %v4725_v23 = vpop.eup %3974 }
 0x30a   : > { %3982 = vpow2.f32 %v731_v61  ;;  %3769 = vmatprep.subr.msk.bf16.mxu1 %vm459_vm1, %v1028_v18  ;;  %v1051_v21 = vsel %vm459_vm1, %v1028_v18, 0  ;;  %757 = vadd.xlane.f32.xlu0 %v756_v5  ;;  %v680_v27 = vpop.xlane.xlu0 %679  ;;  %v750_v28 = vsel %vm650_vm2, %v4725_v23, 0.0 }
 0x30b   : > { %3553 = vmatpush3.bf16.xpose.msra.mxu1 %v1051_v21  ;;  %3984 = vpow2.f32 %v725_v17  ;;  %v708_v41 = vsub.f32 %v4645_v20, %v680_v27 }
 0x30c   : > { %v4727_v14 = vpop.eup %3976  ;;  %3986 = vpow2.f32 %v735_v24 }
 0x30d   : > { %v759_v26 = vsel %vm650_vm2, %v4727_v14, 0.0  ;;  %v4734_v37 = vpop.eup %3978  ;;  %3988 = vpow2.f32 %v737_v29  ;;  %v733_v59 = vmul.f32 1.442695, %v708_v41 }
 0x30e   : > { %760 = vadd.xlane.f32.xlu1 %v759_v26  ;;  %751 = vadd.xlane.f32.xlu0 %v750_v28  ;;  %v765_v58 = vsel %vm650_vm2, %v4734_v37, 0.0  ;;  %v4739_v47 = vpop.eup %3980  ;;  %v4765_v16 = vpop.permute.xlu0 %1126 }
 0x30f   : > { %v768_v62 = vsel %vm650_vm2, %v4739_v47, 0.0  ;;  %3990 = vpow2.f32 %v733_v59 }
 0x312   : > { %766 = vadd.xlane.f32.xlu0 %v765_v58 }
 0x314   : > { %v4741_v15 = vpop.eup %3982 }
 0x315   : > { %v771_v50 = vsel %vm650_vm2, %v4741_v15, 0.0  ;;  %v4747_v0 = vpop.eup %3984 }
 0x316   : > { %772 = vadd.xlane.f32.xlu1 %v771_v50  ;;  %769 = vadd.xlane.f32.xlu0 %v768_v62  ;;  %v762_v20 = vsel %vm650_vm2, %v4747_v0, 0.0  ;;  %v4751_v60 = vpop.eup %3986 }
 0x317   : > { %v777_v6 = vsel %vm650_vm2, %v4751_v60, 0.0  ;;  %v4755_v7 = vpop.eup %3988 }
 0x318   : > { %v780_v8 = vsel %vm650_vm2, %v4755_v7, 0.0 }
 0x319   : > { %v4759_v61 = vpop.eup %3990 }
 0x31a   : > { %763 = vadd.xlane.f32.xlu0 %v762_v20  ;;  %v774_v12 = vsel %vm650_vm2, %v4759_v61, 0.0 }
 0x31e   : > { %778 = vadd.xlane.f32.xlu0 %v777_v6 }
 0x322   : > { %781 = vadd.xlane.f32.xlu0 %v780_v8 }
 0x326   : > { %775 = vadd.xlane.f32.xlu0 %v774_v12 }
 0x327   : > { %1015 = vrot.lane.b32.xlu1 %v4442_v35, %s4307_s12 }
 0x33a   : > { %v695_v18 = vpop.xlane.xlu1 %694 }
 0x33b   : > { %v713_v11 = vsub.f32 %v4663_v33, %v695_v18 }
 0x33c   : > { %1013 = vrot.lane.b32.xlu0 %v4444_v36, %s4307_s12 }
 0x33d   : > { %v743_v27 = vmul.f32 1.442695, %v713_v11 }
 0x33e   : > { %v698_v17 = vpop.xlane.xlu0 %697  ;;  %v689_v26 = vpop.xlane.xlu1 %688 }
 0x33f   : > { %v711_v28 = vsub.f32 %v4676_v42, %v689_v26  ;;  %v714_v41 = vsub.f32 %v4679_v43, %v698_v17 }
 0x341   : > { %v739_v29 = vmul.f32 1.442695, %v711_v28  ;;  %v745_v59 = vmul.f32 1.442695, %v714_v41 }
 0x342   : > { %v692_v5 = vpop.xlane.xlu0 %691  ;;  %v4805_v6 = vpop.permute.xlu1 %1128 }
 0x343   : > { %v712_v21 = vsub.f32 %v4689_v52, %v692_v5 }
 0x345   : > { %v741_v24 = vmul.f32 1.442695, %v712_v21 }
 0x347   : > { %3992 = vpow2.f32 %v741_v24 }
 0x348   : > { %3994 = vpow2.f32 %v743_v27 }
 0x349   : > { %3996 = vpow2.f32 %v739_v29 }
 0x34a   : > { %3998 = vpow2.f32 %v745_v59 }
 0x351   : > { %v4773_v58 = vpop.eup %3992 }
 0x352   : > { %v786_v50 = vsel %vm650_vm2, %v4773_v58, 0.0  ;;  %v4777_v52 = vpop.eup %3994 }
 0x353   : > { %787 = vadd.xlane.f32.xlu1 %v786_v50  ;;  %v789_v33 = vsel %vm650_vm2, %v4777_v52, 0.0  ;;  %v4781_v62 = vpop.eup %3996 }
 0x354   : > { %v783_v42 = vsel %vm650_vm2, %v4781_v62, 0.0  ;;  %v4785_v43 = vpop.eup %3998 }
 0x355   : > { %v792_v20 = vsel %vm650_vm2, %v4785_v43, 0.0 }
 0x35b   : > { %790 = vadd.xlane.f32.xlu0 %v789_v33 }
 0x35f   : > { %784 = vadd.xlane.f32.xlu0 %v783_v42 }
 0x363   : > { %793 = vadd.xlane.f32.xlu0 %v792_v20 }
 0x364   : > { %1132 = vrot.lane.b32.xlu1 %v4470_v1, %s4306_s28 }
 0x368   : > { %1120 = vrot.lane.b32.xlu1 %v4460_v55, %s4307_s12 }
 0x36c   : > { %1019 = vrot.lane.b32.xlu1 %v4452_v45, %s4307_s12 }
 0x370   : > { %1124 = vrot.lane.b32.xlu1 %v4470_v1, %s4307_s12 }
 0x379   : > { %1130 = vrot.lane.b32.xlu0 %v4472_v2, %s4306_s28  ;;  %s4308_s28 = smov 56  }
 0x37d   : > { %1118 = vrot.lane.b32.xlu0 %v4462_v56, %s4307_s12 }
 0x381   : > { %1017 = vrot.lane.b32.xlu0 %v4454_v46, %s4307_s12 }
 0x385   : > { %1122 = vrot.lane.b32.xlu0 %v4472_v2, %s4307_s12  ;;  %s4244_s12 = sshll.u32 %s4318_s11, 4  ;;  %s4245_s12 = int_to_ptr.vmem [resolvable:$false] %s4244_s12 }
 0x38f   : > { %v755_v8 = vpop.xlane.xlu1 %754 }
 0x393   : > { %v749_v12 = vpop.xlane.xlu1 %748 }
 0x397   : > { %v758_v17 = vpop.xlane.xlu0 %757 }
 0x398   : > { %4000 = vrcp.f32 %v758_v17 }
 0x399   : > { %4002 = vrcp.f32 %v749_v12 }
 0x39a   : > { %4004 = vrcp.f32 %v755_v8 }
 0x39b   : > { %v752_v18 = vpop.xlane.xlu0 %751  ;;  %v761_v24 = vpop.xlane.xlu1 %760 }
 0x39c   : > { %4006 = vrcp.f32 %v752_v18 }
 0x39f   : > { %v767_v5 = vpop.xlane.xlu0 %766 }
 0x3a2   : > { %v4001_v21 = vpop.eup %4000 }
 0x3a3   : > { %v770_v11 = vpop.xlane.xlu0 %769  ;;  %v4003_v26 = vpop.eup %4002  ;;  %v814_v29 = vmul.f32 %v4001_v21, %v4718_v13 }
 0x3a4   : > { %v4005_v27 = vpop.eup %4004  ;;  %4008 = vrcp.f32 %v770_v11  ;;  %v811_v59 = vmul.f32 %v4003_v26, %v4712_v57  ;;  %v773_v12 = vpop.xlane.xlu1 %772 }
 0x3a5   : > { %4010 = vrcp.f32 %v761_v24  ;;  %v813_v33 = vmul.f32 %v4005_v27, %v4707_v48 }
 0x3a6   : > { %v4007_v28 = vpop.eup %4006  ;;  %4012 = vrcp.f32 %v767_v5 }
 0x3a7   : > { %v764_v41 = vpop.xlane.xlu0 %763  ;;  %v812_v50 = vmul.f32 %v4007_v28, %v4725_v23  ;;  %v828_v20 = vpack.c.bf16 %v814_v29, %v813_v33 }
 0x3a8   : > { %4014 = vrcp.f32 %v764_v41  ;;  %v1016_v27 = vpop.permute.xlu1 %1015 }
 0x3a9   : > { %v827_v42 = vpack.c.bf16 %v812_v50, %v811_v59 }
 0x3ab   : > { %3522 = vmatprep.mubr.msk.bf16.mxu0 %vm650_vm2, %v827_v42  ;;  %v779_v8 = vpop.xlane.xlu0 %778 }
 0x3ac   : > { %3523 = vmatmul.mubr.msk.bf16.vlgmr.msra.gmra.mrb[24].mxu0 %vm650_vm2, %v828_v20 }
 0x3ad   : > { %3531 = vmatpush3.bf16.msra.mxu0 %v4530_v31 }
 0x3ae   : > { %3532 = vmatprep.subr.bf16.mxu0 %v4512_v22  ;;  %v4009_v13 = vpop.eup %4008 }
 0x3af   : > { %v782_v17 = vpop.xlane.xlu0 %781  ;;  %v4011_v57 = vpop.eup %4010  ;;  %v818_v23 = vmul.f32 %v4009_v13, %v4739_v47 }
 0x3b0   : > { %v4013_v18 = vpop.eup %4012  ;;  %4016 = vrcp.f32 %v782_v17  ;;  %v815_v31 = vmul.f32 %v4011_v57, %v4727_v14 }
 0x3b1   : > { %3533 = vmatpush3.bf16.msra.mxu0 %v4512_v22  ;;  %4018 = vrcp.f32 %v773_v12  ;;  %v817_v24 = vmul.f32 %v4013_v18, %v4734_v37 }
 0x3b2   : > { %v4015_v48 = vpop.eup %4014  ;;  %3534 = vmatprep.subr.bf16.mxu0 %v4699_v63  ;;  %4020 = vrcp.f32 %v779_v8 }
 0x3b3   : > { %v776_v5 = vpop.xlane.xlu0 %775  ;;  %v816_v21 = vmul.f32 %v4015_v48, %v4747_v0  ;;  %v830_v22 = vpack.c.bf16 %v818_v23, %v817_v24 }
 0x3b4   : > { %4022 = vrcp.f32 %v776_v5 }
 0x3b5   : > { %3535 = vmatpush3.bf16.msra.mxu0 %v4699_v63  ;;  %v829_v11 = vpack.c.bf16 %v816_v21, %v815_v31 }
 0x3b6   : > { %3536 = vmatprep.subr.bf16.mxu0 %v4518_v25 }
 0x3b7   : > { %3526 = vmatprep.mubr.msk.bf16.mxu0 %vm650_vm2, %v829_v11  ;;  %v1014_v26 = vpop.permute.xlu0 %1013 }
 0x3b8   : > { %3527 = vmatmul.mubr.msk.bf16.gmra.mrb[28].mxu0 %vm650_vm2, %v830_v22  ;;  %3554 = vmatprep.mubr.msk.bf16.mxu1 %vm459_vm1, %v1014_v26 }
 0x3b9   : > { %3537 = vmatpush3.bf16.msra.mxu0 %v4518_v25  ;;  %3555 = vmatmul.mubr.msk.bf16.vlgmr.msra.gmra.mrb[8].mxu1 %vm459_vm1, %v1016_v27  ;;  %v1147_v25 = vsel %vm459_vm1, %v4765_v16, 0 }
 0x3ba   : > { %3770 = vmatprep.subr.msk.bf16.mxu0 %vm459_vm1, %v4765_v16  ;;  %v4017_v63 = vpop.eup %4016 }
 0x3bb   : > { %v4019_v14 = vpop.eup %4018  ;;  %v822_v0 = vmul.f32 %v4017_v63, %v4755_v7 }
 0x3bc   : > { %v4021_v37 = vpop.eup %4020  ;;  %v819_v28 = vmul.f32 %v4019_v14, %v4741_v15  ;;  %v1150_v15 = vsel %vm459_vm1, %v4805_v6, 0 }
 0x3bd   : > { %v821_v41 = vmul.f32 %v4021_v37, %v4751_v60 }
 0x3be   : > { %v4023_v47 = vpop.eup %4022 }
 0x3bf   : > { %v820_v29 = vmul.f32 %v4023_v47, %v4759_v61  ;;  %v832_v50 = vpack.c.bf16 %v822_v0, %v821_v41 }
 0x3c1   : > { %v831_v59 = vpack.c.bf16 %v820_v29, %v819_v28 }
 0x3c3   : > { %3538 = vmatprep.mubr.msk.bf16.mxu0 %vm650_vm2, %v831_v59 }
 0x3c4   : > { %3539 = vmatmul.mubr.msk.bf16.vlgmr.msra.gmra.mrb[32].mxu0 %vm650_vm2, %v832_v50 }
 0x3c5   : > { %3563 = vmatpush3.bf16.xpose.msra.mxu0 %v1147_v25 }
 0x3c6   : > { %3771 = vmatprep.subr.msk.bf16.mxu0 %vm459_vm1, %v4805_v6 }
 0x3cd   : > { %3565 = vmatpush3.bf16.xpose.msra.mxu0 %v1150_v15 }
 0x3e0   : > { %v788_v7 = vpop.xlane.xlu1 %787 }
 0x3e1   : > { %4024 = vrcp.f32 %v788_v7 }
 0x3e4   : > { %v1133_v42 = vpop.permute.xlu1 %1132 }
 0x3e5   : > { %v1156_v11 = vsel %vm459_vm1, %v1133_v42, 0 }
 0x3e8   : > { %v791_v61 = vpop.xlane.xlu0 %790  ;;  %v1121_v12 = vpop.permute.xlu1 %1120 }
 0x3eb   : > { %v4025_v8 = vpop.eup %4024 }
 0x3ec   : > { %v785_v60 = vpop.xlane.xlu0 %784  ;;  %v824_v57 = vmul.f32 %v4025_v8, %v4773_v58  ;;  %v1020_v24 = vpop.permute.xlu1 %1019 }
 0x3ed   : > { %4026 = vrcp.f32 %v785_v60 }
 0x3ee   : > { %4028 = vrcp.f32 %v791_v61 }
 0x3f0   : > { %v794_v33 = vpop.xlane.xlu0 %793 }
 0x3f1   : > { %4030 = vrcp.f32 %v794_v33 }
 0x3f4   : > { %v1131_v20 = vpop.permute.xlu0 %1130 }
 0x3f5   : > { %3772 = vmatprep.subr.msk.bf16.mxu0 %vm459_vm1, %v1131_v20  ;;  %v1153_v16 = vsel %vm459_vm1, %v1131_v20, 0 }
 0x3f6   : > { %3567 = vmatpush3.bf16.xpose.msra.mxu0 %v1153_v16 }
 0x3f7   : > { %v4027_v13 = vpop.eup %4026  ;;  %3773 = vmatprep.subr.msk.bf16.mxu0 %vm459_vm1, %v1133_v42 }
 0x3f8   : > { %v1119_v6 = vpop.permute.xlu0 %1118  ;;  %v823_v17 = vmul.f32 %v4027_v13, %v4781_v62  ;;  %v4029_v18 = vpop.eup %4028 }
 0x3f9   : > { %v825_v31 = vmul.f32 %v4029_v18, %v4777_v52  ;;  %v1125_v52 = vpop.permute.xlu1 %1124 }
 0x3fa   : > { %v833_v48 = vpack.c.bf16 %v824_v57, %v823_v17 }
 0x3fb   : > { %v4031_v23 = vpop.eup %4030 }
 0x3fc   : > { %3542 = vmatprep.mubr.msk.bf16.mxu0 %vm650_vm2, %v833_v48  ;;  %v1018_v5 = vpop.permute.xlu0 %1017  ;;  %v826_v21 = vmul.f32 %v4031_v23, %v4785_v43 }
 0x3fd   : > { %3558 = vmatprep.mubr.msk.bf16.mxu1 %vm459_vm1, %v1018_v5 }
 0x3fe   : > { %3559 = vmatmul.mubr.msk.bf16.gmra.mrb[12].mxu1 %vm459_vm1, %v1020_v24  ;;  %3569 = vmatpush3.bf16.xpose.msra.mxu0 %v1156_v11  ;;  %v834_v62 = vpack.c.bf16 %v826_v21, %v825_v31 }
 0x400   : > { %3543 = vmatmul.mubr.msk.bf16.gmra.mrb[36].mxu0 %vm650_vm2, %v834_v62  ;;  %v1123_v58 = vpop.permute.xlu0 %1122 }
 0x401   : > { %3570 = vmatprep.mubr.msk.bf16.mxu0 %vm459_vm1, %v1119_v6 }
 0x408   : > { %3571 = vmatmul.mubr.msk.bf16.vlgmr.msra.gmra.mrb[40].mxu0 %vm459_vm1, %v1121_v12 }
 0x409   : > { %3574 = vmatprep.mubr.msk.bf16.mxu0 %vm459_vm1, %v1123_v58 }
 0x410   : > { %3575 = vmatmul.mubr.msk.bf16.gmra.mrb[44].mxu0 %vm459_vm1, %v1125_v52 }
 0x47f   : > { %v4858_v43 = vpop.f32.mrb[24].mxu0 }
 0x480   : > { %6037 = vst [vmem:[#allocation5_spill] sm:$0xff] %v4858_v43  ;;  %v4860_v22 = vpop.f32.mrb[25].mxu0 }
 0x481   : > { %6038 = vst [vmem:[#allocation6_spill] sm:$0xff] %v4860_v22  ;;  %v4862_v26 = vpop.f32.mrb[26].mxu0 }
 0x482   : > { %6039 = vst [vmem:[#allocation7_spill] sm:$0xff] %v4862_v26  ;;  %v4864_v27 = vpop.f32.mrb[27].mxu0 }
 0x483   : > { %6040 = vst [vmem:[#allocation8_spill] sm:$0xff] %v4864_v27 }
 0x48b   : > { %v4866_v63 = vpop.f32.mrb[28].mxu0 }
 0x48c   : > { %6041 = vst [vmem:[#allocation9_spill] sm:$0xff] %v4866_v63  ;;  %v4868_v14 = vpop.f32.mrb[29].mxu0  ;;  %v3556_v37 = vpop.f32.mrb[8].mxu1 }
 0x48d   : > { %6042 = vst [vmem:[#allocation10_spill] sm:$0xff] %v4868_v14  ;;  %v4870_v47 = vpop.f32.mrb[30].mxu0  ;;  %v1087_v0 = vpop.f32.mrb[9].mxu1  ;;  %v4878_v50 = vadd.f32 %v3556_v37, %v4536_v32 }
 0x48e   : > { %6043 = vst [vmem:[#allocation11_spill] sm:$0xff] %v4870_v47  ;;  %v4873_v28 = vadd.f32 %v1087_v0, %v4541_v34  ;;  %v4875_v29 = vpop.f32.mrb[31].mxu0  ;;  %v3557_v41 = vpop.f32.mrb[10].mxu1 }
 0x48f   : > { %6044 = vst [vmem:[#allocation12_spill] sm:$0xff] %v4875_v29  ;;  %v1090_v59 = vpop.f32.mrb[11].mxu1  ;;  %v4888_v34 = vadd.f32 %v3557_v41, %v4559_v44  ;;  %v1229_v61 = vsel %vm650_vm2, %v4878_v50, -inf }
 0x490   : > { %v4881_v25 = vadd.f32 %v1090_v59, %v4549_v39  ;;  %v1223_v15 = vsel %vm650_vm2, %v4873_v28, -inf }
 0x491   : > { %1224 = vmax.xlane.f32.xlu0 %v1223_v15  ;;  %v1232_v39 = vsel %vm650_vm2, %v4888_v34, -inf }
 0x492   : > { %v1226_v7 = vsel %vm650_vm2, %v4881_v25, -inf }
 0x493   : > { %1227 = vmax.xlane.f32.xlu1 %v1226_v7 }
 0x495   : > { %1230 = vmax.xlane.f32.xlu0 %v1229_v61 }
 0x497   : > { %v4892_v32 = vpop.f32.mrb[32].mxu0 }
 0x498   : > { %6045 = vst [vmem:[#allocation13_spill] sm:$0xff] %v4892_v32  ;;  %v4894_v60 = vpop.f32.mrb[33].mxu0 }
 0x499   : > { %6046 = vst [vmem:[#allocation14_spill] sm:$0xff] %v4894_v60  ;;  %v4898_v33 = vpop.f32.mrb[34].mxu0  ;;  %1233 = vmax.xlane.f32.xlu0 %v1232_v39 }
 0x49a   : > { %6047 = vst [vmem:[#allocation15_spill] sm:$0xff] %v4898_v33  ;;  %v4900_v42 = vpop.f32.mrb[35].mxu0 }
 0x49b   : > { %6048 = vst [vmem:[#allocation16_spill] sm:$0xff] %v4900_v42 }
 0x4d1   : > { %v3560_v20 = vpop.f32.mrb[12].mxu1 }
 0x4d2   : > { %v1103_v8 = vpop.f32.mrb[13].mxu1  ;;  %v4910_v17 = vadd.f32 %v3560_v20, %v4569_v49 }
 0x4d3   : > { %v4903_v44 = vadd.f32 %v1103_v8, %v4579_v53  ;;  %v4905_v16 = vpop.f32.mrb[36].mxu0  ;;  %v3561_v13 = vpop.f32.mrb[14].mxu1 }
 0x4d4   : > { %6049 = vst [vmem:[#allocation17_spill] sm:$0xff] %v4905_v16  ;;  %v4907_v12 = vpop.f32.mrb[37].mxu0  ;;  %v1106_v6 = vpop.f32.mrb[15].mxu1  ;;  %v4922_v53 = vadd.f32 %v3561_v13, %v4584_v54  ;;  %v1241_v49 = vsel %vm650_vm2, %v4910_v17, -inf }
 0x4d5   : > { %6050 = vst [vmem:[#allocation18_spill] sm:$0xff] %v4907_v12  ;;  %v4913_v57 = vadd.f32 %v1106_v6, %v4602_v3  ;;  %v4915_v18 = vpop.f32.mrb[38].mxu0  ;;  %v1235_v48 = vsel %vm650_vm2, %v4903_v44, -inf }
 0x4d6   : > { %6051 = vst [vmem:[#allocation19_spill] sm:$0xff] %v4915_v18  ;;  %v4919_v23 = vpop.f32.mrb[39].mxu0  ;;  %1236 = vmax.xlane.f32.xlu1 %v1235_v48  ;;  %v1244_v31 = vsel %vm650_vm2, %v4922_v53, -inf }
 0x4d7   : > { %6052 = vst [vmem:[#allocation20_spill] sm:$0xff] %v4919_v23  ;;  %v1238_v5 = vsel %vm650_vm2, %v4913_v57, -inf }
 0x4d8   : > { %1239 = vmax.xlane.f32.xlu0 %v1238_v5 }
 0x4da   : > { %1242 = vmax.xlane.f32.xlu1 %v1241_v49 }
 0x4db   : > { %v4928_v3 = vpop.f32.mrb[40].mxu0 }
 0x4dc   : > { %v4932_v21 = vpop.f32.mrb[41].mxu0  ;;  %1245 = vmax.xlane.f32.xlu0 %v1244_v31 }
 0x4dd   : > { %v4934_v24 = vpop.f32.mrb[42].mxu0 }
 0x4de   : > { %v4936_v54 = vpop.f32.mrb[43].mxu0 }
 0x4e3   : > { %v4938_v11 = vpop.f32.mrb[44].mxu0 }
 0x4e4   : > { %v4940_v62 = vpop.f32.mrb[45].mxu0 }
 0x4e5   : > { %v4942_v58 = vpop.f32.mrb[46].mxu0 }
 0x4e6   : > { %v4944_v52 = vpop.f32.mrb[47].mxu0 }
 0x4eb   : > { %1407 = vrot.lane.b32.xlu1 %v4444_v36, %s4308_s28 }
 0x4ef   : > { %1411 = vrot.lane.b32.xlu1 %v4454_v46, %s4308_s28 }
 0x4f2   : > { %1409 = vrot.lane.b32.xlu0 %v4442_v35, %s4308_s28 }
 0x4f3   : > { %1496 = vrot.lane.b32.xlu1 %v4462_v56, %s4308_s28 }
 0x4f6   : > { %1413 = vrot.lane.b32.xlu0 %v4452_v45, %s4308_s28 }
 0x4f7   : > { %1593 = vrot.lane.b32.xlu1 %v4444_v36, %s4309_s13 }
 0x4fa   : > { %1498 = vrot.lane.b32.xlu0 %v4460_v55, %s4308_s28 }
 0x4fb   : > { %1500 = vrot.lane.b32.xlu1 %v4472_v2, %s4308_s28 }
 0x4fe   : > { %1502 = vrot.lane.b32.xlu0 %v4470_v1, %s4308_s28  ;;  %s4317_s28 = smov 24  }
 0x4ff   : > { %1595 = vrot.lane.b32.xlu1 %v4442_v35, %s4309_s13 }
 0x503   : > { %1597 = vrot.lane.b32.xlu1 %v4454_v46, %s4309_s13 }
 0x51e   : > { %v1225_v37 = vpop.xlane.xlu0 %1224 }
 0x51f   : > { %v1271_v0 = vsub.f32 %v4873_v28, %v1225_v37 }
 0x520   : > { %v1228_v41 = vpop.xlane.xlu1 %1227 }
 0x521   : > { %v1287_v7 = vmul.f32 1.442695, %v1271_v0  ;;  %v1272_v61 = vsub.f32 %v4881_v25, %v1228_v41 }
 0x522   : > { %v1231_v59 = vpop.xlane.xlu0 %1230 }
 0x523   : > { %v1273_v15 = vsub.f32 %v4878_v50, %v1231_v59  ;;  %v1289_v13 = vmul.f32 1.442695, %v1272_v61 }
 0x525   : > { %v1291_v39 = vmul.f32 1.442695, %v1273_v15 }
 0x526   : > { %v1234_v20 = vpop.xlane.xlu0 %1233 }
 0x527   : > { %4032 = vpow2.f32 %v1291_v39  ;;  %v1274_v8 = vsub.f32 %v4888_v34, %v1234_v20 }
 0x528   : > { %4034 = vpow2.f32 %v1287_v7 }
 0x529   : > { %v1293_v6 = vmul.f32 1.442695, %v1274_v8 }
 0x52b   : > { %4036 = vpow2.f32 %v1293_v6 }
 0x52c   : > { %4038 = vpow2.f32 %v1289_v13 }
 0x531   : > { %v4964_v48 = vpop.eup %4032 }
 0x532   : > { %v1325_v28 = vsel %vm650_vm2, %v4964_v48, 0.0  ;;  %v4968_v5 = vpop.eup %4034 }
 0x533   : > { %1326 = vadd.xlane.f32.xlu1 %v1325_v28  ;;  %v1319_v25 = vsel %vm650_vm2, %v4968_v5, 0.0 }
 0x535   : > { %v4970_v50 = vpop.eup %4036 }
 0x536   : > { %v1328_v34 = vsel %vm650_vm2, %v4970_v50, 0.0  ;;  %v4976_v49 = vpop.eup %4038 }
 0x537   : > { %1320 = vadd.xlane.f32.xlu1 %v1319_v25  ;;  %1329 = vadd.xlane.f32.xlu0 %v1328_v34  ;;  %v1322_v31 = vsel %vm650_vm2, %v4976_v49, 0.0 }
 0x53b   : > { %1323 = vadd.xlane.f32.xlu0 %v1322_v31 }
 0x563   : > { %v1237_v37 = vpop.xlane.xlu1 %1236 }
 0x564   : > { %v1275_v41 = vsub.f32 %v4903_v44, %v1237_v37 }
 0x565   : > { %v1240_v0 = vpop.xlane.xlu0 %1239 }
 0x566   : > { %v1276_v59 = vsub.f32 %v4913_v57, %v1240_v0  ;;  %v1295_v20 = vmul.f32 1.442695, %v1275_v41 }
 0x567   : > { %v1243_v15 = vpop.xlane.xlu1 %1242 }
 0x568   : > { %v1297_v7 = vmul.f32 1.442695, %v1276_v59  ;;  %v1277_v61 = vsub.f32 %v4910_v17, %v1243_v15 }
 0x569   : > { %v1246_v39 = vpop.xlane.xlu0 %1245 }
 0x56a   : > { %4040 = vpow2.f32 %v1297_v7  ;;  %v1299_v8 = vmul.f32 1.442695, %v1277_v61  ;;  %v1278_v13 = vsub.f32 %v4922_v53, %v1246_v39  ;;  %v4988_v53 = vadd.f32 %v4934_v24, %v4624_v10 }
 0x56b   : > { %v1408_v6 = vpop.permute.xlu1 %1407  ;;  %v5002_v10 = vadd.f32 %v4936_v54, %v4642_v19  ;;  %v5014_v19 = vadd.f32 %v4942_v58, %v4673_v40  ;;  %v5032_v58 = vadd.f32 %v4932_v21, %v4619_v9  ;;  %v5046_v9 = vadd.f32 %v4940_v62, %v4668_v38 }
 0x56c   : > { %4042 = vpow2.f32 %v1299_v8  ;;  %3578 = vmatprep.subr.bf16.mxu1 %v1408_v6  ;;  %v1301_v25 = vmul.f32 1.442695, %v1278_v13  ;;  %v1256_v24 = vsel %vm650_vm2, %v4988_v53, -inf  ;;  %v5020_v8 = vadd.f32 %v4928_v3, %v4607_v4 }
 0x56d   : > { %3579 = vmatpush3.bf16.msra.mxu1 %v1408_v6  ;;  %v1410_v28 = vpop.permute.xlu0 %1409  ;;  %4044 = vpow2.f32 %v1295_v20  ;;  %v1250_v20 = vsel %vm650_vm2, %v5002_v10, -inf  ;;  %v5026_v6 = vadd.f32 %v4944_v52, %v4686_v51  ;;  %v1268_v40 = vsel %vm650_vm2, %v5014_v19, -inf }
 0x56e   : > { %3580 = vmatprep.subr.bf16.mxu1 %v1410_v28  ;;  %4046 = vpow2.f32 %v1301_v25  ;;  %v1253_v4 = vsel %vm650_vm2, %v5020_v8, -inf  ;;  %v5040_v51 = vadd.f32 %v4938_v11, %v4660_v30  ;;  %v1247_v52 = vsel %vm650_vm2, %v5032_v58, -inf }
 0x56f   : > { %v1412_v44 = vpop.permute.xlu1 %1411  ;;  %v1262_v3 = vsel %vm650_vm2, %v5026_v6, -inf }
 0x570   : > { %v1265_v21 = vsel %vm650_vm2, %v5040_v51, -inf }
 0x571   : > { %3581 = vmatpush3.bf16.msra.mxu1 %v1410_v28  ;;  %v1414_v57 = vpop.permute.xlu0 %1413  ;;  %v1259_v28 = vsel %vm650_vm2, %v5046_v9, -inf }
 0x572   : > { %3582 = vmatprep.subr.bf16.mxu1 %v1412_v44 }
 0x573   : > { %v1497_v17 = vpop.permute.xlu1 %1496 }
 0x574   : > { %v4984_v34 = vpop.eup %4040  ;;  %3594 = vmatprep.subr.bf16.mxu0 %v1497_v17 }
 0x575   : > { %3583 = vmatpush3.bf16.msra.mxu1 %v1412_v44  ;;  %3595 = vmatpush3.bf16.msra.mxu0 %v1497_v17  ;;  %v1499_v31 = vpop.permute.xlu0 %1498  ;;  %v1334_v37 = vsel %vm650_vm2, %v4984_v34, 0.0 }
 0x576   : > { %v4992_v0 = vpop.eup %4042  ;;  %1335 = vadd.xlane.f32.xlu0 %v1334_v37  ;;  %3584 = vmatprep.subr.bf16.mxu1 %v1414_v57 }
 0x577   : > { %3596 = vmatprep.subr.bf16.mxu0 %v1499_v31  ;;  %v4994_v41 = vpop.permute.xlu1 %1593  ;;  %v1337_v59 = vsel %vm650_vm2, %v4992_v0, 0.0  ;;  %v4998_v15 = vpop.eup %4044 }
 0x578   : > { %1338 = vadd.xlane.f32.xlu1 %v1337_v59  ;;  %v1331_v61 = vsel %vm650_vm2, %v4998_v15, 0.0  ;;  %v5010_v39 = vpop.eup %4046 }
 0x579   : > { %3585 = vmatpush3.bf16.msra.mxu1 %v1414_v57  ;;  %3597 = vmatpush3.bf16.msra.mxu0 %v1499_v31  ;;  %v1503_v54 = vpop.permute.xlu0 %1502  ;;  %v1340_v13 = vsel %vm650_vm2, %v5010_v39, 0.0 }
 0x57a   : > { %1257 = vmax.xlane.f32.xlu0 %v1256_v24  ;;  %3774 = vmatprep.subr.msk.bf16.mxu1 %vm459_vm1, %v4994_v41 }
 0x57b   : > { %v1501_v7 = vpop.permute.xlu1 %1500 }
 0x57c   : > { %1332 = vadd.xlane.f32.xlu1 %v1331_v61  ;;  %3598 = vmatprep.subr.bf16.mxu0 %v1501_v7 }
 0x57d   : > { %3599 = vmatpush3.bf16.msra.mxu0 %v1501_v7 }
 0x57e   : > { %1251 = vmax.xlane.f32.xlu0 %v1250_v20  ;;  %3600 = vmatprep.subr.bf16.mxu0 %v1503_v54 }
 0x57f   : > { %v1596_v30 = vpop.permute.xlu1 %1595 }
 0x580   : > { %1341 = vadd.xlane.f32.xlu1 %v1340_v13  ;;  %v1614_v13 = vsel %vm459_vm1, %v4994_v41, 0 }
 0x581   : > { %3601 = vmatpush3.bf16.msra.mxu0 %v1503_v54 }
 0x582   : > { %1269 = vmax.xlane.f32.xlu0 %v1268_v40 }
 0x583   : > { %v1598_v38 = vpop.permute.xlu1 %1597 }
 0x584   : > { %1254 = vmax.xlane.f32.xlu1 %v1253_v4 }
 0x586   : > { %1263 = vmax.xlane.f32.xlu0 %v1262_v3 }
 0x588   : > { %1248 = vmax.xlane.f32.xlu1 %v1247_v52 }
 0x58c   : > { %1266 = vmax.xlane.f32.xlu1 %v1265_v21 }
 0x590   : > { %1260 = vmax.xlane.f32.xlu1 %v1259_v28 }
 0x59c   : > { %1698 = vrot.lane.b32.xlu0 %v4462_v56, %s4309_s13 }
 0x5a1   : > { %1599 = vrot.lane.b32.xlu1 %v4452_v45, %s4309_s13 }
 0x5a5   : > { %1700 = vrot.lane.b32.xlu1 %v4460_v55, %s4309_s13 }
 0x5c0   : > { %v1327_v11 = vpop.xlane.xlu1 %1326 }
 0x5c4   : > { %v1321_v62 = vpop.xlane.xlu1 %1320  ;;  %v1330_v25 = vpop.xlane.xlu0 %1329 }
 0x5c5   : > { %4048 = vrcp.f32 %v1330_v25 }
 0x5c6   : > { %4050 = vrcp.f32 %v1321_v62 }
 0x5c7   : > { %4052 = vrcp.f32 %v1327_v11 }
 0x5c8   : > { %v1324_v44 = vpop.xlane.xlu0 %1323 }
 0x5c9   : > { %4054 = vrcp.f32 %v1324_v44 }
 0x5cf   : > { %v4049_v57 = vpop.eup %4048 }
 0x5d0   : > { %v4051_v17 = vpop.eup %4050  ;;  %v1386_v59 = vmul.f32 %v4049_v57, %v4970_v50  ;;  %v1617_v50 = vsel %vm459_vm1, %v1596_v30, 0 }
 0x5d1   : > { %v4053_v31 = vpop.eup %4052  ;;  %v1383_v24 = vmul.f32 %v4051_v17, %v4968_v5  ;;  %v1620_v5 = vsel %vm459_vm1, %v1598_v38, 0 }
 0x5d2   : > { %v1385_v61 = vmul.f32 %v4053_v31, %v4964_v48 }
 0x5d3   : > { %v4055_v37 = vpop.eup %4054 }
 0x5d4   : > { %v1384_v7 = vmul.f32 %v4055_v37, %v4976_v49  ;;  %v1400_v20 = vpack.c.bf16 %v1386_v59, %v1385_v61 }
 0x5d6   : > { %v1399_v54 = vpack.c.bf16 %v1384_v7, %v1383_v24 }
 0x5d8   : > { %3586 = vmatprep.mubr.msk.bf16.mxu1 %vm650_vm2, %v1399_v54 }
 0x5d9   : > { %3587 = vmatmul.mubr.msk.bf16.vlgmr.msra.gmra.mrb[16].mxu1 %vm650_vm2, %v1400_v20 }
 0x5da   : > { %3611 = vmatpush3.bf16.xpose.msra.mxu1 %v1614_v13 }
 0x5db   : > { %3775 = vmatprep.subr.msk.bf16.mxu1 %vm459_vm1, %v1596_v30 }
 0x5e2   : > { %3613 = vmatpush3.bf16.xpose.msra.mxu1 %v1617_v50 }
 0x5e3   : > { %3776 = vmatprep.subr.msk.bf16.mxu1 %vm459_vm1, %v1598_v38 }
 0x5ea   : > { %3615 = vmatpush3.bf16.xpose.msra.mxu1 %v1620_v5 }
 0x603   : > { %v1336_v48 = vpop.xlane.xlu0 %1335 }
 0x604   : > { %4056 = vrcp.f32 %v1336_v48 }
 0x605   : > { %v1339_v49 = vpop.xlane.xlu1 %1338 }
 0x607   : > { %v1258_v40 = vpop.xlane.xlu0 %1257 }
 0x608   : > { %v1282_v21 = vsub.f32 %v4988_v53, %v1258_v40 }
 0x609   : > { %v1333_v4 = vpop.xlane.xlu1 %1332 }
 0x60a   : > { %4058 = vrcp.f32 %v1333_v4  ;;  %v1309_v25 = vmul.f32 1.442695, %v1282_v21 }
 0x60b   : > { %v1252_v3 = vpop.xlane.xlu0 %1251  ;;  %4060 = vrcp.f32 %v1339_v49 }
 0x60c   : > { %v1280_v44 = vsub.f32 %v5002_v10, %v1252_v3 }
 0x60d   : > { %v1342_v41 = vpop.xlane.xlu1 %1341 }
 0x60e   : > { %4062 = vrcp.f32 %v1342_v41  ;;  %v4057_v30 = vpop.eup %4056 }
 0x60f   : > { %v1270_v52 = vpop.xlane.xlu0 %1269  ;;  %v1388_v37 = vmul.f32 %v4057_v30, %v4984_v34 }
 0x611   : > { %v1255_v28 = vpop.xlane.xlu1 %1254 }
 0x612   : > { %v1281_v11 = vsub.f32 %v5020_v8, %v1255_v28  ;;  %v1305_v8 = vmul.f32 1.442695, %v1280_v44 }
 0x613   : > { %v1264_v62 = vpop.xlane.xlu0 %1263 }
 0x614   : > { %v4059_v38 = vpop.eup %4058  ;;  %v1307_v57 = vmul.f32 1.442695, %v1281_v11  ;;  %v1284_v41 = vsub.f32 %v5026_v6, %v1264_v62 }
 0x615   : > { %v1249_v17 = vpop.xlane.xlu1 %1248  ;;  %v1387_v31 = vmul.f32 %v4059_v38, %v4998_v15  ;;  %v4061_v59 = vpop.eup %4060  ;;  %v1286_v38 = vsub.f32 %v5014_v19, %v1270_v52 }
 0x616   : > { %4064 = vpow2.f32 %v1307_v57  ;;  %v1279_v24 = vsub.f32 %v5032_v58, %v1249_v17  ;;  %v1389_v15 = vmul.f32 %v4061_v59, %v4992_v0  ;;  %v1313_v21 = vmul.f32 1.442695, %v1284_v41 }
 0x617   : > { %v5076_v53 = vpop.permute.xlu0 %1698  ;;  %v1401_v7 = vpack.c.bf16 %v1388_v37, %v1387_v31  ;;  %4066 = vpow2.f32 %v1309_v25  ;;  %v1317_v44 = vmul.f32 1.442695, %v1286_v38 }
 0x618   : > { %v4063_v61 = vpop.eup %4062  ;;  %v1303_v54 = vmul.f32 1.442695, %v1279_v24  ;;  %3778 = vmatprep.subr.msk.bf16.mxu0 %vm459_vm1, %v5076_v53 }
 0x619   : > { %v1267_v10 = vpop.xlane.xlu1 %1266  ;;  %3590 = vmatprep.mubr.msk.bf16.mxu1 %vm650_vm2, %v1401_v7  ;;  %v1390_v34 = vmul.f32 %v4063_v61, %v5010_v39 }
 0x61a   : > { %4068 = vpow2.f32 %v1303_v54  ;;  %v1285_v28 = vsub.f32 %v5040_v51, %v1267_v10 }
 0x61b   : > { %v1402_v20 = vpack.c.bf16 %v1390_v34, %v1389_v15  ;;  %4070 = vpow2.f32 %v1305_v8 }
 0x61c   : > { %4072 = vpow2.f32 %v1313_v21  ;;  %v1315_v30 = vmul.f32 1.442695, %v1285_v28 }
 0x61d   : > { %v1261_v58 = vpop.xlane.xlu1 %1260  ;;  %3591 = vmatmul.mubr.msk.bf16.gmra.mrb[20].mxu1 %vm650_vm2, %v1402_v20 }
 0x61e   : > { %v1283_v11 = vsub.f32 %v5046_v9, %v1261_v58  ;;  %4074 = vpow2.f32 %v1315_v30 }
 0x620   : > { %v5084_v13 = vpop.eup %4064  ;;  %v1311_v25 = vmul.f32 1.442695, %v1283_v11  ;;  %v1719_v11 = vsel %vm459_vm1, %v5076_v53, 0 }
 0x621   : > { %v1600_v50 = vpop.permute.xlu1 %1599  ;;  %v1349_v5 = vsel %vm650_vm2, %v5084_v13, 0.0  ;;  %v5088_v48 = vpop.eup %4066 }
 0x622   : > { %1350 = vadd.xlane.f32.xlu0 %v1349_v5  ;;  %3777 = vmatprep.subr.msk.bf16.mxu1 %vm459_vm1, %v1600_v50  ;;  %v1623_v0 = vsel %vm459_vm1, %v1600_v50, 0  ;;  %v1352_v40 = vsel %vm650_vm2, %v5088_v48, 0.0  ;;  %4076 = vpow2.f32 %v1311_v25 }
 0x623   : > { %3617 = vmatpush3.bf16.xpose.msra.mxu1 %v1623_v0  ;;  %4078 = vpow2.f32 %v1317_v44 }
 0x624   : > { %v5092_v39 = vpop.eup %4068 }
 0x625   : > { %v1343_v49 = vsel %vm650_vm2, %v5092_v39, 0.0  ;;  %v5098_v4 = vpop.eup %4070  ;;  %v1701_v59 = vpop.permute.xlu1 %1700 }
 0x626   : > { %1344 = vadd.xlane.f32.xlu1 %v1343_v49  ;;  %1353 = vadd.xlane.f32.xlu0 %v1352_v40  ;;  %v1346_v3 = vsel %vm650_vm2, %v5098_v4, 0.0  ;;  %v5110_v57 = vpop.eup %4072 }
 0x627   : > { %v1358_v17 = vsel %vm650_vm2, %v5110_v57, 0.0 }
 0x628   : > { %v5114_v6 = vpop.eup %4074 }
 0x629   : > { %v1361_v51 = vsel %vm650_vm2, %v5114_v6, 0.0 }
 0x62a   : > { %1347 = vadd.xlane.f32.xlu0 %v1346_v3 }
 0x62c   : > { %v5118_v62 = vpop.eup %4076 }
 0x62d   : > { %v1355_v19 = vsel %vm650_vm2, %v5118_v62, 0.0  ;;  %v5122_v9 = vpop.eup %4078 }
 0x62e   : > { %v1364_v52 = vsel %vm650_vm2, %v5122_v9, 0.0 }
 0x637   : > { %1587 = vrot.lane.b32.xlu1 %v4442_v35, %s4310_s14 }
 0x640   : > { %1585 = vrot.lane.b32.xlu0 %v4444_v36, %s4310_s14 }
 0x65b   : > { %1359 = vadd.xlane.f32.xlu1 %v1358_v17 }
 0x65f   : > { %1362 = vadd.xlane.f32.xlu0 %v1361_v51 }
 0x663   : > { %1356 = vadd.xlane.f32.xlu0 %v1355_v19 }
 0x667   : > { %1365 = vadd.xlane.f32.xlu0 %v1364_v52 }
 0x66c   : > { %1704 = vrot.lane.b32.xlu1 %v4470_v1, %s4309_s13 }
 0x670   : > { %1692 = vrot.lane.b32.xlu1 %v4460_v55, %s4310_s14 }
 0x674   : > { %1591 = vrot.lane.b32.xlu1 %v4452_v45, %s4310_s14 }
 0x678   : > { %1696 = vrot.lane.b32.xlu1 %v4470_v1, %s4310_s14 }
 0x67d   : > { %1702 = vrot.lane.b32.xlu0 %v4472_v2, %s4309_s13  ;;  %s243_s13 = sand.u32 1, %s4294_s22  }
 0x67e   : > { %s5972_s25 = scalar_lea.sflag [#allocation3], %s243_s13 }
 0x681   : > { %1690 = vrot.lane.b32.xlu0 %v4462_v56, %s4310_s14 }
 0x685   : > { %1589 = vrot.lane.b32.xlu0 %v4454_v46, %s4310_s14 }
 0x689   : > { %1694 = vrot.lane.b32.xlu0 %v4472_v2, %s4310_s14  ;;  %s3219_s14 = sshll.u32 %s243_s13, 7 }
 0x68a   : > { %s5943_s18 = scalar_lea.vmem [#allocation2], %s3219_s14 }
 0x6ac   : > { %v5142_v31 = vpop.f32.mrb[16].mxu1 }
 0x6ad   : > { %v5144_v37 = vpop.f32.mrb[17].mxu1 }
 0x6ae   : > { %v5146_v24 = vpop.f32.mrb[18].mxu1 }
 0x6af   : > { %v5150_v61 = vpop.f32.mrb[19].mxu1  ;;  %v1351_v8 = vpop.xlane.xlu0 %1350 }
 0x6b3   : > { %v1345_v10 = vpop.xlane.xlu1 %1344  ;;  %v1354_v15 = vpop.xlane.xlu0 %1353 }
 0x6b4   : > { %4080 = vrcp.f32 %v1354_v15 }
 0x6b5   : > { %4082 = vrcp.f32 %v1345_v10 }
 0x6b6   : > { %4084 = vrcp.f32 %v1351_v8 }
 0x6b7   : > { %v1348_v34 = vpop.xlane.xlu0 %1347  ;;  %v1588_v58 = vpop.permute.xlu1 %1587 }
 0x6b8   : > { %4086 = vrcp.f32 %v1348_v34 }
 0x6bb   : > { %v1586_v20 = vpop.permute.xlu0 %1585 }
 0x6bc   : > { %3618 = vmatprep.mubr.msk.bf16.mxu1 %vm459_vm1, %v1586_v20 }
 0x6bd   : > { %3619 = vmatmul.mubr.msk.bf16.vlgmr.msra.gmra.mrb[24].mxu1 %vm459_vm1, %v1588_v58 }
 0x6be   : > { %v4081_v50 = vpop.eup %4080 }
 0x6bf   : > { %v4083_v5 = vpop.eup %4082  ;;  %v1394_v40 = vmul.f32 %v4081_v50, %v5088_v48  ;;  %v1722_v48 = vsel %vm459_vm1, %v1701_v59, 0 }
 0x6c0   : > { %v4085_v0 = vpop.eup %4084  ;;  %v1391_v3 = vmul.f32 %v4083_v5, %v5092_v39 }
 0x6c1   : > { %v1393_v21 = vmul.f32 %v4085_v0, %v5084_v13 }
 0x6c2   : > { %v4087_v49 = vpop.eup %4086 }
 0x6c3   : > { %v1392_v41 = vmul.f32 %v4087_v49, %v5098_v4  ;;  %v1404_v30 = vpack.c.bf16 %v1394_v40, %v1393_v21 }
 0x6c5   : > { %v1403_v28 = vpack.c.bf16 %v1392_v41, %v1391_v3 }
 0x6c7   : > { %3602 = vmatprep.mubr.msk.bf16.mxu0 %vm650_vm2, %v1403_v28 }
 0x6c8   : > { %3603 = vmatmul.mubr.msk.bf16.vlgmr.msra.gmra.mrb[48].mxu0 %vm650_vm2, %v1404_v30 }
 0x6c9   : > { %3627 = vmatpush3.bf16.xpose.msra.mxu0 %v1719_v11  ;;  %v5197_v11 = vld [vmem:[%s6019_s5] sm:$0xff] }
 0x6ca   : > { %3779 = vmatprep.subr.msk.bf16.mxu0 %vm459_vm1, %v1701_v59 }
 0x6d1   : > { %3629 = vmatpush3.bf16.xpose.msra.mxu0 %v1722_v48 }
 0x6e8   : > { %v1360_v38 = vpop.xlane.xlu1 %1359 }
 0x6e9   : > { %4088 = vrcp.f32 %v1360_v38 }
 0x6ec   : > { %v1363_v39 = vpop.xlane.xlu0 %1362  ;;  %v1705_v52 = vpop.permute.xlu1 %1704 }
 0x6ed   : > { %v1728_v28 = vsel %vm459_vm1, %v1705_v52, 0 }
 0x6f0   : > { %v5166_v4 = vpop.f32.mrb[20].mxu1  ;;  %v1357_v13 = vpop.xlane.xlu0 %1356 }
 0x6f1   : > { %6053 = vst [vmem:[#allocation21_spill] sm:$0xff] %v5166_v4  ;;  %v5168_v25 = vpop.f32.mrb[21].mxu1  ;;  %4090 = vrcp.f32 %v1357_v13  ;;  %v1693_v34 = vpop.permute.xlu1 %1692  ;;  %v5205_v13 = vld [vmem:[%s6019_s5 + $0x10] sm:$0xff] }
 0x6f2   : > { %6054 = vst [vmem:[#allocation22_spill] sm:$0xff] %v5168_v25  ;;  %v5170_v44 = vpop.f32.mrb[22].mxu1  ;;  %4092 = vrcp.f32 %v1363_v39 }
 0x6f3   : > { %6055 = vst [vmem:[#allocation23_spill] sm:$0xff] %v5170_v44  ;;  %v5174_v17 = vpop.f32.mrb[23].mxu1  ;;  %v4089_v8 = vpop.eup %4088 }
 0x6f4   : > { %6056 = vst [vmem:[#allocation24_spill] sm:$0xff] %v5174_v17  ;;  %v1366_v19 = vpop.xlane.xlu0 %1365  ;;  %v1396_v50 = vmul.f32 %v4089_v8, %v5110_v57 }
 0x6f5   : > { %4094 = vrcp.f32 %v1366_v19  ;;  %v1592_v21 = vpop.permute.xlu1 %1591 }
 0x6f8   : > { %v1703_v59 = vpop.permute.xlu0 %1702 }
 0x6f9   : > { %3780 = vmatprep.subr.msk.bf16.mxu0 %vm459_vm1, %v1703_v59  ;;  %v1725_v10 = vsel %vm459_vm1, %v1703_v59, 0 }
 0x6fa   : > { %3631 = vmatpush3.bf16.xpose.msra.mxu0 %v1725_v10 }
 0x6fb   : > { %v4091_v15 = vpop.eup %4090  ;;  %3781 = vmatprep.subr.msk.bf16.mxu0 %vm459_vm1, %v1705_v52  ;;  %v5213_v52 = vld [vmem:[%s6019_s5 + $0x8] sm:$0xff] }
 0x6fc   : > { %v1691_v20 = vpop.permute.xlu0 %1690  ;;  %v1395_v58 = vmul.f32 %v4091_v15, %v5118_v62  ;;  %v4093_v5 = vpop.eup %4092  ;;  %v5225_v15 = vld [vmem:[%s6019_s5 + $0x18] sm:$0xff] }
 0x6fd   : > { %v1397_v3 = vmul.f32 %v4093_v5, %v5114_v6  ;;  %v1697_v6 = vpop.permute.xlu1 %1696 }
 0x6fe   : > { %v1405_v0 = vpack.c.bf16 %v1396_v50, %v1395_v58 }
 0x6ff   : > { %v4095_v49 = vpop.eup %4094 }
 0x700   : > { %3606 = vmatprep.mubr.msk.bf16.mxu0 %vm650_vm2, %v1405_v0  ;;  %v1590_v40 = vpop.permute.xlu0 %1589  ;;  %v1398_v41 = vmul.f32 %v4095_v49, %v5122_v9 }
 0x701   : > { %3622 = vmatprep.mubr.msk.bf16.mxu1 %vm459_vm1, %v1590_v40 }
 0x702   : > { %3623 = vmatmul.mubr.msk.bf16.gmra.mrb[28].mxu1 %vm459_vm1, %v1592_v21  ;;  %3633 = vmatpush3.bf16.xpose.msra.mxu0 %v1728_v28  ;;  %v1406_v62 = vpack.c.bf16 %v1398_v41, %v1397_v3  ;;  %v5249_v28 = vld [vmem:[%s6019_s5 + $0x20] sm:$0xff] }
 0x704   : > { %3607 = vmatmul.mubr.msk.bf16.gmra.mrb[52].mxu0 %vm650_vm2, %v1406_v62  ;;  %v1695_v57 = vpop.permute.xlu0 %1694 }
 0x705   : > { %3634 = vmatprep.mubr.msk.bf16.mxu0 %vm459_vm1, %v1691_v20 }
 0x70c   : > { %3635 = vmatmul.mubr.msk.bf16.vlgmr.msra.gmra.mrb[56].mxu0 %vm459_vm1, %v1693_v34 }
 0x70d   : > { %3638 = vmatprep.mubr.msk.bf16.mxu0 %vm459_vm1, %v1695_v57 }
 0x714   : > { %3639 = vmatmul.mubr.msk.bf16.gmra.mrb[60].mxu0 %vm459_vm1, %v1697_v6 }
 0x790   : > { %v3620_v9 = vpop.f32.mrb[24].mxu1 }
 0x791   : > { %v1659_v30 = vpop.f32.mrb[25].mxu1  ;;  %v5208_v19 = vadd.f32 %v5205_v13, %v3620_v9 }
 0x792   : > { %v5200_v48 = vadd.f32 %v5197_v11, %v1659_v30  ;;  %v3621_v39 = vpop.f32.mrb[26].mxu1 }
 0x793   : > { %v1662_v38 = vpop.f32.mrb[27].mxu1  ;;  %v5228_v34 = vadd.f32 %v5225_v15, %v3621_v39  ;;  %v1801_v20 = vsel %vm650_vm2, %v5208_v19, -inf  ;;  %v5261_v39 = vld [vmem:[%s6019_s5 + $0x30] sm:$0xff] }
 0x794   : > { %v5216_v59 = vadd.f32 %v5213_v52, %v1662_v38  ;;  %v1795_v8 = vsel %vm650_vm2, %v5200_v48, -inf }
 0x795   : > { %1796 = vmax.xlane.f32.xlu0 %v1795_v8  ;;  %v1804_v5 = vsel %vm650_vm2, %v5228_v34, -inf  ;;  %v5269_v8 = vld [vmem:[%s6019_s5 + $0x28] sm:$0xff] }
 0x796   : > { %v1798_v10 = vsel %vm650_vm2, %v5216_v59, -inf }
 0x797   : > { %1799 = vmax.xlane.f32.xlu1 %v1798_v10 }
 0x799   : > { %1802 = vmax.xlane.f32.xlu0 %v1801_v20 }
 0x79b   : > { %v5232_v58 = vpop.f32.mrb[48].mxu0 }
 0x79c   : > { %6057 = vst [vmem:[#allocation25_spill] sm:$0xff] %v5232_v58  ;;  %v5234_v50 = vpop.f32.mrb[49].mxu0 }
 0x79d   : > { %6058 = vst [vmem:[#allocation26_spill] sm:$0xff] %v5234_v50  ;;  %v5238_v0 = vpop.f32.mrb[50].mxu0  ;;  %1805 = vmax.xlane.f32.xlu0 %v1804_v5 }
 0x79e   : > { %6059 = vst [vmem:[#allocation27_spill] sm:$0xff] %v5238_v0  ;;  %v5242_v40 = vpop.f32.mrb[51].mxu0 }
 0x79f   : > { %6060 = vst [vmem:[#allocation28_spill] sm:$0xff] %v5242_v40 }
 0x7d5   : > { %v3624_v41 = vpop.f32.mrb[28].mxu1 }
 0x7d6   : > { %v1675_v21 = vpop.f32.mrb[29].mxu1  ;;  %v5264_v38 = vadd.f32 %v5261_v39, %v3624_v41  ;;  %v5285_v41 = vld [vmem:[%s6019_s5 + $0x38] sm:$0xff] }
 0x7d7   : > { %v5252_v62 = vadd.f32 %v5249_v28, %v1675_v21  ;;  %v5254_v57 = vpop.f32.mrb[52].mxu0  ;;  %v3625_v6 = vpop.f32.mrb[30].mxu1 }
 0x7d8   : > { %6061 = vst [vmem:[#allocation29_spill] sm:$0xff] %v5254_v57  ;;  %v5256_v9 = vpop.f32.mrb[53].mxu0  ;;  %v1678_v30 = vpop.f32.mrb[31].mxu1  ;;  %v5288_v49 = vadd.f32 %v5285_v41, %v3625_v6  ;;  %v1813_v21 = vsel %vm650_vm2, %v5264_v38, -inf }
 0x7d9   : > { %6062 = vst [vmem:[#allocation30_spill] sm:$0xff] %v5256_v9  ;;  %v5272_v10 = vadd.f32 %v5269_v8, %v1678_v30  ;;  %v5274_v20 = vpop.f32.mrb[54].mxu0  ;;  %v1807_v5 = vsel %vm650_vm2, %v5252_v62, -inf }
 0x7da   : > { %6063 = vst [vmem:[#allocation31_spill] sm:$0xff] %v5274_v20  ;;  %v5280_v3 = vpop.f32.mrb[55].mxu0  ;;  %1808 = vmax.xlane.f32.xlu1 %v1807_v5  ;;  %v1816_v53 = vsel %vm650_vm2, %v5288_v49, -inf }
 0x7db   : > { %6064 = vst [vmem:[#allocation32_spill] sm:$0xff] %v5280_v3  ;;  %v1810_v51 = vsel %vm650_vm2, %v5272_v10, -inf }
 0x7dc   : > { %1811 = vmax.xlane.f32.xlu0 %v1810_v51 }
 0x7de   : > { %1814 = vmax.xlane.f32.xlu1 %v1813_v21 }
 0x7df   : > { %v5296_v5 = vpop.f32.mrb[56].mxu0 }
 0x7e0   : > { %v5300_v7 = vpop.f32.mrb[57].mxu0  ;;  %1817 = vmax.xlane.f32.xlu0 %v1816_v53 }
 0x7e1   : > { %v5302_v6 = vpop.f32.mrb[58].mxu0 }
 0x7e2   : > { %v5304_v54 = vpop.f32.mrb[59].mxu0 }
 0x7e7   : > { %v5306_v30 = vpop.f32.mrb[60].mxu0 }
 0x7e8   : > { %v5308_v12 = vpop.f32.mrb[61].mxu0 }
 0x7e9   : > { %v5310_v51 = vpop.f32.mrb[62].mxu0 }
 0x7ea   : > { %v5312_v23 = vpop.f32.mrb[63].mxu0 }
 0x7ef   : > { %1979 = vrot.lane.b32.xlu1 %v4444_v36, %s4311_s16 }
 0x7f3   : > { %1983 = vrot.lane.b32.xlu1 %v4454_v46, %s4311_s16 }
 0x7f6   : > { %1981 = vrot.lane.b32.xlu0 %v4442_v35, %s4311_s16 }
 0x7f7   : > { %2068 = vrot.lane.b32.xlu1 %v4462_v56, %s4311_s16 }
 0x7fa   : > { %1985 = vrot.lane.b32.xlu0 %v4452_v45, %s4311_s16 }
 0x7fb   : > { %2165 = vrot.lane.b32.xlu1 %v4444_v36, %s4312_s17 }
 0x7fe   : > { %2070 = vrot.lane.b32.xlu0 %v4460_v55, %s4311_s16 }
 0x7ff   : > { %2072 = vrot.lane.b32.xlu1 %v4472_v2, %s4311_s16 }
 0x802   : > { %2074 = vrot.lane.b32.xlu0 %v4470_v1, %s4311_s16 }
 0x803   : > { %2167 = vrot.lane.b32.xlu1 %v4442_v35, %s4312_s17 }
 0x806   : > { %2270 = vrot.lane.b32.xlu0 %v4462_v56, %s4312_s17 }
 0x807   : > { %2169 = vrot.lane.b32.xlu1 %v4454_v46, %s4312_s17 }
 0x80b   : > { %2171 = vrot.lane.b32.xlu1 %v4452_v45, %s4312_s17 }
 0x80f   : > { %2272 = vrot.lane.b32.xlu1 %v4460_v55, %s4312_s17 }
 0x822   : > { %v1797_v53 = vpop.xlane.xlu0 %1796 }
 0x823   : > { %v1843_v21 = vsub.f32 %v5200_v48, %v1797_v53 }
 0x824   : > { %v1800_v16 = vpop.xlane.xlu1 %1799 }
 0x825   : > { %v1859_v42 = vmul.f32 1.442695, %v1843_v21  ;;  %v1844_v32 = vsub.f32 %v5216_v59, %v1800_v16 }
 0x826   : > { %v1803_v18 = vpop.xlane.xlu0 %1802 }
 0x827   : > { %v1845_v60 = vsub.f32 %v5208_v19, %v1803_v18  ;;  %v1861_v63 = vmul.f32 1.442695, %v1844_v32 }
 0x829   : > { %v1863_v33 = vmul.f32 1.442695, %v1845_v60 }
 0x82a   : > { %v1806_v14 = vpop.xlane.xlu0 %1805 }
 0x82b   : > { %4096 = vpow2.f32 %v1863_v33  ;;  %v1846_v29 = vsub.f32 %v5228_v34, %v1806_v14 }
 0x82c   : > { %4098 = vpow2.f32 %v1859_v42 }
 0x82d   : > { %v1865_v47 = vmul.f32 1.442695, %v1846_v29 }
 0x82f   : > { %4100 = vpow2.f32 %v1865_v47 }
 0x830   : > { %4102 = vpow2.f32 %v1861_v63 }
 0x835   : > { %v5338_v43 = vpop.eup %4096 }
 0x836   : > { %v1897_v48 = vsel %vm650_vm2, %v5338_v43, 0.0  ;;  %v5342_v53 = vpop.eup %4098 }
 0x837   : > { %1898 = vadd.xlane.f32.xlu1 %v1897_v48  ;;  %v1891_v60 = vsel %vm650_vm2, %v5342_v53, 0.0 }
 0x839   : > { %v5344_v18 = vpop.eup %4100 }
 0x83a   : > { %v1900_v14 = vsel %vm650_vm2, %v5344_v18, 0.0  ;;  %v5350_v32 = vpop.eup %4102 }
 0x83b   : > { %1892 = vadd.xlane.f32.xlu1 %v1891_v60  ;;  %1901 = vadd.xlane.f32.xlu0 %v1900_v14  ;;  %v1894_v63 = vsel %vm650_vm2, %v5350_v32, 0.0 }
 0x83f   : > { %1895 = vadd.xlane.f32.xlu0 %v1894_v63 }
 0x867   : > { %v1809_v47 = vpop.xlane.xlu1 %1808 }
 0x868   : > { %v1847_v33 = vsub.f32 %v5252_v62, %v1809_v47 }
 0x869   : > { %v1812_v29 = vpop.xlane.xlu0 %1811 }
 0x86a   : > { %v1848_v42 = vsub.f32 %v5272_v10, %v1812_v29  ;;  %v1867_v21 = vmul.f32 1.442695, %v1847_v33 }
 0x86b   : > { %v1815_v16 = vpop.xlane.xlu1 %1814 }
 0x86c   : > { %v1869_v19 = vmul.f32 1.442695, %v1848_v42  ;;  %v1849_v59 = vsub.f32 %v5264_v38, %v1815_v16 }
 0x86d   : > { %v1818_v34 = vpop.xlane.xlu0 %1817 }
 0x86e   : > { %4104 = vpow2.f32 %v1869_v19  ;;  %v1871_v48 = vmul.f32 1.442695, %v1849_v59  ;;  %v1850_v60 = vsub.f32 %v5288_v49, %v1818_v34  ;;  %v5363_v49 = vld [vmem:[%s6019_s5 + $0x58] sm:$0xff] }
 0x86f   : > { %v1980_v14 = vpop.permute.xlu1 %1979  ;;  %v5367_v29 = vadd.f32 %v5363_v49, %v5302_v6  ;;  %v5382_v6 = vld [vmem:[%s6019_s5 + $0x48] sm:$0xff] }
 0x870   : > { %4106 = vpow2.f32 %v1871_v48  ;;  %3642 = vmatprep.subr.bf16.mxu1 %v1980_v14  ;;  %v1873_v26 = vmul.f32 1.442695, %v1850_v60  ;;  %v5386_v34 = vadd.f32 %v5382_v6, %v5304_v54  ;;  %v5399_v54 = vld [vmem:[%s6019_s5 + $0x78] sm:$0xff] }
 0x871   : > { %3643 = vmatpush3.bf16.msra.mxu1 %v1980_v14  ;;  %v1982_v63 = vpop.permute.xlu0 %1981  ;;  %4108 = vpow2.f32 %v1867_v21  ;;  %v1828_v21 = vsel %vm650_vm2, %v5367_v29, -inf }
 0x872   : > { %3644 = vmatprep.subr.bf16.mxu1 %v1982_v63  ;;  %4110 = vpow2.f32 %v1873_v26 }
 0x873   : > { %v1984_v62 = vpop.permute.xlu1 %1983 }
 0x875   : > { %3645 = vmatpush3.bf16.msra.mxu1 %v1982_v63  ;;  %v1986_v10 = vpop.permute.xlu0 %1985 }
 0x876   : > { %3646 = vmatprep.subr.bf16.mxu1 %v1984_v62 }
 0x877   : > { %v2069_v38 = vpop.permute.xlu1 %2068 }
 0x878   : > { %v5358_v47 = vpop.eup %4104  ;;  %3658 = vmatprep.subr.bf16.mxu0 %v2069_v38 }
 0x879   : > { %3647 = vmatpush3.bf16.msra.mxu1 %v1984_v62  ;;  %3659 = vmatpush3.bf16.msra.mxu0 %v2069_v38  ;;  %v2071_v33 = vpop.permute.xlu0 %2070  ;;  %v1906_v26 = vsel %vm650_vm2, %v5358_v47, 0.0  ;;  %v5403_v62 = vadd.f32 %v5399_v54, %v5310_v51  ;;  %v5410_v38 = vld [vmem:[%s6019_s5 + $0x50] sm:$0xff]  ;;  %v5421_v51 = vld [vmem:[%s6019_s5 + $0x68] sm:$0xff] }
 0x87a   : > { %v5371_v42 = vpop.eup %4106  ;;  %1907 = vadd.xlane.f32.xlu0 %v1906_v26  ;;  %3648 = vmatprep.subr.bf16.mxu1 %v1986_v10 }
 0x87b   : > { %3660 = vmatprep.subr.bf16.mxu0 %v2071_v33  ;;  %v5373_v16 = vpop.permute.xlu1 %2165  ;;  %v1909_v19 = vsel %vm650_vm2, %v5371_v42, 0.0  ;;  %v5377_v59 = vpop.eup %4108 }
 0x87c   : > { %1910 = vadd.xlane.f32.xlu1 %v1909_v19  ;;  %v1903_v14 = vsel %vm650_vm2, %v5377_v59, 0.0  ;;  %v5394_v63 = vpop.eup %4110  ;;  %v5425_v19 = vadd.f32 %v5421_v51, %v5312_v23 }
 0x87d   : > { %3649 = vmatpush3.bf16.msra.mxu1 %v1986_v10  ;;  %3661 = vmatpush3.bf16.msra.mxu0 %v2071_v33  ;;  %v2075_v48 = vpop.permute.xlu0 %2074  ;;  %v1822_v10 = vsel %vm650_vm2, %v5386_v34, -inf  ;;  %v5414_v33 = vadd.f32 %v5410_v38, %v5296_v5  ;;  %v1912_v26 = vsel %vm650_vm2, %v5394_v63, 0.0  ;;  %v1840_v5 = vsel %vm650_vm2, %v5403_v62, -inf }
 0x87e   : > { %1829 = vmax.xlane.f32.xlu0 %v1828_v21  ;;  %3782 = vmatprep.subr.msk.bf16.mxu1 %vm459_vm1, %v5373_v16 }
 0x87f   : > { %v2073_v60 = vpop.permute.xlu1 %2072  ;;  %v1825_v23 = vsel %vm650_vm2, %v5414_v33, -inf }
 0x880   : > { %1904 = vadd.xlane.f32.xlu1 %v1903_v14  ;;  %3662 = vmatprep.subr.bf16.mxu0 %v2073_v60 }
 0x881   : > { %3663 = vmatpush3.bf16.msra.mxu0 %v2073_v60  ;;  %v5427_v21 = vpop.permute.xlu0 %2270  ;;  %v5436_v60 = vld [vmem:[%s6019_s5 + $0x40] sm:$0xff] }
 0x882   : > { %1823 = vmax.xlane.f32.xlu0 %v1822_v10  ;;  %3664 = vmatprep.subr.bf16.mxu0 %v2075_v48  ;;  %v5440_v14 = vadd.f32 %v5436_v60, %v5300_v7  ;;  %v5449_v10 = vld [vmem:[%s6019_s5 + $0x70] sm:$0xff] }
 0x884   : > { %1913 = vadd.xlane.f32.xlu1 %v1912_v26  ;;  %v5453_v26 = vadd.f32 %v5449_v10, %v5306_v30  ;;  %v1819_v7 = vsel %vm650_vm2, %v5440_v14, -inf }
 0x885   : > { %3665 = vmatpush3.bf16.msra.mxu0 %v2075_v48  ;;  %v1834_v48 = vsel %vm650_vm2, %v5425_v19, -inf }
 0x886   : > { %1841 = vmax.xlane.f32.xlu0 %v1840_v5  ;;  %3786 = vmatprep.subr.msk.bf16.mxu0 %vm459_vm1, %v5427_v21  ;;  %v5460_v5 = vld [vmem:[%s6019_s5 + $0x60] sm:$0xff] }
 0x888   : > { %1826 = vmax.xlane.f32.xlu1 %v1825_v23  ;;  %v5464_v23 = vadd.f32 %v5460_v5, %v5308_v12 }
 0x88a   : > { %1835 = vmax.xlane.f32.xlu0 %v1834_v48  ;;  %v1837_v48 = vsel %vm650_vm2, %v5453_v26, -inf  ;;  %v1831_v30 = vsel %vm650_vm2, %v5464_v23, -inf }
 0x88c   : > { %1820 = vmax.xlane.f32.xlu1 %v1819_v7  ;;  %v2168_v7 = vpop.permute.xlu1 %2167 }
 0x890   : > { %1838 = vmax.xlane.f32.xlu1 %v1837_v48  ;;  %v2170_v22 = vpop.permute.xlu1 %2169 }
 0x894   : > { %1832 = vmax.xlane.f32.xlu1 %v1831_v30  ;;  %v2172_v27 = vpop.permute.xlu1 %2171 }
 0x898   : > { %v5474_v12 = vpop.permute.xlu1 %2272 }
 0x8a0   : > { %2157 = vrot.lane.b32.xlu0 %v4444_v36, %s4313_s20 }
 0x8a5   : > { %2159 = vrot.lane.b32.xlu1 %v4442_v35, %s4313_s20 }
 0x8c4   : > { %v1899_v9 = vpop.xlane.xlu1 %1898 }
 0x8c8   : > { %v1893_v3 = vpop.xlane.xlu1 %1892  ;;  %v1902_v57 = vpop.xlane.xlu0 %1901 }
 0x8c9   : > { %4112 = vrcp.f32 %v1902_v57  ;;  %v2189_v57 = vsel %vm459_vm1, %v2168_v7, 0 }
 0x8ca   : > { %4114 = vrcp.f32 %v1893_v3  ;;  %v2186_v3 = vsel %vm459_vm1, %v5373_v16, 0 }
 0x8cb   : > { %4116 = vrcp.f32 %v1899_v9 }
 0x8cc   : > { %v1896_v48 = vpop.xlane.xlu0 %1895 }
 0x8cd   : > { %4118 = vrcp.f32 %v1896_v48 }
 0x8d3   : > { %v4113_v30 = vpop.eup %4112 }
 0x8d4   : > { %v4115_v20 = vpop.eup %4114  ;;  %v1958_v58 = vmul.f32 %v4113_v30, %v5344_v18 }
 0x8d5   : > { %v4117_v50 = vpop.eup %4116  ;;  %v1955_v0 = vmul.f32 %v4115_v20, %v5342_v53 }
 0x8d6   : > { %v1957_v17 = vmul.f32 %v4117_v50, %v5338_v43  ;;  %v2195_v43 = vsel %vm459_vm1, %v2172_v27, 0 }
 0x8d7   : > { %v4119_v40 = vpop.eup %4118 }
 0x8d8   : > { %v1956_v25 = vmul.f32 %v4119_v40, %v5350_v32  ;;  %v1972_v44 = vpack.c.bf16 %v1958_v58, %v1957_v17  ;;  %v2192_v40 = vsel %vm459_vm1, %v2170_v22, 0 }
 0x8da   : > { %v1971_v4 = vpack.c.bf16 %v1956_v25, %v1955_v0 }
 0x8dc   : > { %3650 = vmatprep.mubr.msk.bf16.mxu1 %vm650_vm2, %v1971_v4 }
 0x8dd   : > { %3651 = vmatmul.mubr.msk.bf16.vlgmr.msra.gmra.mrb[32].mxu1 %vm650_vm2, %v1972_v44 }
 0x8de   : > { %3675 = vmatpush3.bf16.xpose.msra.mxu1 %v2186_v3 }
 0x8df   : > { %3783 = vmatprep.subr.msk.bf16.mxu1 %vm459_vm1, %v2168_v7 }
 0x8e6   : > { %3677 = vmatpush3.bf16.xpose.msra.mxu1 %v2189_v57 }
 0x8e7   : > { %3784 = vmatprep.subr.msk.bf16.mxu1 %vm459_vm1, %v2170_v22 }
 0x8ee   : > { %3679 = vmatpush3.bf16.xpose.msra.mxu1 %v2192_v40 }
 0x8ef   : > { %3785 = vmatprep.subr.msk.bf16.mxu1 %vm459_vm1, %v2172_v27 }
 0x8f6   : > { %3681 = vmatpush3.bf16.xpose.msra.mxu1 %v2195_v43 }
 0x907   : > { %v1908_v4 = vpop.xlane.xlu0 %1907 }
 0x908   : > { %4120 = vrcp.f32 %v1908_v4 }
 0x909   : > { %v1911_v25 = vpop.xlane.xlu1 %1910 }
 0x90b   : > { %v1830_v44 = vpop.xlane.xlu0 %1829 }
 0x90c   : > { %v1854_v0 = vsub.f32 %v5367_v29, %v1830_v44 }
 0x90d   : > { %v1905_v17 = vpop.xlane.xlu1 %1904 }
 0x90e   : > { %4122 = vrcp.f32 %v1905_v17  ;;  %v1881_v27 = vmul.f32 1.442695, %v1854_v0 }
 0x90f   : > { %v1824_v58 = vpop.xlane.xlu0 %1823  ;;  %4124 = vrcp.f32 %v1911_v25 }
 0x910   : > { %v1852_v32 = vsub.f32 %v5386_v34, %v1824_v58 }
 0x911   : > { %v1914_v50 = vpop.xlane.xlu1 %1913 }
 0x912   : > { %4126 = vrcp.f32 %v1914_v50  ;;  %v4121_v20 = vpop.eup %4120  ;;  %v1877_v4 = vmul.f32 1.442695, %v1852_v32 }
 0x913   : > { %v1842_v9 = vpop.xlane.xlu0 %1841  ;;  %v1960_v30 = vmul.f32 %v4121_v20, %v5358_v47 }
 0x915   : > { %v1827_v22 = vpop.xlane.xlu1 %1826 }
 0x916   : > { %v1853_v53 = vsub.f32 %v5414_v33, %v1827_v22 }
 0x917   : > { %v1836_v29 = vpop.xlane.xlu0 %1835 }
 0x918   : > { %v4123_v18 = vpop.eup %4122  ;;  %v1879_v16 = vmul.f32 1.442695, %v1853_v53 }
 0x919   : > { %v1821_v7 = vpop.xlane.xlu1 %1820  ;;  %v1959_v48 = vmul.f32 %v4123_v18, %v5377_v59  ;;  %v4125_v3 = vpop.eup %4124  ;;  %v1856_v18 = vsub.f32 %v5425_v19, %v1836_v29 }
 0x91a   : > { %4128 = vpow2.f32 %v1879_v16  ;;  %v1851_v57 = vsub.f32 %v5440_v14, %v1821_v7  ;;  %v1961_v34 = vmul.f32 %v4125_v3, %v5371_v42 }
 0x91b   : > { %v1973_v40 = vpack.c.bf16 %v1960_v30, %v1959_v48  ;;  %4130 = vpow2.f32 %v1881_v27  ;;  %v2158_v47 = vpop.permute.xlu0 %2157  ;;  %v1885_v27 = vmul.f32 1.442695, %v1856_v18  ;;  %v1858_v48 = vsub.f32 %v5403_v62, %v1842_v9 }
 0x91c   : > { %v4127_v43 = vpop.eup %4126  ;;  %v1875_v33 = vmul.f32 1.442695, %v1851_v57 }
 0x91d   : > { %v1839_v25 = vpop.xlane.xlu1 %1838  ;;  %3654 = vmatprep.mubr.msk.bf16.mxu1 %vm650_vm2, %v1973_v40  ;;  %v1962_v44 = vmul.f32 %v4127_v43, %v5394_v63  ;;  %v1889_v3 = vmul.f32 1.442695, %v1858_v48 }
 0x91e   : > { %4132 = vpow2.f32 %v1875_v33  ;;  %v1857_v32 = vsub.f32 %v5453_v26, %v1839_v25 }
 0x91f   : > { %v1974_v59 = vpack.c.bf16 %v1962_v44, %v1961_v34  ;;  %4134 = vpow2.f32 %v1877_v4 }
 0x920   : > { %4136 = vpow2.f32 %v1885_v27  ;;  %v1887_v16 = vmul.f32 1.442695, %v1857_v32 }
 0x921   : > { %3655 = vmatmul.mubr.msk.bf16.gmra.mrb[36].mxu1 %vm650_vm2, %v1974_v59  ;;  %v1833_v14 = vpop.xlane.xlu1 %1832 }
 0x922   : > { %3682 = vmatprep.mubr.msk.bf16.mxu1 %vm459_vm1, %v2158_v47  ;;  %v1855_v7 = vsub.f32 %v5464_v23, %v1833_v14  ;;  %4138 = vpow2.f32 %v1887_v16 }
 0x924   : > { %v5501_v17 = vpop.eup %4128  ;;  %v1883_v30 = vmul.f32 1.442695, %v1855_v7 }
 0x925   : > { %v1921_v58 = vsel %vm650_vm2, %v5501_v17, 0.0  ;;  %v5505_v50 = vpop.eup %4130  ;;  %v2160_v63 = vpop.permute.xlu1 %2159 }
 0x926   : > { %1922 = vadd.xlane.f32.xlu0 %v1921_v58  ;;  %v1924_v22 = vsel %vm650_vm2, %v5505_v50, 0.0  ;;  %4140 = vpow2.f32 %v1883_v30 }
 0x927   : > { %4142 = vpow2.f32 %v1889_v3  ;;  %v2291_v3 = vsel %vm459_vm1, %v5427_v21, 0 }
 0x928   : > { %v5507_v42 = vpop.eup %4132 }
 0x929   : > { %3683 = vmatmul.mubr.msk.bf16.vlgmr.msra.gmra.mrb[40].mxu1 %vm459_vm1, %v2160_v63  ;;  %v1915_v0 = vsel %vm650_vm2, %v5507_v42, 0.0  ;;  %v4135_v20 = vpop.eup %4134 }
 0x92a   : > { %1916 = vadd.xlane.f32.xlu1 %v1915_v0  ;;  %1925 = vadd.xlane.f32.xlu0 %v1924_v22  ;;  %v1918_v53 = vsel %vm650_vm2, %v4135_v20, 0.0  ;;  %v5523_v57 = vpop.eup %4136 }
 0x92b   : > { %v1930_v40 = vsel %vm650_vm2, %v5523_v57, 0.0 }
 0x92c   : > { %v5527_v19 = vpop.eup %4138 }
 0x92d   : > { %v1933_v26 = vsel %vm650_vm2, %v5527_v19, 0.0 }
 0x92e   : > { %1919 = vadd.xlane.f32.xlu0 %v1918_v53 }
 0x930   : > { %v5531_v29 = vpop.eup %4140 }
 0x931   : > { %v1927_v62 = vsel %vm650_vm2, %v5531_v29, 0.0  ;;  %v5535_v23 = vpop.eup %4142 }
 0x932   : > { %v1936_v9 = vsel %vm650_vm2, %v5535_v23, 0.0 }
 0x93b   : > { %2161 = vrot.lane.b32.xlu1 %v4454_v46, %s4313_s20 }
 0x944   : > { %2274 = vrot.lane.b32.xlu0 %v4472_v2, %s4312_s17 }
 0x95f   : > { %1931 = vadd.xlane.f32.xlu1 %v1930_v40 }
 0x963   : > { %1934 = vadd.xlane.f32.xlu0 %v1933_v26 }
 0x967   : > { %1928 = vadd.xlane.f32.xlu0 %v1927_v62 }
 0x96b   : > { %1937 = vadd.xlane.f32.xlu0 %v1936_v9 }
 0x970   : > { %2276 = vrot.lane.b32.xlu1 %v4470_v1, %s4312_s17  ;;  %s4314_s17 = smov 40  }
 0x974   : > { %2264 = vrot.lane.b32.xlu1 %v4460_v55, %s4313_s20 }
 0x978   : > { %2268 = vrot.lane.b32.xlu1 %v4470_v1, %s4313_s20 }
 0x981   : > { %2163 = vrot.lane.b32.xlu0 %v4452_v45, %s4313_s20 }
 0x985   : > { %2262 = vrot.lane.b32.xlu0 %v4462_v56, %s4313_s20 }
 0x989   : > { %2266 = vrot.lane.b32.xlu0 %v4472_v2, %s4313_s20  ;;  %s3153_s20 = sshll.u32 %s5943_s18, 4  ;;  %s5966_s20 = int_to_ptr.vmem [resolvable:$true] %s3153_s20 }
 0x98a   : > { %s4240_s10 = scalar_lea.vmem %s5966_s20, 2048  ;;  %p4247_p0 = scmp.lt.s32.totalorder %s5966_s20, %s4245_s12 }
 0x98b   : > { %p4241_p11 = scmp.ne.s32.totalorder %s5966_s20, %s4240_s10 }
 0x98d   : > { %p4242_p12 = pnand %p4241_p11, %p4393_p5 }
 0x98f   : > { %p4243_p13 = pneg %p4242_p12 }
 0x9b0   : > { %v5551_v43 = vpop.f32.mrb[32].mxu1 }
 0x9b1   : > { %v5553_v4 = vpop.f32.mrb[33].mxu1 }
 0x9b2   : > { %v5555_v33 = vpop.f32.mrb[34].mxu1 }
 0x9b3   : > { %v5559_v34 = vpop.f32.mrb[35].mxu1  ;;  %v1923_v59 = vpop.xlane.xlu0 %1922 }
 0x9b7   : > { %v1917_v47 = vpop.xlane.xlu1 %1916  ;;  %v1926_v14 = vpop.xlane.xlu0 %1925 }
 0x9b8   : > { %4144 = vrcp.f32 %v1926_v14 }
 0x9b9   : > { %4146 = vrcp.f32 %v1917_v47 }
 0x9ba   : > { %4148 = vrcp.f32 %v1923_v59 }
 0x9bb   : > { %v2162_v58 = vpop.permute.xlu1 %2161  ;;  %v1920_v63 = vpop.xlane.xlu0 %1919 }
 0x9bc   : > { %4150 = vrcp.f32 %v1920_v63  ;;  %3686 = vmatprep.mubr.msk.bf16.mxu1 %vm459_vm1, %v2162_v58 }
 0x9c2   : > { %v4145_v0 = vpop.eup %4144 }
 0x9c3   : > { %v4147_v22 = vpop.eup %4146  ;;  %v1966_v27 = vmul.f32 %v4145_v0, %v5505_v50  ;;  %v2294_v50 = vsel %vm459_vm1, %v5474_v12, 0 }
 0x9c4   : > { %v4149_v53 = vpop.eup %4148  ;;  %v1963_v32 = vmul.f32 %v4147_v22, %v5507_v42  ;;  %v2275_v42 = vpop.permute.xlu0 %2274 }
 0x9c5   : > { %v1965_v7 = vmul.f32 %v4149_v53, %v5501_v17  ;;  %v2297_v17 = vsel %vm459_vm1, %v2275_v42, 0 }
 0x9c6   : > { %v4151_v18 = vpop.eup %4150 }
 0x9c7   : > { %v1964_v16 = vmul.f32 %v4151_v18, %v4135_v20  ;;  %v1976_v30 = vpack.c.bf16 %v1966_v27, %v1965_v7 }
 0x9c9   : > { %v1975_v48 = vpack.c.bf16 %v1964_v16, %v1963_v32 }
 0x9cb   : > { %3666 = vmatprep.mubr.msk.bf16.mxu0 %vm650_vm2, %v1975_v48 }
 0x9cc   : > { %3667 = vmatmul.mubr.msk.bf16.vlgmr.msra.gmra.mrb[64].mxu0 %vm650_vm2, %v1976_v30 }
 0x9cd   : > { %3691 = vmatpush3.bf16.xpose.msra.mxu0 %v2291_v3 }
 0x9ce   : > { %3787 = vmatprep.subr.msk.bf16.mxu0 %vm459_vm1, %v5474_v12 }
 0x9d5   : > { %3693 = vmatpush3.bf16.xpose.msra.mxu0 %v2294_v50 }
 0x9d6   : > { %3788 = vmatprep.subr.msk.bf16.mxu0 %vm459_vm1, %v2275_v42 }
 0x9dd   : > { %3695 = vmatpush3.bf16.xpose.msra.mxu0 %v2297_v17 }
 0x9ec   : > { %v1932_v20 = vpop.xlane.xlu1 %1931 }
 0x9ed   : > { %4152 = vrcp.f32 %v1932_v20 }
 0x9f0   : > { %v2277_v40 = vpop.permute.xlu1 %2276  ;;  %v1935_v26 = vpop.xlane.xlu0 %1934 }
 0x9f1   : > { %v2300_v62 = vsel %vm459_vm1, %v2277_v40, 0  ;;  %3789 = vmatprep.subr.msk.bf16.mxu0 %vm459_vm1, %v2277_v40 }
 0x9f2   : > { %3697 = vmatpush3.bf16.xpose.msra.mxu0 %v2300_v62 }
 0x9f4   : > { %v5579_v21 = vpop.f32.mrb[36].mxu1  ;;  %v1929_v9 = vpop.xlane.xlu0 %1928 }
 0x9f5   : > { %v5581_v12 = vpop.f32.mrb[37].mxu1  ;;  %4154 = vrcp.f32 %v1929_v9 }
 0x9f6   : > { %v5583_v59 = vpop.f32.mrb[38].mxu1  ;;  %4156 = vrcp.f32 %v1935_v26 }
 0x9f7   : > { %v5587_v14 = vpop.f32.mrb[39].mxu1  ;;  %v4153_v18 = vpop.eup %4152 }
 0x9f8   : > { %v1938_v63 = vpop.xlane.xlu0 %1937  ;;  %v1968_v42 = vmul.f32 %v4153_v18, %v5523_v57 }
 0x9f9   : > { %4158 = vrcp.f32 %v1938_v63 }
 0x9fc   : > { %v3684_v0 = vpop.f32.mrb[40].mxu1  ;;  %v2164_v22 = vpop.permute.xlu0 %2163 }
 0x9fd   : > { %v2231_v53 = vpop.f32.mrb[41].mxu1  ;;  %3687 = vmatmul.mubr.msk.bf16.gmra.mrb[44].mxu1 %vm459_vm1, %v2164_v22  ;;  %v5596_v48 = vadd.f32 %v5205_v13, %v3684_v0 }
 0x9fe   : > { %v5592_v27 = vadd.f32 %v5197_v11, %v2231_v53  ;;  %v3685_v32 = vpop.f32.mrb[42].mxu1 }
 0x9ff   : > { %v2234_v16 = vpop.f32.mrb[43].mxu1  ;;  %v4155_v7 = vpop.eup %4154  ;;  %v2243_v26 = vadd.f32 %v5225_v15, %v3685_v32  ;;  %v2373_v13 = vsel %vm650_vm2, %v5596_v48, -inf }
 0xa00   : > { %v2235_v30 = vadd.f32 %v5213_v52, %v2234_v16  ;;  %v2367_v3 = vsel %vm650_vm2, %v5592_v27, -inf  ;;  %v1967_v50 = vmul.f32 %v4155_v7, %v5531_v29  ;;  %v4157_v11 = vpop.eup %4156  ;;  %v2263_v9 = vpop.permute.xlu0 %2262 }
 0xa01   : > { %2368 = vmax.xlane.f32.xlu0 %v2367_v3  ;;  %v1969_v52 = vmul.f32 %v4157_v11, %v5527_v19  ;;  %v2376_v57 = vsel %vm650_vm2, %v2243_v26, -inf  ;;  %v2265_v15 = vpop.permute.xlu1 %2264 }
 0xa02   : > { %v2370_v17 = vsel %vm650_vm2, %v2235_v30, -inf  ;;  %v1977_v20 = vpack.c.bf16 %v1968_v42, %v1967_v50 }
 0xa03   : > { %2371 = vmax.xlane.f32.xlu1 %v2370_v17  ;;  %v4159_v40 = vpop.eup %4158 }
 0xa04   : > { %3670 = vmatprep.mubr.msk.bf16.mxu0 %vm650_vm2, %v1977_v20  ;;  %v1970_v29 = vmul.f32 %v4159_v40, %v5535_v23  ;;  %v2267_v63 = vpop.permute.xlu0 %2266 }
 0xa05   : > { %2374 = vmax.xlane.f32.xlu0 %v2373_v13  ;;  %v2269_v0 = vpop.permute.xlu1 %2268 }
 0xa06   : > { %v1978_v62 = vpack.c.bf16 %v1970_v29, %v1969_v52 }
 0xa08   : > { %3671 = vmatmul.mubr.msk.bf16.gmra.mrb[68].mxu0 %vm650_vm2, %v1978_v62 }
 0xa09   : > { %2377 = vmax.xlane.f32.xlu0 %v2376_v57  ;;  %3698 = vmatprep.mubr.msk.bf16.mxu0 %vm459_vm1, %v2263_v9 }
 0xa10   : > { %3699 = vmatmul.mubr.msk.bf16.vlgmr.msra.gmra.mrb[72].mxu0 %vm459_vm1, %v2265_v15 }
 0xa11   : > { %3702 = vmatprep.mubr.msk.bf16.mxu0 %vm459_vm1, %v2267_v63 }
 0xa18   : > { %3703 = vmatmul.mubr.msk.bf16.gmra.mrb[76].mxu0 %vm459_vm1, %v2269_v0 }
 0xa8e   : > { %v2369_v16 = vpop.xlane.xlu0 %2368 }
 0xa90   : > { %v2372_v42 = vpop.xlane.xlu1 %2371 }
 0xa91   : > { %v2416_v11 = vsub.f32 %v2235_v30, %v2372_v42 }
 0xa92   : > { %v2375_v7 = vpop.xlane.xlu0 %2374 }
 0xa93   : > { %v2433_v40 = vmul.f32 1.442695, %v2416_v11 }
 0xa96   : > { %v2378_v3 = vpop.xlane.xlu0 %2377 }
 0xa97   : > { %v2418_v50 = vsub.f32 %v2243_v26, %v2378_v3 }
 0xa99   : > { %v2437_v17 = vmul.f32 1.442695, %v2418_v50 }
 0xa9b   : > { %4160 = vpow2.f32 %v2437_v17 }
 0xa9c   : > { %4162 = vpow2.f32 %v2433_v40 }
 0xa9f   : > { %v5616_v19 = vpop.f32.mrb[64].mxu0 }
 0xaa0   : > { %v5618_v23 = vpop.f32.mrb[65].mxu0 }
 0xaa1   : > { %v5620_v22 = vpop.f32.mrb[66].mxu0 }
 0xaa2   : > { %v5624_v18 = vpop.f32.mrb[67].mxu0 }
 0xaa5   : > { %v5636_v0 = vpop.eup %4160 }
 0xaa6   : > { %v2472_v42 = vsel %vm650_vm2, %v5636_v0, 0.0  ;;  %v5650_v11 = vpop.eup %4162 }
 0xad0   : > { %v3688_v20 = vpop.f32.mrb[44].mxu1 }
 0xad1   : > { %v2247_v13 = vpop.f32.mrb[45].mxu1  ;;  %v2256_v57 = vadd.f32 %v5261_v39, %v3688_v20  ;;  %v2466_v20 = vsel %vm650_vm2, %v5650_v11, 0.0 }
 0xad2   : > { %v2248_v52 = vadd.f32 %v5249_v28, %v2247_v13  ;;  %v3689_v29 = vpop.f32.mrb[46].mxu1 }
 0xad3   : > { %v2250_v62 = vpop.f32.mrb[47].mxu1  ;;  %v2259_v26 = vadd.f32 %v5285_v41, %v3689_v29  ;;  %v2385_v63 = vsel %vm650_vm2, %v2256_v57, -inf  ;;  %v2417_v41 = vsub.f32 %v5596_v48, %v2375_v7 }
 0xad4   : > { %v2251_v9 = vadd.f32 %v5269_v8, %v2250_v62  ;;  %v2379_v15 = vsel %vm650_vm2, %v2248_v52, -inf }
 0xad5   : > { %2380 = vmax.xlane.f32.xlu1 %v2379_v15  ;;  %v2388_v28 = vsel %vm650_vm2, %v2259_v26, -inf  ;;  %v2435_v17 = vmul.f32 1.442695, %v2417_v41 }
 0xad6   : > { %v2382_v30 = vsel %vm650_vm2, %v2251_v9, -inf }
 0xad7   : > { %2383 = vmax.xlane.f32.xlu0 %v2382_v30  ;;  %4164 = vpow2.f32 %v2435_v17 }
 0xad9   : > { %2386 = vmax.xlane.f32.xlu1 %v2385_v63 }
 0xadb   : > { %v5638_v3 = vpop.f32.mrb[68].mxu0  ;;  %2389 = vmax.xlane.f32.xlu0 %v2388_v28 }
 0xadc   : > { %v5640_v39 = vpop.f32.mrb[69].mxu0 }
 0xadd   : > { %6065 = vst [vmem:[#allocation33_spill] sm:$0xff] %v5640_v39  ;;  %v5642_v8 = vpop.f32.mrb[70].mxu0 }
 0xade   : > { %v5646_v50 = vpop.f32.mrb[71].mxu0 }
 0xadf   : > { %6066 = vst [vmem:[#allocation34_spill] sm:$0xff] %v5646_v50  ;;  %2473 = vadd.xlane.f32.xlu0 %v2472_v42  ;;  %v2415_v42 = vsub.f32 %v5592_v27, %v2369_v16 }
 0xae1   : > { %v2431_v32 = vmul.f32 1.442695, %v2415_v42 }
 0xae3   : > { %v3700_v40 = vpop.f32.mrb[72].mxu0  ;;  %2467 = vadd.xlane.f32.xlu0 %v2466_v20  ;;  %4166 = vpow2.f32 %v2431_v32  ;;  %v5660_v20 = vpop.eup %4164 }
 0xae4   : > { %v2336_v13 = vpop.f32.mrb[73].mxu0  ;;  %v2469_v53 = vsel %vm650_vm2, %v5660_v20, 0.0 }
 0xae5   : > { %v3701_v29 = vpop.f32.mrb[74].mxu0 }
 0xae6   : > { %v2339_v62 = vpop.f32.mrb[75].mxu0 }
 0xaea   : > { %2551 = vrot.lane.b32.xlu1 %v4444_v36, %s4314_s17 }
 0xaeb   : > { %v3704_v15 = vpop.f32.mrb[76].mxu0 }
 0xaec   : > { %v2352_v30 = vpop.f32.mrb[77].mxu0 }
 0xaed   : > { %v3705_v63 = vpop.f32.mrb[78].mxu0  ;;  %v5664_v58 = vpop.eup %4166 }
 0xaee   : > { %v2355_v28 = vpop.f32.mrb[79].mxu0  ;;  %v2463_v36 = vsel %vm650_vm2, %v5664_v58, 0.0 }
 0xb0e   : > { %2470 = vadd.xlane.f32.xlu1 %v2469_v53 }
 0xb12   : > { %2464 = vadd.xlane.f32.xlu1 %v2463_v36  ;;  %v2337_v36 = vadd.f32 %v5436_v60, %v2336_v13  ;;  %v5697_v60 = vadd.f32 %v5460_v5, %v2352_v30 }
 0xb62   : > { %v2381_v47 = vpop.xlane.xlu1 %2380 }
 0xb63   : > { %v2419_v48 = vsub.f32 %v2248_v52, %v2381_v47 }
 0xb64   : > { %v2384_v7 = vpop.xlane.xlu0 %2383 }
 0xb65   : > { %v2420_v16 = vsub.f32 %v2251_v9, %v2384_v7  ;;  %v2439_v17 = vmul.f32 1.442695, %v2419_v48  ;;  %v2340_v7 = vadd.f32 %v5382_v6, %v2339_v62  ;;  %v5701_v6 = vadd.f32 %v5421_v51, %v2355_v28 }
 0xb66   : > { %v2387_v27 = vpop.xlane.xlu1 %2386 }
 0xb67   : > { %v2421_v41 = vsub.f32 %v2256_v57, %v2387_v27  ;;  %v2441_v39 = vmul.f32 1.442695, %v2420_v16  ;;  %v2406_v62 = vsel %vm650_vm2, %v5701_v6, -inf }
 0xb68   : > { %v2390_v32 = vpop.xlane.xlu0 %2389 }
 0xb69   : > { %v2443_v42 = vmul.f32 1.442695, %v2421_v41  ;;  %v2422_v25 = vsub.f32 %v2259_v26, %v2390_v32 }
 0xb6a   : > { %v2552_v44 = vpop.permute.xlu1 %2551 }
 0xb6b   : > { %4168 = vpow2.f32 %v2443_v42  ;;  %v2445_v50 = vmul.f32 1.442695, %v2422_v25  ;;  %3706 = vmatprep.subr.bf16.mxu1 %v2552_v44  ;;  %v2345_v25 = vadd.f32 %v5410_v38, %v3700_v40  ;;  %v2361_v38 = vadd.f32 %v5449_v10, %v3704_v15 }
 0xb6c   : > { %4170 = vpow2.f32 %v2439_v17  ;;  %3707 = vmatpush3.bf16.msra.mxu1 %v2552_v44  ;;  %v2391_v40 = vsel %vm650_vm2, %v2337_v36, -inf  ;;  %v2474_v5 = vpop.xlane.xlu0 %2473 }
 0xb6d   : > { %4172 = vpow2.f32 %v2445_v50  ;;  %v2397_v48 = vsel %vm650_vm2, %v2345_v25, -inf  ;;  %v2409_v13 = vsel %vm650_vm2, %v2361_v38, -inf }
 0xb6e   : > { %4174 = vpow2.f32 %v2441_v39  ;;  %v2348_v39 = vadd.f32 %v5363_v49, %v3701_v29  ;;  %v5693_v49 = vadd.f32 %v5399_v54, %v3705_v63  ;;  %v2394_v29 = vsel %vm650_vm2, %v2340_v7, -inf }
 0xb6f   : > { %v2403_v54 = vsel %vm650_vm2, %v5697_v60, -inf  ;;  %4176 = vrcp.f32 %v2474_v5 }
 0xb70   : > { %v2400_v27 = vsel %vm650_vm2, %v2348_v39, -inf  ;;  %v2412_v10 = vsel %vm650_vm2, %v5693_v49, -inf  ;;  %v2468_v15 = vpop.xlane.xlu0 %2467 }
 0xb75   : > { %v5668_v53 = vpop.eup %4168 }
 0xb76   : > { %v5670_v47 = vpop.eup %4170  ;;  %v2481_v52 = vsel %vm650_vm2, %v5668_v53, 0.0 }
 0xb77   : > { %v5674_v57 = vpop.eup %4172  ;;  %2482 = vadd.xlane.f32.xlu1 %v2481_v52  ;;  %v2475_v44 = vsel %vm650_vm2, %v5670_v47, 0.0 }
 0xb78   : > { %v2484_v9 = vsel %vm650_vm2, %v5674_v57, 0.0  ;;  %v5678_v26 = vpop.eup %4174 }
 0xb79   : > { %2485 = vadd.xlane.f32.xlu0 %v2484_v9  ;;  %v2478_v50 = vsel %vm650_vm2, %v5678_v26, 0.0  ;;  %v4177_v63 = vpop.eup %4176 }
 0xb7a   : > { %v5716_v16 = vmul.f32 %v4177_v63, %v5636_v0 }
 0xb7b   : > { %2476 = vadd.xlane.f32.xlu1 %v2475_v44 }
 0xb7d   : > { %2479 = vadd.xlane.f32.xlu0 %v2478_v50 }
 0xb7f   : > { %2398 = vmax.xlane.f32.xlu1 %v2397_v48 }
 0xb81   : > { %2401 = vmax.xlane.f32.xlu0 %v2400_v27 }
 0xb83   : > { %2392 = vmax.xlane.f32.xlu1 %v2391_v40 }
 0xb85   : > { %2395 = vmax.xlane.f32.xlu0 %v2394_v29 }
 0xb87   : > { %2410 = vmax.xlane.f32.xlu1 %v2409_v13 }
 0xb89   : > { %2413 = vmax.xlane.f32.xlu0 %v2412_v10 }
 0xb8b   : > { %2404 = vmax.xlane.f32.xlu1 %v2403_v54 }
 0xb8d   : > { %2407 = vmax.xlane.f32.xlu0 %v2406_v62 }
 0xb9b   : > { %v2471_v30 = vpop.xlane.xlu1 %2470 }
 0xb9c   : > { %4178 = vrcp.f32 %v2471_v30  ;;  %2553 = vrot.lane.b32.xlu1 %v4442_v35, %s4314_s17 }
 0xb9d   : > { %4180 = vrcp.f32 %v2468_v15 }
 0xb9f   : > { %v2465_v51 = vpop.xlane.xlu1 %2464 }
 0xba0   : > { %4182 = vrcp.f32 %v2465_v51  ;;  %2557 = vrot.lane.b32.xlu1 %v4452_v45, %s4314_s17 }
 0xba3   : > { %2555 = vrot.lane.b32.xlu0 %v4454_v46, %s4314_s17 }
 0xba6   : > { %v4179_v28 = vpop.eup %4178 }
 0xba7   : > { %v5719_v41 = vmul.f32 %v4179_v28, %v5660_v20  ;;  %v4181_v17 = vpop.eup %4180 }
 0xba8   : > { %v2528_v45 = vmul.f32 %v4181_v17, %v5650_v11 }
 0xba9   : > { %v2544_v35 = vpack.c.bf16 %v5716_v16, %v5719_v41 }
 0xbaa   : > { %v4183_v32 = vpop.eup %4182 }
 0xbab   : > { %v2527_v42 = vmul.f32 %v4183_v32, %v5664_v58 }
 0xbad   : > { %v2543_v52 = vpack.c.bf16 %v2528_v45, %v2527_v42 }
 0xbaf   : > { %3714 = vmatprep.mubr.msk.bf16.mxu1 %vm650_vm2, %v2543_v52 }
 0xc04   : > { %v2483_v46 = vpop.xlane.xlu1 %2482 }
 0xc06   : > { %v2486_v9 = vpop.xlane.xlu0 %2485 }
 0xc08   : > { %v2477_v44 = vpop.xlane.xlu1 %2476 }
 0xc0a   : > { %v2480_v0 = vpop.xlane.xlu0 %2479 }
 0xc0c   : > { %v2399_v50 = vpop.xlane.xlu1 %2398 }
 0xc0d   : > { %v2425_v48 = vsub.f32 %v2345_v25, %v2399_v50 }
 0xc0e   : > { %v2402_v20 = vpop.xlane.xlu0 %2401 }
 0xc0f   : > { %v2451_v27 = vmul.f32 1.442695, %v2425_v48  ;;  %v2426_v40 = vsub.f32 %v2348_v39, %v2402_v20 }
 0xc10   : > { %v2393_v29 = vpop.xlane.xlu1 %2392 }
 0xc11   : > { %4184 = vpow2.f32 %v2451_v27  ;;  %v2423_v13 = vsub.f32 %v2337_v36, %v2393_v29  ;;  %v2453_v54 = vmul.f32 1.442695, %v2426_v40 }
 0xc12   : > { %v2396_v10 = vpop.xlane.xlu0 %2395 }
 0xc13   : > { %v2447_v58 = vmul.f32 1.442695, %v2423_v13  ;;  %v2424_v62 = vsub.f32 %v2340_v7, %v2396_v10 }
 0xc14   : > { %v2411_v11 = vpop.xlane.xlu1 %2410 }
 0xc15   : > { %4186 = vpow2.f32 %v2447_v58  ;;  %v2429_v5 = vsub.f32 %v2361_v38, %v2411_v11  ;;  %v2449_v30 = vmul.f32 1.442695, %v2424_v62 }
 0xc16   : > { %v2414_v15 = vpop.xlane.xlu0 %2413  ;;  %4188 = vpow2.f32 %v2453_v54 }
 0xc17   : > { %v2459_v51 = vmul.f32 1.442695, %v2429_v5  ;;  %v2430_v63 = vsub.f32 %v5693_v49, %v2414_v15  ;;  %4190 = vrcp.f32 %v2480_v0 }
 0xc18   : > { %v2405_v25 = vpop.xlane.xlu1 %2404 }
 0xc19   : > { %4192 = vpow2.f32 %v2459_v51  ;;  %v2427_v39 = vsub.f32 %v5697_v60, %v2405_v25  ;;  %v2461_v36 = vmul.f32 1.442695, %v2430_v63 }
 0xc1a   : > { %4194 = vrcp.f32 %v2477_v44  ;;  %v2408_v28 = vpop.xlane.xlu0 %2407 }
 0xc1b   : > { %v5728_v17 = vpop.eup %4184  ;;  %4196 = vpow2.f32 %v2449_v30  ;;  %v2455_v7 = vmul.f32 1.442695, %v2427_v39  ;;  %v2428_v38 = vsub.f32 %v5701_v6, %v2408_v28 }
 0xc1c   : > { %4198 = vrcp.f32 %v2486_v9  ;;  %v2554_v32 = vpop.permute.xlu1 %2553  ;;  %v2493_v42 = vsel %vm650_vm2, %v5728_v17, 0.0 }
 0xc1d   : > { %4200 = vpow2.f32 %v2455_v7  ;;  %v2457_v49 = vmul.f32 1.442695, %v2428_v38  ;;  %3708 = vmatprep.subr.bf16.mxu1 %v2554_v32  ;;  %2494 = vadd.xlane.f32.xlu0 %v2493_v42 }
 0xc1e   : > { %4202 = vpow2.f32 %v2461_v36  ;;  %3709 = vmatpush3.bf16.msra.mxu1 %v2554_v32  ;;  %v2556_v60 = vpop.permute.xlu0 %2555 }
 0xc1f   : > { %v5733_v45 = vpop.eup %4186  ;;  %4204 = vpow2.f32 %v2457_v49  ;;  %3710 = vmatprep.subr.bf16.mxu1 %v2556_v60 }
 0xc20   : > { %v2487_v52 = vsel %vm650_vm2, %v5733_v45, 0.0  ;;  %v5737_v6 = vpop.eup %4188  ;;  %4206 = vrcp.f32 %v2483_v46  ;;  %v2558_v44 = vpop.permute.xlu1 %2557 }
 0xc21   : > { %2488 = vadd.xlane.f32.xlu0 %v2487_v52  ;;  %v4191_v9 = vpop.eup %4190  ;;  %v2496_v20 = vsel %vm650_vm2, %v5737_v6, 0.0 }
 0xc22   : > { %3711 = vmatpush3.bf16.msra.mxu1 %v2556_v60  ;;  %v2532_v40 = vmul.f32 %v4191_v9, %v5678_v26 }
 0xc23   : > { %v5739_v0 = vpop.eup %4192  ;;  %3712 = vmatprep.subr.bf16.mxu1 %v2558_v44 }
 0xc24   : > { %v4195_v50 = vpop.eup %4194  ;;  %v2505_v48 = vsel %vm650_vm2, %v5739_v0, 0.0 }
 0xc25   : > { %v4197_v27 = vpop.eup %4196  ;;  %2506 = vadd.xlane.f32.xlu1 %v2505_v48  ;;  %2497 = vadd.xlane.f32.xlu0 %v2496_v20  ;;  %v2531_v13 = vmul.f32 %v4195_v50, %v5670_v47 }
 0xc26   : > { %v4199_v46 = vpop.eup %4198  ;;  %3713 = vmatpush3.bf16.msra.mxu1 %v2558_v44  ;;  %v2490_v58 = vsel %vm650_vm2, %v4197_v27, 0.0 }
 0xc27   : > { %v5746_v29 = vpop.eup %4200  ;;  %v2545_v11 = vpack.c.bf16 %v2532_v40, %v2531_v13  ;;  %v2534_v15 = vmul.f32 %v4199_v46, %v5674_v57  ;;  %v6068_v57 = vpack.i.bf16 %v5146_v24, %v5142_v31 }
 0xc28   : > { %v5749_v10 = vpop.eup %4202  ;;  %v2499_v54 = vsel %vm650_vm2, %v5746_v29, 0.0 }
 0xc29   : > { %v5754_v62 = vpop.eup %4204  ;;  %2500 = vadd.xlane.f32.xlu1 %v2499_v54  ;;  %2491 = vadd.xlane.f32.xlu0 %v2490_v58  ;;  %v2508_v47 = vsel %vm650_vm2, %v5749_v10, 0.0 }
 0xc2a   : > { %3715 = vmatmul.mubr.msk.bf16.vlgmr.msra.gmra.mrb[48].mxu1 %vm650_vm2, %v2544_v35  ;;  %v4207_v26 = vpop.eup %4206  ;;  %v2502_v5 = vsel %vm650_vm2, %v5754_v62, 0.0 }
 0xc2b   : > { %3718 = vmatprep.mubr.msk.bf16.mxu1 %vm650_vm2, %v2545_v11  ;;  %v2533_v30 = vmul.f32 %v4207_v26, %v5668_v53  ;;  %v6067_v53 = vpack.i.bf16 %v5150_v61, %v5144_v37 }
 0xc2d   : > { %2509 = vadd.xlane.f32.xlu1 %v2508_v47  ;;  %2503 = vadd.xlane.f32.xlu0 %v2502_v5  ;;  %v2546_v51 = vpack.c.bf16 %v2534_v15, %v2533_v30  ;;  %v6074_v47 = vld [vmem:[#allocation24_spill] sm:$0xff]  ;;  %v6075_v5 = vld [vmem:[#allocation22_spill] sm:$0xff] }
 0xc2e   : > { %v6076_v15 = vpack.i.bf16 %v6074_v47, %v6075_v5 }
 0xc32   : > { %3719 = vmatmul.mubr.msk.bf16.gmra.mrb[52].mxu1 %vm650_vm2, %v2546_v51 }
 0xc3e   : > { %2642 = vrot.lane.b32.xlu1 %v4460_v55, %s4314_s17  ;;  %v6069_v55 = vpack.i.bf16 %v5559_v34, %v5553_v4 }
 0xc42   : > { %2644 = vrot.lane.b32.xlu1 %v4472_v2, %s4314_s17 }
 0xc43   : > { %2640 = vrot.lane.b32.xlu0 %v4462_v56, %s4314_s17  ;;  %v6070_v56 = vpack.i.bf16 %v5555_v33, %v5551_v43 }
 0xc46   : > { %2646 = vrot.lane.b32.xlu1 %v4470_v1, %s4314_s17  ;;  %v3966_v1 = vld [vmem:[%s6017_s3] sm:$0xff]  }
 0xc47   : > { %3845 = vrot.lane.b32.xlu0 %v6067_v53, %s4315_s26  ;;  %3738 = vmatprep.subr.bf16.mxu1 %v3966_v1 }
 0xc48   : > { %3739 = vmatpush3.bf16.msra.mxu1 %v3966_v1  ;;  %v6079_v1 = vld [vmem:[#allocation27_spill] sm:$0xff] }
 0xc4a   : > { %3850 = vrot.lane.b32.xlu1 %v6068_v57, %s4315_s26 }
 0xc4b   : > { %3855 = vrot.lane.b32.xlu0 %v6069_v55, %s4316_s29  ;;  %v6077_v55 = vpack.i.bf16 %v5583_v59, %v5579_v21  ;;  %v6085_v21 = vpack.i.bf16 %v5620_v22, %v5616_v19  ;;  %v6087_v59 = vld [vmem:[#allocation31_spill] sm:$0xff] }
 0xc4e   : > { %3860 = vrot.lane.b32.xlu1 %v6070_v56, %s4316_s29  ;;  %v6078_v56 = vpack.i.bf16 %v5587_v14, %v5581_v12  ;;  %v6086_v12 = vpack.i.bf16 %v5624_v18, %v5618_v23  ;;  %v6088_v14 = vld [vmem:[#allocation29_spill] sm:$0xff] }
 0xcaa   : > { %v2495_v2 = vpop.xlane.xlu0 %2494 }
 0xcae   : > { %v2489_v31 = vpop.xlane.xlu0 %2488 }
 0xcaf   : > { %4208 = vrcp.f32 %v2489_v31 }
 0xcb2   : > { %v2507_v37 = vpop.xlane.xlu1 %2506  ;;  %v2498_v24 = vpop.xlane.xlu0 %2497 }
 0xcb6   : > { %v2501_v61 = vpop.xlane.xlu1 %2500  ;;  %v2492_v16 = vpop.xlane.xlu0 %2491 }
 0xcb7   : > { %4210 = vrcp.f32 %v2492_v16  ;;  %v6089_v16 = vpack.i.bf16 %v6087_v59, %v6088_v14 }
 0xcb8   : > { %4212 = vrcp.f32 %v2498_v24  ;;  %v6083_v24 = vld [vmem:[#allocation26_spill] sm:$0xff] }
 0xcb9   : > { %v4209_v41 = vpop.eup %4208 }
 0xcba   : > { %v2510_v4 = vpop.xlane.xlu1 %2509  ;;  %v2504_v34 = vpop.xlane.xlu0 %2503  ;;  %v2535_v25 = vmul.f32 %v4209_v41, %v5733_v45 }
 0xcbb   : > { %4214 = vrcp.f32 %v2504_v34  ;;  %v6091_v34 = vld [vmem:[#allocation30_spill] sm:$0xff] }
 0xcbc   : > { %4216 = vrcp.f32 %v2495_v2  ;;  %v6080_v2 = vld [vmem:[#allocation25_spill] sm:$0xff] }
 0xcbd   : > { %4218 = vrcp.f32 %v2501_v61  ;;  %v6081_v31 = vpack.i.bf16 %v6079_v1, %v6080_v2  ;;  %v6097_v1 = vld [vmem:[#allocation11_spill] sm:$0xff] }
 0xcbe   : > { %v2643_v43 = vpop.permute.xlu1 %2642  ;;  %v2641_v33 = vpop.permute.xlu0 %2640  ;;  %4220 = vrcp.f32 %v2510_v4  ;;  %v6090_v4 = vld [vmem:[#allocation32_spill] sm:$0xff] }
 0xcbf   : > { %3722 = vmatprep.subr.bf16.mxu0 %v2641_v33  ;;  %4222 = vrcp.f32 %v2507_v37  ;;  %v6082_v37 = vld [vmem:[#allocation28_spill] sm:$0xff] }
 0xcc0   : > { %3723 = vmatpush3.bf16.msra.mxu0 %v2641_v33  ;;  %v6084_v61 = vpack.i.bf16 %v6082_v37, %v6083_v24 }
 0xcc1   : > { %3724 = vmatprep.subr.bf16.mxu0 %v2643_v43  ;;  %v4211_v35 = vpop.eup %4210 }
 0xcc2   : > { %v2645_v63 = vpop.permute.xlu1 %2644  ;;  %v2536_v39 = vmul.f32 %v4211_v35, %v4197_v27  ;;  %v4213_v28 = vpop.eup %4212 }
 0xcc3   : > { %v2538_v49 = vmul.f32 %v4213_v28, %v5737_v6  ;;  %v3846_v41 = vpop.permute.xlu0 %3845 }
 0xcc4   : > { %3725 = vmatpush3.bf16.msra.mxu0 %v2643_v43  ;;  %v2547_v36 = vpack.c.bf16 %v2536_v39, %v2535_v25  ;;  %v6092_v43 = vpack.i.bf16 %v6090_v4, %v6091_v34  ;;  %v3848_v19 = vunpack.i.h.bf16 %v3846_v41  ;;  %v3847_v22 = vunpack.i.l.bf16 %v3846_v41 }
 0xcc5   : > { %3726 = vmatprep.subr.bf16.mxu0 %v2645_v63  ;;  %v4215_v7 = vpop.eup %4214 }
 0xcc6   : > { %3730 = vmatprep.mubr.msk.bf16.mxu0 %vm650_vm2, %v2547_v36  ;;  %v4217_v38 = vpop.eup %4216  ;;  %v2647_v32 = vpop.permute.xlu1 %2646  ;;  %v2540_v60 = vmul.f32 %v4215_v7, %v5754_v62  ;;  %v6072_v62 = vld [vmem:[#allocation21_spill] sm:$0xff]  ;;  %v6093_v7 = vld [vmem:[#allocation8_spill] sm:$0xff] }
 0xcc7   : > { %v4219_v42 = vpop.eup %4218  ;;  %v2537_v45 = vmul.f32 %v4217_v38, %v5728_v17  ;;  %v3967_v17 = vld [vmem:[%s6017_s3 + $0x8] sm:$0xff]   ;;  %v2922_v38 = vsel %vm459_vm1, %v6093_v7, %v3848_v19 }
 0xcc8   : > { %3727 = vmatpush3.bf16.msra.mxu0 %v2645_v63  ;;  %v2539_v52 = vmul.f32 %v4219_v42, %v5746_v29  ;;  %v4221_v44 = vpop.eup %4220  ;;  %3740 = vmatprep.subr.bf16.mxu1 %v3967_v17  ;;  %v3856_v63 = vpop.permute.xlu0 %3855 }
 0xcc9   : > { %3728 = vmatprep.subr.bf16.mxu0 %v2647_v32  ;;  %v2548_v9 = vpack.c.bf16 %v2538_v49, %v2537_v45  ;;  %v4223_v48 = vpop.eup %4222  ;;  %v2542_v20 = vmul.f32 %v4221_v44, %v5749_v10  ;;  %3741 = vmatpush3.bf16.msra.mxu1 %v3967_v17  ;;  %v6071_v10 = vld [vmem:[#allocation23_spill] sm:$0xff]  ;;  %v3858_v36 = vunpack.i.h.bf16 %v3856_v63  ;;  %v3857_v28 = vunpack.i.l.bf16 %v3856_v63 }
 0xcca   : > { %v2549_v50 = vpack.c.bf16 %v2540_v60, %v2539_v52  ;;  %v2541_v6 = vmul.f32 %v4223_v48, %v5739_v0  ;;  %v6073_v11 = vpack.i.bf16 %v6071_v10, %v6072_v62  ;;  %v3851_v33 = vpop.permute.xlu1 %3850  ;;  %v6095_v60 = vld [vmem:[#allocation7_spill] sm:$0xff]  ;;  %v6096_v52 = vld [vmem:[#allocation5_spill] sm:$0xff] }
 0xccb   : > { %v3853_v25 = vunpack.i.h.bf16 %v3851_v33  ;;  %v3852_v39 = vunpack.i.l.bf16 %v3851_v33 }
 0xccc   : > { %3729 = vmatpush3.bf16.msra.mxu0 %v2647_v32  ;;  %v2550_v27 = vpack.c.bf16 %v2542_v20, %v2541_v6  ;;  %v6094_v32 = vld [vmem:[#allocation6_spill] sm:$0xff] }
 0xccd   : > { %v2921_v42 = vsel %vm459_vm1, %v6094_v32, %v3847_v22  ;;  %v2924_v45 = vsel %vm459_vm1, %v6095_v60, %v3853_v25  ;;  %v6101_v60 = vpack.i.bf16 %v5642_v8, %v5638_v3 }
 0xcce   : > { %v3861_v35 = vpop.permute.xlu1 %3860 }
 0xccf   : > { %3731 = vmatmul.mubr.msk.bf16.vlgmr.msra.gmra.mrb[80].mxu0 %vm650_vm2, %v2548_v9  ;;  %v3863_v23 = vunpack.i.h.bf16 %v3861_v35  ;;  %v3862_v18 = vunpack.i.l.bf16 %v3861_v35  ;;  %v2923_v9 = vsel %vm459_vm1, %v6096_v52, %v3852_v39  ;;  %v6102_v52 = vld [vmem:[#allocation34_spill] sm:$0xff] }
 0xcd0   : > { %3734 = vmatprep.mubr.msk.bf16.mxu0 %vm650_vm2, %v2549_v50 }
 0xcd1   : > { %v2940_v20 = vsel %vm2937_vm3, %v2923_v9, %v3862_v18  ;;  %v2941_v6 = vsel %vm2937_vm3, %v2924_v45, %v3863_v23  ;;  %v6103_v9 = vld [vmem:[#allocation33_spill] sm:$0xff] }
 0xcd7   : > { %3735 = vmatmul.mubr.msk.bf16.gmra.mrb[84].mxu0 %vm650_vm2, %v2550_v27 }
 0xcfd   : > { %v3716_v40 = vpop.f32.mrb[48].mxu1 }
 0xcfe   : > { %v2609_v46 = vpop.f32.mrb[49].mxu1 }
 0xcff   : > { %v3717_v29 = vpop.f32.mrb[50].mxu1 }
 0xd00   : > { %v3869_v13 = vpack.i.bf16 %v3717_v29, %v3716_v40  ;;  %v2612_v54 = vpop.f32.mrb[51].mxu1  ;;  %v2938_v40 = vsel %vm2937_vm3, %v2921_v42, %v3857_v28 }
 0xd01   : > { %v3864_v58 = vpack.i.bf16 %v2612_v54, %v2609_v46  ;;  %v2939_v46 = vsel %vm2937_vm3, %v2922_v38, %v3858_v36 }
 0xd02   : > { %3870 = vrot.lane.b32.xlu1 %v3869_v13, %s4317_s28 }
 0xd03   : > { %3865 = vrot.lane.b32.xlu0 %v3864_v58, %s4317_s28 }
 0xd05   : > { %v3720_v0 = vpop.f32.mrb[52].mxu1 }
 0xd06   : > { %3880 = vrot.lane.b32.xlu1 %v6073_v11, %s4315_s26  ;;  %v2625_v26 = vpop.f32.mrb[53].mxu1 }
 0xd07   : > { %3875 = vrot.lane.b32.xlu0 %v6076_v15, %s4315_s26  ;;  %v3721_v30 = vpop.f32.mrb[54].mxu1 }
 0xd08   : > { %v3899_v51 = vpack.i.bf16 %v3721_v30, %v3720_v0  ;;  %v2628_v53 = vpop.f32.mrb[55].mxu1 }
 0xd09   : > { %v3894_v57 = vpack.i.bf16 %v2628_v53, %v2625_v26 }
 0xd0a   : > { %3890 = vrot.lane.b32.xlu1 %v6077_v55, %s4316_s29 }
 0xd0b   : > { %3885 = vrot.lane.b32.xlu0 %v6078_v56, %s4316_s29 }
 0xd0e   : > { %3900 = vrot.lane.b32.xlu1 %v3899_v51, %s4317_s28 }
 0xd0f   : > { %3895 = vrot.lane.b32.xlu0 %v3894_v57, %s4317_s28 }
 0xd12   : > { %3910 = vrot.lane.b32.xlu1 %v6081_v31, %s4315_s26  ;;  %v6098_v31 = vld [vmem:[#allocation9_spill] sm:$0xff] }
 0xd13   : > { %3905 = vrot.lane.b32.xlu0 %v6084_v61, %s4315_s26  ;;  %v6099_v61 = vld [vmem:[#allocation12_spill] sm:$0xff] }
 0xd16   : > { %3920 = vrot.lane.b32.xlu1 %v6085_v21, %s4316_s29 }
 0xd17   : > { %3915 = vrot.lane.b32.xlu0 %v6086_v12, %s4316_s29  ;;  %v6100_v12 = vld [vmem:[#allocation10_spill] sm:$0xff] }
 0xd1a   : > { %3930 = vrot.lane.b32.xlu1 %v6089_v16, %s4315_s26 }
 0xd1b   : > { %3925 = vrot.lane.b32.xlu0 %v6092_v43, %s4315_s26 }
 0xd74   : > { %v3871_v49 = vpop.permute.xlu1 %3870 }
 0xd75   : > { %v3873_v44 = vunpack.i.h.bf16 %v3871_v49  ;;  %v3872_v50 = vunpack.i.l.bf16 %v3871_v49  ;;  %v3866_v48 = vpop.permute.xlu0 %3865 }
 0xd76   : > { %v3868_v27 = vunpack.i.h.bf16 %v3866_v48  ;;  %v3867_v17 = vunpack.i.l.bf16 %v3866_v48 }
 0xd77   : > { %v2958_v29 = vsel %vm2954_vm4, %v2941_v6, %v3873_v44  ;;  %v2957_v13 = vsel %vm2954_vm4, %v2940_v20, %v3872_v50  ;;  %v6104_v44 = vpack.i.bf16 %v6102_v52, %v6103_v9 }
 0xd78   : > { %v2972_v54 = vpack.c.bf16 %v2958_v29, %v2957_v13  ;;  %v2955_v58 = vsel %vm2954_vm4, %v2938_v40, %v3867_v17  ;;  %v2956_v0 = vsel %vm2954_vm4, %v2939_v46, %v3868_v27  ;;  %v3881_v10 = vpop.permute.xlu1 %3880 }
 0xd79   : > { %v2971_v62 = vpack.c.bf16 %v2956_v0, %v2955_v58  ;;  %v3876_v11 = vpop.permute.xlu0 %3875  ;;  %v3883_v26 = vunpack.i.h.bf16 %v3881_v10  ;;  %v3882_v47 = vunpack.i.l.bf16 %v3881_v10 }
 0xd7a   : > { %v3878_v15 = vunpack.i.h.bf16 %v3876_v11  ;;  %v3877_v30 = vunpack.i.l.bf16 %v3876_v11 }
 0xd7b   : > { %3742 = vmatprep.mubr.msk.bf16.mxu1 %vm301_vm0, %v2971_v62  ;;  %v2928_v2 = vsel %vm459_vm1, %v6097_v1, %v3883_v26  ;;  %v2927_v37 = vsel %vm459_vm1, %v6098_v31, %v3882_v47  ;;  %v6105_v26 = vld [vmem:[#allocation15_spill] sm:$0xff] }
 0xd7c   : > { %v3891_v5 = vpop.permute.xlu1 %3890  ;;  %3743 = vmatmul.mubr.msk.bf16.vlgmr.msra.gmra.mrb[56].mxu1 %vm301_vm0, %v2972_v54  ;;  %v2926_v21 = vsel %vm459_vm1, %v6099_v61, %v3878_v15  ;;  %v2925_v59 = vsel %vm459_vm1, %v6100_v12, %v3877_v30  ;;  %v6107_v30 = vld [vmem:[#allocation16_spill] sm:$0xff] }
 0xd7d   : > { %v3886_v51 = vpop.permute.xlu0 %3885  ;;  %v3893_v53 = vunpack.i.h.bf16 %v3891_v5  ;;  %v3892_v57 = vunpack.i.l.bf16 %v3891_v5  ;;  %v6106_v5 = vld [vmem:[#allocation13_spill] sm:$0xff] }
 0xd7e   : > { %v3888_v55 = vunpack.i.h.bf16 %v3886_v51  ;;  %v3887_v56 = vunpack.i.l.bf16 %v3886_v51 }
 0xd7f   : > { %v2944_v34 = vsel %vm2937_vm3, %v2927_v37, %v3892_v57  ;;  %v2945_v43 = vsel %vm2937_vm3, %v2928_v2, %v3893_v53  ;;  %v6108_v57 = vld [vmem:[#allocation14_spill] sm:$0xff] }
 0xd80   : > { %v3901_v24 = vpop.permute.xlu1 %3900  ;;  %v2942_v35 = vsel %vm2937_vm3, %v2925_v59, %v3887_v56  ;;  %v2943_v19 = vsel %vm2937_vm3, %v2926_v21, %v3888_v55 }
 0xd81   : > { %v3903_v14 = vunpack.i.h.bf16 %v3901_v24  ;;  %v3902_v16 = vunpack.i.l.bf16 %v3901_v24  ;;  %v3896_v4 = vpop.permute.xlu0 %3895 }
 0xd82   : > { %v3898_v33 = vunpack.i.h.bf16 %v3896_v4  ;;  %v3897_v41 = vunpack.i.l.bf16 %v3896_v4 }
 0xd83   : > { %v2962_v22 = vsel %vm2954_vm4, %v2945_v43, %v3903_v14  ;;  %v2961_v63 = vsel %vm2954_vm4, %v2944_v34, %v3902_v16 }
 0xd84   : > { %v2974_v25 = vpack.c.bf16 %v2962_v22, %v2961_v63  ;;  %v2959_v39 = vsel %vm2954_vm4, %v2942_v35, %v3897_v41  ;;  %v2960_v23 = vsel %vm2954_vm4, %v2943_v19, %v3898_v33  ;;  %v3911_v27 = vpop.permute.xlu1 %3910 }
 0xd85   : > { %v2973_v18 = vpack.c.bf16 %v2960_v23, %v2959_v39  ;;  %v3906_v17 = vpop.permute.xlu0 %3905  ;;  %v3913_v3 = vunpack.i.h.bf16 %v3911_v27  ;;  %v3912_v8 = vunpack.i.l.bf16 %v3911_v27 }
 0xd86   : > { %v3908_v29 = vunpack.i.h.bf16 %v3906_v17  ;;  %v3907_v54 = vunpack.i.l.bf16 %v3906_v17 }
 0xd87   : > { %3746 = vmatprep.mubr.msk.bf16.mxu1 %vm301_vm0, %v2973_v18  ;;  %v2932_v47 = vsel %vm459_vm1, %v6105_v26, %v3913_v3  ;;  %v2931_v15 = vsel %vm459_vm1, %v6106_v5, %v3912_v8 }
 0xd88   : > { %3747 = vmatmul.mubr.msk.bf16.gmra.mrb[60].mxu1 %vm301_vm0, %v2974_v25  ;;  %v3921_v40 = vpop.permute.xlu1 %3920  ;;  %v2930_v51 = vsel %vm459_vm1, %v6107_v30, %v3908_v29  ;;  %v2929_v55 = vsel %vm459_vm1, %v6108_v57, %v3907_v54  ;;  %v3297_v54 = vld [vmem:[%s6018_s4] ss:$0 sm:$0xff] }
 0xd89   : > { %v3916_v46 = vpop.permute.xlu0 %3915  ;;  %v3922_v58 = vunpack.i.l.bf16 %v3921_v40  ;;  %v3923_v10 = vunpack.i.h.bf16 %v3921_v40 }
 0xd8a   : > { %v3917_v62 = vunpack.i.l.bf16 %v3916_v46  ;;  %v3918_v11 = vunpack.i.h.bf16 %v3916_v46 }
 0xd8b   : > { %v2948_v56 = vsel %vm2937_vm3, %v2931_v15, %v3922_v58  ;;  %v2949_v37 = vsel %vm2937_vm3, %v2932_v47, %v3923_v10 }
 0xd8c   : > { %v3931_v13 = vpop.permute.xlu1 %3930  ;;  %v2946_v24 = vsel %vm2937_vm3, %v2929_v55, %v3917_v62  ;;  %v2947_v12 = vsel %vm2937_vm3, %v2930_v51, %v3918_v11 }
 0xd8d   : > { %v3926_v0 = vpop.permute.xlu0 %3925  ;;  %v3933_v59 = vunpack.i.h.bf16 %v3931_v13  ;;  %v3932_v4 = vunpack.i.l.bf16 %v3931_v13 }
 0xd8e   : > { %v3928_v35 = vunpack.i.h.bf16 %v3926_v0  ;;  %v3927_v19 = vunpack.i.l.bf16 %v3926_v0 }
 0xda2   : > { %v3732_v36 = vpop.f32.mrb[80].mxu0 }
 0xda3   : > { %v2698_v28 = vpop.f32.mrb[81].mxu0 }
 0xda4   : > { %v3733_v7 = vpop.f32.mrb[82].mxu0 }
 0xda5   : > { %v3934_v38 = vpack.i.bf16 %v3733_v7, %v3732_v36  ;;  %v2701_v32 = vpop.f32.mrb[83].mxu0  ;;  %v6109_v36 = vld [vmem:[#allocation19_spill] sm:$0xff]  ;;  %v6110_v7 = vld [vmem:[#allocation17_spill] sm:$0xff] }
 0xda6   : > { %v3939_v42 = vpack.i.bf16 %v2701_v32, %v2698_v28  ;;  %v2936_v28 = vsel %vm459_vm1, %v6109_v36, %v3933_v59 }
 0xda7   : > { %3935 = vrot.lane.b32.xlu1 %v3934_v38, %s4317_s28  ;;  %v2935_v38 = vsel %vm459_vm1, %v6110_v7, %v3932_v4 }
 0xda8   : > { %3940 = vrot.lane.b32.xlu0 %v3939_v42, %s4317_s28  ;;  %v6111_v42 = vld [vmem:[#allocation20_spill] sm:$0xff] }
 0xdaa   : > { %v3736_v49 = vpop.f32.mrb[84].mxu0 }
 0xdab   : > { %3950 = vrot.lane.b32.xlu1 %v6101_v60, %s4316_s29  ;;  %v2714_v45 = vpop.f32.mrb[85].mxu0  ;;  %v6112_v60 = vld [vmem:[#allocation18_spill] sm:$0xff] }
 0xdac   : > { %3945 = vrot.lane.b32.xlu0 %v6104_v44, %s4316_s29  ;;  %v3737_v50 = vpop.f32.mrb[86].mxu0 }
 0xdad   : > { %v3959_v48 = vpack.i.bf16 %v3737_v50, %v3736_v49  ;;  %v2717_v20 = vpop.f32.mrb[87].mxu0  ;;  %v2934_v49 = vsel %vm459_vm1, %v6111_v42, %v3928_v35 }
 0xdae   : > { %v3954_v6 = vpack.i.bf16 %v2717_v20, %v2714_v45  ;;  %v2933_v45 = vsel %vm459_vm1, %v6112_v60, %v3927_v19 }
 0xdaf   : > { %3960 = vrot.lane.b32.xlu1 %v3959_v48, %s4317_s28 }
 0xdb0   : > { %3955 = vrot.lane.b32.xlu0 %v3954_v6, %s4317_s28  ;;  %s4246_s28 = scalar_lea.vmem %s4245_s12, 4096 }
 0xdb1   : > { %p4248_p1 = scmp.lt.s32.totalorder %s4246_s28, %s4240_s10 }
 0xdb3   : > { %p4249_p2 = por %p4248_p1, %p4247_p0 }
 0xdb5   : > { %p4250_p3 = pnand %p4249_p2, %p4243_p13 }
 0xe19   : > { %v3936_v53 = vpop.permute.xlu1 %3935 }
 0xe1a   : > { %v3938_v1 = vunpack.i.h.bf16 %v3936_v53  ;;  %v3937_v2 = vunpack.i.l.bf16 %v3936_v53  ;;  %v3941_v31 = vpop.permute.xlu0 %3940 }
 0xe1b   : > { %v3943_v61 = vunpack.i.h.bf16 %v3941_v31  ;;  %v3942_v21 = vunpack.i.l.bf16 %v3941_v31 }
 0xe1c   : > { %v2966_v14 = vsel %vm2954_vm4, %v2949_v37, %v3938_v1  ;;  %v2965_v16 = vsel %vm2954_vm4, %v2948_v56, %v3937_v2 }
 0xe1d   : > { %v2976_v34 = vpack.c.bf16 %v2966_v14, %v2965_v16  ;;  %v2963_v43 = vsel %vm2954_vm4, %v2946_v24, %v3942_v21  ;;  %v2964_v33 = vsel %vm2954_vm4, %v2947_v12, %v3943_v61  ;;  %v3951_v41 = vpop.permute.xlu1 %3950 }
 0xe1e   : > { %v2975_v22 = vpack.c.bf16 %v2964_v33, %v2963_v43  ;;  %v3946_v63 = vpop.permute.xlu0 %3945  ;;  %v3953_v25 = vunpack.i.h.bf16 %v3951_v41  ;;  %v3952_v39 = vunpack.i.l.bf16 %v3951_v41 }
 0xe1f   : > { %v3948_v23 = vunpack.i.h.bf16 %v3946_v63  ;;  %v3947_v18 = vunpack.i.l.bf16 %v3946_v63 }
 0xe20   : > { %3750 = vmatprep.mubr.msk.bf16.mxu1 %vm301_vm0, %v2975_v22  ;;  %v2953_v50 = vsel %vm2937_vm3, %v2936_v28, %v3953_v25  ;;  %v2952_v48 = vsel %vm2937_vm3, %v2935_v38, %v3952_v39 }
 0xe21   : > { %v3961_v32 = vpop.permute.xlu1 %3960  ;;  %3751 = vmatmul.mubr.msk.bf16.gmra.mrb[64].mxu1 %vm301_vm0, %v2976_v34  ;;  %v2950_v27 = vsel %vm2937_vm3, %v2933_v45, %v3947_v18  ;;  %v2951_v17 = vsel %vm2937_vm3, %v2934_v49, %v3948_v23 }
 0xe22   : > { %v3963_v52 = vunpack.i.h.bf16 %v3961_v32  ;;  %v3962_v9 = vunpack.i.l.bf16 %v3961_v32  ;;  %v3956_v44 = vpop.permute.xlu0 %3955 }
 0xe23   : > { %v3958_v20 = vunpack.i.h.bf16 %v3956_v44  ;;  %v3957_v6 = vunpack.i.l.bf16 %v3956_v44 }
 0xe24   : > { %v2970_v40 = vsel %vm2954_vm4, %v2953_v50, %v3963_v52  ;;  %v2969_v46 = vsel %vm2954_vm4, %v2952_v48, %v3962_v9 }
 0xe25   : > { %v2978_v3 = vpack.c.bf16 %v2970_v40, %v2969_v46  ;;  %v2967_v8 = vsel %vm2954_vm4, %v2950_v27, %v3957_v6  ;;  %v2968_v29 = vsel %vm2954_vm4, %v2951_v17, %v3958_v20 }
 0xe26   : > { %v2977_v13 = vpack.c.bf16 %v2968_v29, %v2967_v8 }
 0xe28   : > { %3754 = vmatprep.mubr.msk.bf16.mxu1 %vm301_vm0, %v2977_v13 }
 0xe29   : > { %3755 = vmatmul.mubr.msk.bf16.gmra.mrb[68].mxu1 %vm301_vm0, %v2978_v3 }
 0xe4f   : > { %v3744_v58 = vpop.f32.mrb[56].mxu1 }
 0xe50   : > { %v3069_v0 = vadd.f32 %v3744_v58, %v3297_v54  ;;  %v3060_v10 = vpop.f32.mrb[57].mxu1 }
 0xe51   : > { %v3061_v62 = vadd.f32 %v3297_v54, %v3060_v10  ;;  %v3745_v11 = vpop.f32.mrb[58].mxu1 }
 0xe52   : > { %3125 = vst [vmem:[%s5943_s18 + $0x10] sm:$0xff] %v3069_v0  ;;  %v3072_v26 = vadd.f32 %v3745_v11, %v3297_v54  ;;  %v3063_v47 = vpop.f32.mrb[59].mxu1 }
 0xe53   : > { %3123 = vst [vmem:[%s5943_s18] sm:$0xff] %v3061_v62  ;;  %v3064_v5 = vadd.f32 %v3297_v54, %v3063_v47 }
 0xe54   : > { %3126 = vst [vmem:[%s5943_s18 + $0x18] sm:$0xff] %v3072_v26 }
 0xe55   : > { %3124 = vst [vmem:[%s5943_s18 + $0x8] sm:$0xff] %v3064_v5 }
 0xe5b   : > { %v3748_v15 = vpop.f32.mrb[60].mxu1 }
 0xe5c   : > { %v3085_v30 = vadd.f32 %v3748_v15, %v3297_v54  ;;  %v3076_v51 = vpop.f32.mrb[61].mxu1 }
 0xe5d   : > { %v3077_v53 = vadd.f32 %v3297_v54, %v3076_v51  ;;  %v3749_v57 = vpop.f32.mrb[62].mxu1 }
 0xe5e   : > { %3129 = vst [vmem:[%s5943_s18 + $0x30] sm:$0xff] %v3085_v30  ;;  %v3088_v55 = vadd.f32 %v3749_v57, %v3297_v54  ;;  %v3079_v56 = vpop.f32.mrb[63].mxu1 }
 0xe5f   : > { %3127 = vst [vmem:[%s5943_s18 + $0x20] sm:$0xff] %v3077_v53  ;;  %v3080_v1 = vadd.f32 %v3297_v54, %v3079_v56 }
 0xe60   : > { %3130 = vst [vmem:[%s5943_s18 + $0x38] sm:$0xff] %v3088_v55 }
 0xe61   : > { %3128 = vst [vmem:[%s5943_s18 + $0x28] sm:$0xff] %v3080_v1 }
 0xef4   : > { %v3752_v2 = vpop.f32.mrb[64].mxu1 }
 0xef5   : > { %v3101_v31 = vadd.f32 %v3752_v2, %v3297_v54  ;;  %v3092_v37 = vpop.f32.mrb[65].mxu1 }
 0xef6   : > { %v3093_v24 = vadd.f32 %v3297_v54, %v3092_v37  ;;  %v3753_v61 = vpop.f32.mrb[66].mxu1 }
 0xef7   : > { %3133 = vst [vmem:[%s5943_s18 + $0x50] sm:$0xff] %v3101_v31  ;;  %v3104_v21 = vadd.f32 %v3753_v61, %v3297_v54  ;;  %v3095_v12 = vpop.f32.mrb[67].mxu1 }
 0xef8   : > { %3131 = vst [vmem:[%s5943_s18 + $0x40] sm:$0xff] %v3093_v24  ;;  %v3096_v59 = vadd.f32 %v3297_v54, %v3095_v12 }
 0xef9   : > { %3134 = vst [vmem:[%s5943_s18 + $0x58] sm:$0xff] %v3104_v21 }
 0xefa   : > { %3132 = vst [vmem:[%s5943_s18 + $0x48] sm:$0xff] %v3096_v59 }
 0xefc   : > { %v3756_v14 = vpop.f32.mrb[68].mxu1 }
 0xefd   : > { %v3117_v16 = vadd.f32 %v3756_v14, %v3297_v54  ;;  %v3108_v4 = vpop.f32.mrb[69].mxu1 }
 0xefe   : > { %v3109_v34 = vadd.f32 %v3297_v54, %v3108_v4  ;;  %v3757_v43 = vpop.f32.mrb[70].mxu1 }
 0xeff   : > { %3137 = vst [vmem:[%s5943_s18 + $0x70] sm:$0xff] %v3117_v16  ;;  %v3120_v33 = vadd.f32 %v3757_v43, %v3297_v54  ;;  %v3111_v41 = vpop.f32.mrb[71].mxu1 }
 0xf00   : > { %3135 = vst [vmem:[%s5943_s18 + $0x60] sm:$0xff] %v3109_v34  ;;  %v3112_v35 = vadd.f32 %v3297_v54, %v3111_v41 }
 0xf01   : > { %3138 = vst [vmem:[%s5943_s18 + $0x78] sm:$0xff] %v3120_v33 }
 0xf02   : > { %3136 = vst [vmem:[%s5943_s18 + $0x68] sm:$0xff] %v3112_v35 }
 0xf03   : > { %4253 = shalt.err (!%p4250_p3)
}
 0xf04   : > { %s4254_s13 = scalar_lea.hbm %s5963_s9, 2048  ;;  %s4258_s16 = scalar_lea.hbm %s6020_s6, 4096 }
 0xf05   : > { %p4255_p4 = scmp.ne.s32.totalorder %s5963_s9, %s4254_s13  ;;  %p4259_p9 = scmp.lt.u32.totalorder %s5963_s9, %s6020_s6 }
 0xf06   : > { %p4260_p10 = scmp.lt.u32.totalorder %s4258_s16, %s4254_s13  ;;  %p4262_p12 = scmp.lt.u32.totalorder %s4254_s13, %s5963_s9 }
 0xf07   : > { %p4256_p7 = pnand %p4255_p4, %p4393_p5 }
 0xf08   : > { %p4261_p11 = por %p4260_p10, %p4259_p9 }
 0xf09   : > { %p4257_p8 = pneg %p4256_p7 }
 0xf0a   : > { %p4263_p13 = por %p4262_p12, %p4261_p11 }
 0xf0c   : > { %p4264_p0 = pnand %p4263_p13, %p4257_p8 }
 0xf0e   : > { %4267 = shalt.err (!%p4264_p0)
}
 0xf0f   : > { %s4319_s17 = smov 128  }
 0xf10   : > { %3790 = dma.vmem_to_hbm [thread:$0]  (%p4393_p5), %s5966_s20, 2048, %s5963_s9, %s5972_s25, %s4319_s17, %s4319_s17, %s4315_s26  }
 0xf11 PF: > { %p3796_p1 = scmp.ge.s32.totalorder %s4302_s24, 2  ;;  %s3168_s29 = sand.u32 1, %s4290_s21  }
 0xf12   : > { %s3169_s10 = scalar_lea.sflag [#allocation3], %s3168_s29 }
 0xf13   : > { %p3793_p2 = pnand %p3796_p1, %p4397_p6 }
 0xf15   : > { %4285 = dma.done.wait (!%p3793_p2), %s3169_s10, 2048  }
 0xf16   : > { %4287 = vsyncadd (!%p3793_p2), %s3169_s10, 4294965248  ;;  %p16_p3 = scmp.ge.s32.totalorder %s4380_s27, 4   ;;  %s6113_s21 = smov %s4294_s22 }
 0xf17   : > { %s6114_s22 = smov %s4298_s23  ;;  %s6115_s23 = smov %s4391_s30 }
 0xf18   : > { %s6116_s24 = smov %s4380_s27  ;;  %18 = sbr.rel (!%p16_p3) target bundleno = 3 (0x3), region = 79 }
 0xf1f   :  { %3174 = vsyncpa [#allocation3], 1 }
 0xf20   :  { %3176 = vsyncpa [#allocation3 + $0x1], 1 }

</bundles_post_ra>
